<compile_context>
chip_gen: v5e
topology: v5e:2x2
jax: 0.10.0
libtpu: 0.0.40
codegen_flags: <defaults>
</compile_context>

<pallas_src>
import functools
import math

import jax
import jax.numpy as jnp
from jax.experimental import pallas as pl
from jax.experimental.pallas import tpu as pltpu

VMEM_LIMIT = 32 * 1024 * 1024  # safe on v5e / v6e / v7x


def _largest_tile(n, candidates):
    for c in candidates:
        if c <= n and n % c == 0:
            return c
    return n


# ----------------------------- conv matmul kernel ---------------------------

def _conv_mm_kernel(*refs, act, has_res):
    if has_res:
        w_ref, c_ref, b_ref, r_ref, o_ref = refs
    else:
        w_ref, c_ref, b_ref, o_ref = refs
    acc = jnp.dot(w_ref[...], c_ref[...], preferred_element_type=jnp.float32)
    acc = acc + b_ref[...]                      # per-output-channel bias (BN shift)
    if has_res:
        acc = acc + r_ref[...]                  # fused residual add
    if act == "relu":
        acc = jnp.maximum(acc, 0.0)
    o_ref[...] = acc


def pallas_conv_matmul(wmat, col, bias, *, act, residual=None):
    """out = act(wmat @ col + bias [+ residual]).

    wmat: (Cout, K) bf16 (BN scale folded in), col: (K, M) bf16, bias: (Cout, 1) f32,
    residual: (Cout, M) f32 or None.  Lane dim of the output is the large spatial M.
    """
    Cout, K = wmat.shape
    K2, M = col.shape
    assert K == K2
    tn = _largest_tile(M, (512, 256, 128))
    grid = (M // tn,)
    in_specs = [
        pl.BlockSpec((Cout, K), lambda i: (0, 0)),
        pl.BlockSpec((K, tn), lambda i: (0, i)),
        pl.BlockSpec((Cout, 1), lambda i: (0, 0)),
    ]
    args = [wmat, col, bias]
    if residual is not None:
        in_specs.append(pl.BlockSpec((Cout, tn), lambda i: (0, i)))
        args.append(residual.astype(jnp.float32))
    return pl.pallas_call(
        functools.partial(_conv_mm_kernel, act=act, has_res=residual is not None),
        out_shape=jax.ShapeDtypeStruct((Cout, M), jnp.float32),
        grid=grid,
        in_specs=in_specs,
        out_specs=pl.BlockSpec((Cout, tn), lambda i: (0, i)),
        compiler_params=pltpu.CompilerParams(
            dimension_semantics=("parallel",), vmem_limit_bytes=VMEM_LIMIT),
    )(*args)


def conv_bn_act(x, wmat, bias, *, kh, kw, stride, padding, act, residual=None):
    """Channel-major conv.  x: (C, N, H, W) f32 -> (Cout, N, OH, OW) f32."""
    C, N, H, W = x.shape
    Cout = wmat.shape[0]
    OH = (H + 2 * padding - kh) // stride + 1
    OW = (W + 2 * padding - kw) // stride + 1
    xp = x
    if padding:
        xp = jnp.pad(x, ((0, 0), (0, 0), (padding, padding), (padding, padding)))
    xp = xp.astype(jnp.bfloat16)                       # bf16 operands, f32 accumulation
    patches = []
    for i in range(kh):
        for j in range(kw):
            patches.append(xp[:, :, i:i + stride * OH:stride, j:j + stride * OW:stride])
    col = jnp.stack(patches, axis=1).reshape(C * kh * kw, N * OH * OW)   # (Cin,KH,KW) order
    res = None if residual is None else residual.reshape(Cout, N * OH * OW)
    out = pallas_conv_matmul(wmat, col, bias, act=act, residual=res)
    return out.reshape(Cout, N, OH, OW)


def resblock(x, p, *, stride):
    h = conv_bn_act(x, p["w1"], p["b1"], kh=3, kw=3, stride=stride, padding=1, act="relu")
    # dropout: identity at inference
    if "ws" in p:
        sc = conv_bn_act(x, p["ws"], p["bs"], kh=1, kw=1, stride=stride, padding=0, act="none")
    else:
        sc = x
    # conv2 + BN2 + residual add + final ReLU fused into one kernel
    return conv_bn_act(h, p["w2"], p["b2"], kh=3, kw=3, stride=1, padding=1,
                       act="relu", residual=sc)


# -------------------------- transformer: fused kernels -----------------------

def _ln_qkv_kernel(x_ref, g_ref, bln_ref, w_ref, b_ref, o_ref):
    x = x_ref[...]
    mu = jnp.mean(x, axis=-1, keepdims=True)
    var = jnp.mean(jnp.square(x - mu), axis=-1, keepdims=True)
    h = (x - mu) * jax.lax.rsqrt(var + 1e-5) * g_ref[...] + bln_ref[...]
    acc = jnp.dot(h.astype(jnp.bfloat16), w_ref[...], preferred_element_type=jnp.float32)
    o_ref[...] = acc + b_ref[...]


def pallas_ln_matmul(x, g, b_ln, w_t, b_out):
    """out = LN(x) @ w_t + b_out.  x:(M,D) f32, w_t:(D,N) bf16."""
    M, D = x.shape
    N = w_t.shape[1]
    tm = _largest_tile(M, (256, 128, 64, 32, 16, 8))
    grid = (M // tm,)
    return pl.pallas_call(
        _ln_qkv_kernel,
        out_shape=jax.ShapeDtypeStruct((M, N), jnp.float32),
        grid=grid,
        in_specs=[pl.BlockSpec((tm, D), lambda i: (i, 0)),
                  pl.BlockSpec((1, D), lambda i: (0, 0)),
                  pl.BlockSpec((1, D), lambda i: (0, 0)),
                  pl.BlockSpec((D, N), lambda i: (0, 0)),
                  pl.BlockSpec((1, N), lambda i: (0, 0))],
        out_specs=pl.BlockSpec((tm, N), lambda i: (i, 0)),
        compiler_params=pltpu.CompilerParams(
            dimension_semantics=("parallel",), vmem_limit_bytes=VMEM_LIMIT),
    )(x, g, b_ln, w_t, b_out)


def _attn_kernel(q_ref, k_ref, v_ref, o_ref, *, scale):
    q = q_ref[...].astype(jnp.bfloat16)          # (BH, S, Dh)
    k = k_ref[...].astype(jnp.bfloat16)
    v = v_ref[...].astype(jnp.bfloat16)
    s = jnp.einsum('bqd,bkd->bqk', q, k, preferred_element_type=jnp.float32) * scale
    m = jnp.max(s, axis=-1, keepdims=True)
    p = jnp.exp(s - m)
    p = p / jnp.sum(p, axis=-1, keepdims=True)   # softmax stays f32
    o_ref[...] = jnp.einsum('bqk,bkd->bqd', p.astype(jnp.bfloat16), v,
                            preferred_element_type=jnp.float32)


def pallas_attention(q, k, v):
    """All (batch, head) pairs in ONE grid step.  q,k,v: (B*H, S, Dh) f32."""
    BH, S, Dh = q.shape
    scale = 1.0 / math.sqrt(Dh)
    return pl.pallas_call(
        functools.partial(_attn_kernel, scale=scale),
        out_shape=jax.ShapeDtypeStruct((BH, S, Dh), jnp.float32),
        grid=(1,),
        in_specs=[pl.BlockSpec((BH, S, Dh), lambda i: (0, 0, 0)),
                  pl.BlockSpec((BH, S, Dh), lambda i: (0, 0, 0)),
                  pl.BlockSpec((BH, S, Dh), lambda i: (0, 0, 0))],
        out_specs=pl.BlockSpec((BH, S, Dh), lambda i: (0, 0, 0)),
        compiler_params=pltpu.CompilerParams(
            dimension_semantics=("arbitrary",), vmem_limit_bytes=VMEM_LIMIT),
    )(q, k, v)


def _out_ffn_kernel(a_ref, x_ref, wo_ref, bo_ref, g2_ref, b2ln_ref,
                    w1_ref, b1_ref, w2_ref, b2_ref, o_ref):
    # out-projection + residual
    y = x_ref[...] + bo_ref[...] + jnp.dot(a_ref[...].astype(jnp.bfloat16), wo_ref[...],
                                           preferred_element_type=jnp.float32)
    # LN2 (f32 stats)
    mu = jnp.mean(y, axis=-1, keepdims=True)
    var = jnp.mean(jnp.square(y - mu), axis=-1, keepdims=True)
    h = (y - mu) * jax.lax.rsqrt(var + 1e-5) * g2_ref[...] + b2ln_ref[...]
    # FFN + residual
    f = jnp.dot(h.astype(jnp.bfloat16), w1_ref[...],
                preferred_element_type=jnp.float32) + b1_ref[...]
    f = jnp.maximum(f, 0.0)
    z = jnp.dot(f.astype(jnp.bfloat16), w2_ref[...],
                preferred_element_type=jnp.float32) + b2_ref[...]
    o_ref[...] = y + z


def pallas_attn_out_ffn(attn, x, p):
    M, D = x.shape
    dff = p["w1_t"].shape[1]
    tm = _largest_tile(M, (256, 128, 64, 32, 16, 8))
    grid = (M // tm,)
    return pl.pallas_call(
        _out_ffn_kernel,
        out_shape=jax.ShapeDtypeStruct((M, D), jnp.float32),
        grid=grid,
        in_specs=[pl.BlockSpec((tm, D), lambda i: (i, 0)),    # attention output
                  pl.BlockSpec((tm, D), lambda i: (i, 0)),    # residual stream
                  pl.BlockSpec((D, D), lambda i: (0, 0)),     # Wo^T
                  pl.BlockSpec((1, D), lambda i: (0, 0)),     # b_o
                  pl.BlockSpec((1, D), lambda i: (0, 0)),     # ln2 gamma
                  pl.BlockSpec((1, D), lambda i: (0, 0)),     # ln2 beta
                  pl.BlockSpec((D, dff), lambda i: (0, 0)),   # W1^T
                  pl.BlockSpec((1, dff), lambda i: (0, 0)),   # b1
                  pl.BlockSpec((dff, D), lambda i: (0, 0)),   # W2^T
                  pl.BlockSpec((1, D), lambda i: (0, 0))],    # b2
        out_specs=pl.BlockSpec((tm, D), lambda i: (i, 0)),
        compiler_params=pltpu.CompilerParams(
            dimension_semantics=("parallel",), vmem_limit_bytes=VMEM_LIMIT),
    )(attn, x, p["w_o_t"], p["b_o"], p["ln2_g"], p["ln2_b"],
      p["w1_t"], p["b1"], p["w2_t"], p["b2"])


def encoder_layer(x, p, n_head):
    """norm_first TransformerEncoderLayer (inference): x += MHA(LN(x)); x += FFN(LN(x))."""
    B, S, D = x.shape
    M = B * S
    Dh = D // n_head
    x2 = x.reshape(M, D)
    qkv = pallas_ln_matmul(x2, p["ln1_g"], p["ln1_b"], p["w_qkv_t"], p["b_qkv"])  # (M, 3D)
    qkv = qkv.reshape(B, S, 3, n_head, Dh).transpose(2, 0, 3, 1, 4)               # (3,B,H,S,Dh)
    q = qkv[0].reshape(B * n_head, S, Dh)
    k = qkv[1].reshape(B * n_head, S, Dh)
    v = qkv[2].reshape(B * n_head, S, Dh)
    attn = pallas_attention(q, k, v)                                               # (BH,S,Dh)
    attn = attn.reshape(B, n_head, S, Dh).transpose(0, 2, 1, 3).reshape(M, D)
    x2 = pallas_attn_out_ffn(attn, x2, p)
    return x2.reshape(B, S, D)


# --------------------------- mean-pool + fc (fused) ---------------------------

def _mean_fc_kernel(x_ref, w_ref, o_ref):
    pooled = jnp.mean(x_ref[...], axis=1)                       # (B, D), f32
    o_ref[...] = jnp.dot(pooled.astype(jnp.bfloat16), w_ref[...],
                         preferred_element_type=jnp.float32)


def pallas_mean_fc(seq, fc_w_t):
    B, S, D = seq.shape
    C = fc_w_t.shape[1]
    return pl.pallas_call(
        _mean_fc_kernel,
        out_shape=jax.ShapeDtypeStruct((B, C), jnp.float32),
        grid=(1,),
        in_specs=[pl.BlockSpec((B, S, D), lambda i: (0, 0, 0)),
                  pl.BlockSpec((D, C), lambda i: (0, 0))],
        out_specs=pl.BlockSpec((B, C), lambda i: (0, 0)),
        compiler_params=pltpu.CompilerParams(
            dimension_semantics=("arbitrary",), vmem_limit_bytes=VMEM_LIMIT),
    )(seq, fc_w_t)


# -------------------------------- Full model --------------------------------

def gt_forward(params, x):
    # x: (b, s, c, w, h) f32
    b, s, c, w, h = x.shape
    xc = x.reshape(b * s, c, w, h).transpose(1, 0, 2, 3)     # (C, N, H, W), N = b*s
    out = resblock(xc, params["head"], stride=1)
    for rp in params["res"]:
        out = resblock(out, rp, stride=2)
    C_f, N, Hf, Wf = out.shape
    # single reorder back to (b, s, C, H, W) flatten order to match PyTorch reshape(b, s, -1)
    seq = out.transpose(1, 0, 2, 3).reshape(b, s, C_f * Hf * Wf)
    for lp in params["layers"]:
        seq = encoder_layer(seq, lp, params["n_head"])
    logits = pallas_mean_fc(seq, params["fc_w_t"])           # mean over seq + Linear (bias=False)
    return logits                                            # .squeeze() is a no-op for b>1


# ------------------------------ Parameter init ------------------------------

def init_params(cfg, seed=0):
    key = jax.random.PRNGKey(seed)
    ctr = [0]

    def nxt():
        ctr[0] += 1
        return jax.random.fold_in(key, ctr[0])

    def conv_prepped(cout, cin, k):
        w = 0.1 * jax.random.normal(nxt(), (cout, cin, k, k), jnp.float32)
        eps = 1e-5
        gamma = jnp.ones((cout,), jnp.float32)
        beta = jnp.zeros((cout,), jnp.float32)
        mean = jnp.zeros((cout,), jnp.float32)
        var = jnp.ones((cout,), jnp.float32)
        scale = gamma / jnp.sqrt(var + eps)
        shift = beta - mean * scale
        # fold BN scale into the weight matrix; bias = BN shift
        wmat = (w.reshape(cout, cin * k * k) * scale[:, None]).astype(jnp.bfloat16)
        bias = shift.reshape(cout, 1).astype(jnp.float32)
        return wmat, bias

    def resblock_params(cin, cout, stride):
        p = {}
        p["w1"], p["b1"] = conv_prepped(cout, cin, 3)
        p["w2"], p["b2"] = conv_prepped(cout, cout, 3)
        if stride != 1 or cin != cout:
            p["ws"], p["bs"] = conv_prepped(cout, cin, 1)
        return p

    params = {"n_head": cfg["n_head"]}
    params["head"] = resblock_params(cfg["in_channel"], cfg["head_channel"], 1)
    res, ch, num = [], cfg["head_channel"], cfg["in_size"]
    for _ in range(cfg["res_num"]):
        res.append(resblock_params(ch, ch * 2, 2))
        ch *= 2
        num = (num + 1) // 2
    params["res"] = res
    D = ch * num * num
    assert D % cfg["n_head"] == 0
    dff = cfg["dim_forward"]
    layers = []
    for _ in range(cfg["tsfm_layers"]):
        w_qkv = 0.05 * jax.random.normal(nxt(), (3 * D, D), jnp.float32)
        w_o = 0.05 * jax.random.normal(nxt(), (D, D), jnp.float32)
        w1 = 0.05 * jax.random.normal(nxt(), (dff, D), jnp.float32)
        w2 = 0.05 * jax.random.normal(nxt(), (D, dff), jnp.float32)
        layers.append(dict(
            ln1_g=jnp.ones((1, D), jnp.float32), ln1_b=jnp.zeros((1, D), jnp.float32),
            w_qkv_t=w_qkv.T.astype(jnp.bfloat16), b_qkv=jnp.zeros((1, 3 * D), jnp.float32),
            w_o_t=w_o.T.astype(jnp.bfloat16), b_o=jnp.zeros((1, D), jnp.float32),
            ln2_g=jnp.ones((1, D), jnp.float32), ln2_b=jnp.zeros((1, D), jnp.float32),
            w1_t=w1.T.astype(jnp.bfloat16), b1=jnp.zeros((1, dff), jnp.float32),
            w2_t=w2.T.astype(jnp.bfloat16), b2=jnp.zeros((1, D), jnp.float32),
        ))
    params["layers"] = layers
    fc_w = 0.05 * jax.random.normal(nxt(), (cfg["cls_size"], D), jnp.float32)
    params["fc_w_t"] = fc_w.T.astype(jnp.bfloat16)
    return params


# ----------------------------------- Main ------------------------------------

if __name__ == "__main__":
    cfg = dict(in_channel=4, head_channel=4, res_num=2, in_size=16,
               tsfm_layers=2, n_head=4, dim_forward=64, cls_size=8)
    params = init_params(cfg, seed=0)

    key = jax.random.PRNGKey(0)
    b, s = 2, 4
    x = jax.random.normal(key, (b, s, cfg["in_channel"], cfg["in_size"], cfg["in_size"]),
                          jnp.float32)

    fwd = jax.jit(functools.partial(gt_forward, params))
    out = fwd(x)
    jax.block_until_ready(out)
    assert out.shape == (b, cfg["cls_size"]), out.shape
    assert jnp.all(jnp.isfinite(out))
    print("KERNEL_OK")
</pallas_src>

<mosaic_0001>
module attributes {stable_mosaic.version = 11 : i64} {
  func.func @_conv_mm_kernel(%arg0: i32, %arg1: memref<4x36xbf16, #tpu.memory_space<vmem>>, %arg2: memref<36x512xbf16, #tpu.memory_space<vmem>>, %arg3: memref<4x1xf32, #tpu.memory_space<vmem>>, %arg4: memref<4x512xf32, #tpu.memory_space<vmem>>) attributes {dimension_semantics = [#tpu.dimension_semantics<parallel>], iteration_bounds = array<i64: 4>, scalar_prefetch = 0 : i64, scratch_operands = 0 : i64, tpu.core_type = #tpu.core_type<tc>, window_params = [{pipeline_mode = #tpu.pipeline_mode<synchronous>, transform_indices = @transform_0, window_bounds = array<i64: 4, 36>}, {transform_indices = @transform_1, window_bounds = array<i64: 36, 512>}, {pipeline_mode = #tpu.pipeline_mode<synchronous>, transform_indices = @transform_2, window_bounds = array<i64: 4, 1>}, {transform_indices = @transform_3, window_bounds = array<i64: 4, 512>}]} {
    %c0 = arith.constant 0 : index
    %c0_0 = arith.constant 0 : index
    %0 = vector.load %arg1[%c0, %c0_0] : memref<4x36xbf16, #tpu.memory_space<vmem>>, vector<4x36xbf16>
    %c0_1 = arith.constant 0 : index
    %c0_2 = arith.constant 0 : index
    %1 = vector.load %arg2[%c0_1, %c0_2] : memref<36x512xbf16, #tpu.memory_space<vmem>>, vector<36x512xbf16>
    %cst = arith.constant dense<0.000000e+00> : vector<4x512xf32>
    %2 = tpu.matmul %0, %1, %cst {dimension_numbers = #tpu.dot_dimension_numbers<[1], [0], [0], [1], [0, 0, 1, 1], [], []>} : vector<4x36xbf16>, vector<36x512xbf16>, vector<4x512xf32> -> vector<4x512xf32>
    %c0_3 = arith.constant 0 : index
    %c0_4 = arith.constant 0 : index
    %3 = vector.load %arg3[%c0_3, %c0_4] : memref<4x1xf32, #tpu.memory_space<vmem>>, vector<4x1xf32>
    %4 = vector.broadcast %3 : vector<4x1xf32> to vector<4x512xf32>
    %5 = arith.addf %2, %4 : vector<4x512xf32>
    %cst_5 = arith.constant 0.000000e+00 : f32
    %6 = vector.broadcast %cst_5 : f32 to vector<4x512xf32>
    %7 = arith.maximumf %5, %6 : vector<4x512xf32>
    %c0_6 = arith.constant 0 : index
    %c0_7 = arith.constant 0 : index
    %8 = vector.load %arg4[%c0_6, %c0_7] : memref<4x512xf32, #tpu.memory_space<vmem>>, vector<4x512xf32>
    tpu.vector_store %arg4[%c0_6, %c0_7], %7 {strides = array<i32>} : memref<4x512xf32, #tpu.memory_space<vmem>>, vector<4x512xf32>,
    return
  }
  func.func @transform_0(%arg0: i32) -> (i32, i32) {
    %c0_i32 = arith.constant 0 : i32
    %c0_i32_0 = arith.constant 0 : i32
    %c0_i32_1 = arith.constant 0 : i32
    return %c0_i32, %c0_i32_0 : i32, i32
  }
  func.func @transform_1(%arg0: i32) -> (i32, i32) {
    %c0_i32 = arith.constant 0 : i32
    %c0_i32_0 = arith.constant 0 : i32
    return %c0_i32, %arg0 : i32, i32
  }
  func.func @transform_2(%arg0: i32) -> (i32, i32) {
    %c0_i32 = arith.constant 0 : i32
    %c0_i32_0 = arith.constant 0 : i32
    %c0_i32_1 = arith.constant 0 : i32
    return %c0_i32, %c0_i32_0 : i32, i32
  }
  func.func @transform_3(%arg0: i32) -> (i32, i32) {
    %c0_i32 = arith.constant 0 : i32
    %c0_i32_0 = arith.constant 0 : i32
    return %c0_i32, %arg0 : i32, i32
  }
}

module attributes {stable_mosaic.version = 11 : i64} {
  func.func @_conv_mm_kernel(%arg0: i32, %arg1: memref<4x36xbf16, #tpu.memory_space<vmem>>, %arg2: memref<36x512xbf16, #tpu.memory_space<vmem>>, %arg3: memref<4x1xf32, #tpu.memory_space<vmem>>, %arg4: memref<4x512xf32, #tpu.memory_space<vmem>>, %arg5: memref<4x512xf32, #tpu.memory_space<vmem>>) attributes {dimension_semantics = [#tpu.dimension_semantics<parallel>], iteration_bounds = array<i64: 4>, scalar_prefetch = 0 : i64, scratch_operands = 0 : i64, tpu.core_type = #tpu.core_type<tc>, window_params = [{pipeline_mode = #tpu.pipeline_mode<synchronous>, transform_indices = @transform_0, window_bounds = array<i64: 4, 36>}, {transform_indices = @transform_1, window_bounds = array<i64: 36, 512>}, {pipeline_mode = #tpu.pipeline_mode<synchronous>, transform_indices = @transform_2, window_bounds = array<i64: 4, 1>}, {transform_indices = @transform_3, window_bounds = array<i64: 4, 512>}, {transform_indices = @transform_4, window_bounds = array<i64: 4, 512>}]} {
    %c0 = arith.constant 0 : index
    %c0_0 = arith.constant 0 : index
    %0 = vector.load %arg1[%c0, %c0_0] : memref<4x36xbf16, #tpu.memory_space<vmem>>, vector<4x36xbf16>
    %c0_1 = arith.constant 0 : index
    %c0_2 = arith.constant 0 : index
    %1 = vector.load %arg2[%c0_1, %c0_2] : memref<36x512xbf16, #tpu.memory_space<vmem>>, vector<36x512xbf16>
    %cst = arith.constant dense<0.000000e+00> : vector<4x512xf32>
    %2 = tpu.matmul %0, %1, %cst {dimension_numbers = #tpu.dot_dimension_numbers<[1], [0], [0], [1], [0, 0, 1, 1], [], []>} : vector<4x36xbf16>, vector<36x512xbf16>, vector<4x512xf32> -> vector<4x512xf32>
    %c0_3 = arith.constant 0 : index
    %c0_4 = arith.constant 0 : index
    %3 = vector.load %arg3[%c0_3, %c0_4] : memref<4x1xf32, #tpu.memory_space<vmem>>, vector<4x1xf32>
    %4 = vector.broadcast %3 : vector<4x1xf32> to vector<4x512xf32>
    %5 = arith.addf %2, %4 : vector<4x512xf32>
    %c0_5 = arith.constant 0 : index
    %c0_6 = arith.constant 0 : index
    %6 = vector.load %arg4[%c0_5, %c0_6] : memref<4x512xf32, #tpu.memory_space<vmem>>, vector<4x512xf32>
    %7 = arith.addf %5, %6 : vector<4x512xf32>
    %cst_7 = arith.constant 0.000000e+00 : f32
    %8 = vector.broadcast %cst_7 : f32 to vector<4x512xf32>
    %9 = arith.maximumf %7, %8 : vector<4x512xf32>
    %c0_8 = arith.constant 0 : index
    %c0_9 = arith.constant 0 : index
    %10 = vector.load %arg5[%c0_8, %c0_9] : memref<4x512xf32, #tpu.memory_space<vmem>>, vector<4x512xf32>
    tpu.vector_store %arg5[%c0_8, %c0_9], %9 {strides = array<i32>} : memref<4x512xf32, #tpu.memory_space<vmem>>, vector<4x512xf32>,
    return
  }
  func.func @transform_0(%arg0: i32) -> (i32, i32) {
    %c0_i32 = arith.constant 0 : i32
    %c0_i32_0 = arith.constant 0 : i32
    %c0_i32_1 = arith.constant 0 : i32
    return %c0_i32, %c0_i32_0 : i32, i32
  }
  func.func @transform_1(%arg0: i32) -> (i32, i32) {
    %c0_i32 = arith.constant 0 : i32
    %c0_i32_0 = arith.constant 0 : i32
    return %c0_i32, %arg0 : i32, i32
  }
  func.func @transform_2(%arg0: i32) -> (i32, i32) {
    %c0_i32 = arith.constant 0 : i32
    %c0_i32_0 = arith.constant 0 : i32
    %c0_i32_1 = arith.constant 0 : i32
    return %c0_i32, %c0_i32_0 : i32, i32
  }
  func.func @transform_3(%arg0: i32) -> (i32, i32) {
    %c0_i32 = arith.constant 0 : i32
    %c0_i32_0 = arith.constant 0 : i32
    return %c0_i32, %arg0 : i32, i32
  }
  func.func @transform_4(%arg0: i32) -> (i32, i32) {
    %c0_i32 = arith.constant 0 : i32
    %c0_i32_0 = arith.constant 0 : i32
    return %c0_i32, %arg0 : i32, i32
  }
}

module attributes {stable_mosaic.version = 11 : i64} {
  func.func @_conv_mm_kernel(%arg0: i32, %arg1: memref<8x4xbf16, #tpu.memory_space<vmem>>, %arg2: memref<4x512xbf16, #tpu.memory_space<vmem>>, %arg3: memref<8x1xf32, #tpu.memory_space<vmem>>, %arg4: memref<8x512xf32, #tpu.memory_space<vmem>>) attributes {dimension_semantics = [#tpu.dimension_semantics<parallel>], iteration_bounds = array<i64: 1>, scalar_prefetch = 0 : i64, scratch_operands = 0 : i64, tpu.core_type = #tpu.core_type<tc>, window_params = [{pipeline_mode = #tpu.pipeline_mode<synchronous>, transform_indices = @transform_0, window_bounds = array<i64: 8, 4>}, {transform_indices = @transform_1, window_bounds = array<i64: 4, 512>}, {pipeline_mode = #tpu.pipeline_mode<synchronous>, transform_indices = @transform_2, window_bounds = array<i64: 8, 1>}, {transform_indices = @transform_3, window_bounds = array<i64: 8, 512>}]} {
    %c0 = arith.constant 0 : index
    %c0_0 = arith.constant 0 : index
    %0 = vector.load %arg1[%c0, %c0_0] : memref<8x4xbf16, #tpu.memory_space<vmem>>, vector<8x4xbf16>
    %c0_1 = arith.constant 0 : index
    %c0_2 = arith.constant 0 : index
    %1 = vector.load %arg2[%c0_1, %c0_2] : memref<4x512xbf16, #tpu.memory_space<vmem>>, vector<4x512xbf16>
    %cst = arith.constant dense<0.000000e+00> : vector<8x512xf32>
    %2 = tpu.matmul %0, %1, %cst {dimension_numbers = #tpu.dot_dimension_numbers<[1], [0], [0], [1], [0, 0, 1, 1], [], []>} : vector<8x4xbf16>, vector<4x512xbf16>, vector<8x512xf32> -> vector<8x512xf32>
    %c0_3 = arith.constant 0 : index
    %c0_4 = arith.constant 0 : index
    %3 = vector.load %arg3[%c0_3, %c0_4] : memref<8x1xf32, #tpu.memory_space<vmem>>, vector<8x1xf32>
    %4 = vector.broadcast %3 : vector<8x1xf32> to vector<8x512xf32>
    %5 = arith.addf %2, %4 : vector<8x512xf32>
    %c0_5 = arith.constant 0 : index
    %c0_6 = arith.constant 0 : index
    %6 = vector.load %arg4[%c0_5, %c0_6] : memref<8x512xf32, #tpu.memory_space<vmem>>, vector<8x512xf32>
    tpu.vector_store %arg4[%c0_5, %c0_6], %5 {strides = array<i32>} : memref<8x512xf32, #tpu.memory_space<vmem>>, vector<8x512xf32>,
    return
  }
  func.func @transform_0(%arg0: i32) -> (i32, i32) {
    %c0_i32 = arith.constant 0 : i32
    %c0_i32_0 = arith.constant 0 : i32
    %c0_i32_1 = arith.constant 0 : i32
    return %c0_i32, %c0_i32_0 : i32, i32
  }
  func.func @transform_1(%arg0: i32) -> (i32, i32) {
    %c0_i32 = arith.constant 0 : i32
    %c0_i32_0 = arith.constant 0 : i32
    return %c0_i32, %arg0 : i32, i32
  }
  func.func @transform_2(%arg0: i32) -> (i32, i32) {
    %c0_i32 = arith.constant 0 : i32
    %c0_i32_0 = arith.constant 0 : i32
    %c0_i32_1 = arith.constant 0 : i32
    return %c0_i32, %c0_i32_0 : i32, i32
  }
  func.func @transform_3(%arg0: i32) -> (i32, i32) {
    %c0_i32 = arith.constant 0 : i32
    %c0_i32_0 = arith.constant 0 : i32
    return %c0_i32, %arg0 : i32, i32
  }
}

module attributes {stable_mosaic.version = 11 : i64} {
  func.func @_conv_mm_kernel(%arg0: i32, %arg1: memref<8x36xbf16, #tpu.memory_space<vmem>>, %arg2: memref<36x512xbf16, #tpu.memory_space<vmem>>, %arg3: memref<8x1xf32, #tpu.memory_space<vmem>>, %arg4: memref<8x512xf32, #tpu.memory_space<vmem>>) attributes {dimension_semantics = [#tpu.dimension_semantics<parallel>], iteration_bounds = array<i64: 1>, scalar_prefetch = 0 : i64, scratch_operands = 0 : i64, tpu.core_type = #tpu.core_type<tc>, window_params = [{pipeline_mode = #tpu.pipeline_mode<synchronous>, transform_indices = @transform_0, window_bounds = array<i64: 8, 36>}, {transform_indices = @transform_1, window_bounds = array<i64: 36, 512>}, {pipeline_mode = #tpu.pipeline_mode<synchronous>, transform_indices = @transform_2, window_bounds = array<i64: 8, 1>}, {transform_indices = @transform_3, window_bounds = array<i64: 8, 512>}]} {
    %c0 = arith.constant 0 : index
    %c0_0 = arith.constant 0 : index
    %0 = vector.load %arg1[%c0, %c0_0] : memref<8x36xbf16, #tpu.memory_space<vmem>>, vector<8x36xbf16>
    %c0_1 = arith.constant 0 : index
    %c0_2 = arith.constant 0 : index
    %1 = vector.load %arg2[%c0_1, %c0_2] : memref<36x512xbf16, #tpu.memory_space<vmem>>, vector<36x512xbf16>
    %cst = arith.constant dense<0.000000e+00> : vector<8x512xf32>
    %2 = tpu.matmul %0, %1, %cst {dimension_numbers = #tpu.dot_dimension_numbers<[1], [0], [0], [1], [0, 0, 1, 1], [], []>} : vector<8x36xbf16>, vector<36x512xbf16>, vector<8x512xf32> -> vector<8x512xf32>
    %c0_3 = arith.constant 0 : index
    %c0_4 = arith.constant 0 : index
    %3 = vector.load %arg3[%c0_3, %c0_4] : memref<8x1xf32, #tpu.memory_space<vmem>>, vector<8x1xf32>
    %4 = vector.broadcast %3 : vector<8x1xf32> to vector<8x512xf32>
    %5 = arith.addf %2, %4 : vector<8x512xf32>
    %cst_5 = arith.constant 0.000000e+00 : f32
    %6 = vector.broadcast %cst_5 : f32 to vector<8x512xf32>
    %7 = arith.maximumf %5, %6 : vector<8x512xf32>
    %c0_6 = arith.constant 0 : index
    %c0_7 = arith.constant 0 : index
    %8 = vector.load %arg4[%c0_6, %c0_7] : memref<8x512xf32, #tpu.memory_space<vmem>>, vector<8x512xf32>
    tpu.vector_store %arg4[%c0_6, %c0_7], %7 {strides = array<i32>} : memref<8x512xf32, #tpu.memory_space<vmem>>, vector<8x512xf32>,
    return
  }
  func.func @transform_0(%arg0: i32) -> (i32, i32) {
    %c0_i32 = arith.constant 0 : i32
    %c0_i32_0 = arith.constant 0 : i32
    %c0_i32_1 = arith.constant 0 : i32
    return %c0_i32, %c0_i32_0 : i32, i32
  }
  func.func @transform_1(%arg0: i32) -> (i32, i32) {
    %c0_i32 = arith.constant 0 : i32
    %c0_i32_0 = arith.constant 0 : i32
    return %c0_i32, %arg0 : i32, i32
  }
  func.func @transform_2(%arg0: i32) -> (i32, i32) {
    %c0_i32 = arith.constant 0 : i32
    %c0_i32_0 = arith.constant 0 : i32
    %c0_i32_1 = arith.constant 0 : i32
    return %c0_i32, %c0_i32_0 : i32, i32
  }
  func.func @transform_3(%arg0: i32) -> (i32, i32) {
    %c0_i32 = arith.constant 0 : i32
    %c0_i32_0 = arith.constant 0 : i32
    return %c0_i32, %arg0 : i32, i32
  }
}

module attributes {stable_mosaic.version = 11 : i64} {
  func.func @_conv_mm_kernel(%arg0: i32, %arg1: memref<8x72xbf16, #tpu.memory_space<vmem>>, %arg2: memref<72x512xbf16, #tpu.memory_space<vmem>>, %arg3: memref<8x1xf32, #tpu.memory_space<vmem>>, %arg4: memref<8x512xf32, #tpu.memory_space<vmem>>, %arg5: memref<8x512xf32, #tpu.memory_space<vmem>>) attributes {dimension_semantics = [#tpu.dimension_semantics<parallel>], iteration_bounds = array<i64: 1>, scalar_prefetch = 0 : i64, scratch_operands = 0 : i64, tpu.core_type = #tpu.core_type<tc>, window_params = [{pipeline_mode = #tpu.pipeline_mode<synchronous>, transform_indices = @transform_0, window_bounds = array<i64: 8, 72>}, {transform_indices = @transform_1, window_bounds = array<i64: 72, 512>}, {pipeline_mode = #tpu.pipeline_mode<synchronous>, transform_indices = @transform_2, window_bounds = array<i64: 8, 1>}, {transform_indices = @transform_3, window_bounds = array<i64: 8, 512>}, {transform_indices = @transform_4, window_bounds = array<i64: 8, 512>}]} {
    %c0 = arith.constant 0 : index
    %c0_0 = arith.constant 0 : index
    %0 = vector.load %arg1[%c0, %c0_0] : memref<8x72xbf16, #tpu.memory_space<vmem>>, vector<8x72xbf16>
    %c0_1 = arith.constant 0 : index
    %c0_2 = arith.constant 0 : index
    %1 = vector.load %arg2[%c0_1, %c0_2] : memref<72x512xbf16, #tpu.memory_space<vmem>>, vector<72x512xbf16>
    %cst = arith.constant dense<0.000000e+00> : vector<8x512xf32>
    %2 = tpu.matmul %0, %1, %cst {dimension_numbers = #tpu.dot_dimension_numbers<[1], [0], [0], [1], [0, 0, 1, 1], [], []>} : vector<8x72xbf16>, vector<72x512xbf16>, vector<8x512xf32> -> vector<8x512xf32>
    %c0_3 = arith.constant 0 : index
    %c0_4 = arith.constant 0 : index
    %3 = vector.load %arg3[%c0_3, %c0_4] : memref<8x1xf32, #tpu.memory_space<vmem>>, vector<8x1xf32>
    %4 = vector.broadcast %3 : vector<8x1xf32> to vector<8x512xf32>
    %5 = arith.addf %2, %4 : vector<8x512xf32>
    %c0_5 = arith.constant 0 : index
    %c0_6 = arith.constant 0 : index
    %6 = vector.load %arg4[%c0_5, %c0_6] : memref<8x512xf32, #tpu.memory_space<vmem>>, vector<8x512xf32>
    %7 = arith.addf %5, %6 : vector<8x512xf32>
    %cst_7 = arith.constant 0.000000e+00 : f32
    %8 = vector.broadcast %cst_7 : f32 to vector<8x512xf32>
    %9 = arith.maximumf %7, %8 : vector<8x512xf32>
    %c0_8 = arith.constant 0 : index
    %c0_9 = arith.constant 0 : index
    %10 = vector.load %arg5[%c0_8, %c0_9] : memref<8x512xf32, #tpu.memory_space<vmem>>, vector<8x512xf32>
    tpu.vector_store %arg5[%c0_8, %c0_9], %9 {strides = array<i32>} : memref<8x512xf32, #tpu.memory_space<vmem>>, vector<8x512xf32>,
    return
  }
  func.func @transform_0(%arg0: i32) -> (i32, i32) {
    %c0_i32 = arith.constant 0 : i32
    %c0_i32_0 = arith.constant 0 : i32
    %c0_i32_1 = arith.constant 0 : i32
    return %c0_i32, %c0_i32_0 : i32, i32
  }
  func.func @transform_1(%arg0: i32) -> (i32, i32) {
    %c0_i32 = arith.constant 0 : i32
    %c0_i32_0 = arith.constant 0 : i32
    return %c0_i32, %arg0 : i32, i32
  }
  func.func @transform_2(%arg0: i32) -> (i32, i32) {
    %c0_i32 = arith.constant 0 : i32
    %c0_i32_0 = arith.constant 0 : i32
    %c0_i32_1 = arith.constant 0 : i32
    return %c0_i32, %c0_i32_0 : i32, i32
  }
  func.func @transform_3(%arg0: i32) -> (i32, i32) {
    %c0_i32 = arith.constant 0 : i32
    %c0_i32_0 = arith.constant 0 : i32
    return %c0_i32, %arg0 : i32, i32
  }
  func.func @transform_4(%arg0: i32) -> (i32, i32) {
    %c0_i32 = arith.constant 0 : i32
    %c0_i32_0 = arith.constant 0 : i32
    return %c0_i32, %arg0 : i32, i32
  }
}

module attributes {stable_mosaic.version = 11 : i64} {
  func.func @_conv_mm_kernel(%arg0: i32, %arg1: memref<16x8xbf16, #tpu.memory_space<vmem>>, %arg2: memref<8x128xbf16, #tpu.memory_space<vmem>>, %arg3: memref<16x1xf32, #tpu.memory_space<vmem>>, %arg4: memref<16x128xf32, #tpu.memory_space<vmem>>) attributes {dimension_semantics = [#tpu.dimension_semantics<parallel>], iteration_bounds = array<i64: 1>, scalar_prefetch = 0 : i64, scratch_operands = 0 : i64, tpu.core_type = #tpu.core_type<tc>, window_params = [{pipeline_mode = #tpu.pipeline_mode<synchronous>, transform_indices = @transform_0, window_bounds = array<i64: 16, 8>}, {transform_indices = @transform_1, window_bounds = array<i64: 8, 128>}, {pipeline_mode = #tpu.pipeline_mode<synchronous>, transform_indices = @transform_2, window_bounds = array<i64: 16, 1>}, {transform_indices = @transform_3, window_bounds = array<i64: 16, 128>}]} {
    %c0 = arith.constant 0 : index
    %c0_0 = arith.constant 0 : index
    %0 = vector.load %arg1[%c0, %c0_0] : memref<16x8xbf16, #tpu.memory_space<vmem>>, vector<16x8xbf16>
    %c0_1 = arith.constant 0 : index
    %c0_2 = arith.constant 0 : index
    %1 = vector.load %arg2[%c0_1, %c0_2] : memref<8x128xbf16, #tpu.memory_space<vmem>>, vector<8x128xbf16>
    %cst = arith.constant dense<0.000000e+00> : vector<16x128xf32>
    %2 = tpu.matmul %0, %1, %cst {dimension_numbers = #tpu.dot_dimension_numbers<[1], [0], [0], [1], [0, 0, 1, 1], [], []>} : vector<16x8xbf16>, vector<8x128xbf16>, vector<16x128xf32> -> vector<16x128xf32>
    %c0_3 = arith.constant 0 : index
    %c0_4 = arith.constant 0 : index
    %3 = vector.load %arg3[%c0_3, %c0_4] : memref<16x1xf32, #tpu.memory_space<vmem>>, vector<16x1xf32>
    %4 = vector.broadcast %3 : vector<16x1xf32> to vector<16x128xf32>
    %5 = arith.addf %2, %4 : vector<16x128xf32>
    %c0_5 = arith.constant 0 : index
    %c0_6 = arith.constant 0 : index
    %6 = vector.load %arg4[%c0_5, %c0_6] : memref<16x128xf32, #tpu.memory_space<vmem>>, vector<16x128xf32>
    tpu.vector_store %arg4[%c0_5, %c0_6], %5 {strides = array<i32>} : memref<16x128xf32, #tpu.memory_space<vmem>>, vector<16x128xf32>,
    return
  }
  func.func @transform_0(%arg0: i32) -> (i32, i32) {
    %c0_i32 = arith.constant 0 : i32
    %c0_i32_0 = arith.constant 0 : i32
    %c0_i32_1 = arith.constant 0 : i32
    return %c0_i32, %c0_i32_0 : i32, i32
  }
  func.func @transform_1(%arg0: i32) -> (i32, i32) {
    %c0_i32 = arith.constant 0 : i32
    %c0_i32_0 = arith.constant 0 : i32
    return %c0_i32, %arg0 : i32, i32
  }
  func.func @transform_2(%arg0: i32) -> (i32, i32) {
    %c0_i32 = arith.constant 0 : i32
    %c0_i32_0 = arith.constant 0 : i32
    %c0_i32_1 = arith.constant 0 : i32
    return %c0_i32, %c0_i32_0 : i32, i32
  }
  func.func @transform_3(%arg0: i32) -> (i32, i32) {
    %c0_i32 = arith.constant 0 : i32
    %c0_i32_0 = arith.constant 0 : i32
    return %c0_i32, %arg0 : i32, i32
  }
}

module attributes {stable_mosaic.version = 11 : i64} {
  func.func @_conv_mm_kernel(%arg0: i32, %arg1: memref<16x72xbf16, #tpu.memory_space<vmem>>, %arg2: memref<72x128xbf16, #tpu.memory_space<vmem>>, %arg3: memref<16x1xf32, #tpu.memory_space<vmem>>, %arg4: memref<16x128xf32, #tpu.memory_space<vmem>>) attributes {dimension_semantics = [#tpu.dimension_semantics<parallel>], iteration_bounds = array<i64: 1>, scalar_prefetch = 0 : i64, scratch_operands = 0 : i64, tpu.core_type = #tpu.core_type<tc>, window_params = [{pipeline_mode = #tpu.pipeline_mode<synchronous>, transform_indices = @transform_0, window_bounds = array<i64: 16, 72>}, {transform_indices = @transform_1, window_bounds = array<i64: 72, 128>}, {pipeline_mode = #tpu.pipeline_mode<synchronous>, transform_indices = @transform_2, window_bounds = array<i64: 16, 1>}, {transform_indices = @transform_3, window_bounds = array<i64: 16, 128>}]} {
    %c0 = arith.constant 0 : index
    %c0_0 = arith.constant 0 : index
    %0 = vector.load %arg1[%c0, %c0_0] : memref<16x72xbf16, #tpu.memory_space<vmem>>, vector<16x72xbf16>
    %c0_1 = arith.constant 0 : index
    %c0_2 = arith.constant 0 : index
    %1 = vector.load %arg2[%c0_1, %c0_2] : memref<72x128xbf16, #tpu.memory_space<vmem>>, vector<72x128xbf16>
    %cst = arith.constant dense<0.000000e+00> : vector<16x128xf32>
    %2 = tpu.matmul %0, %1, %cst {dimension_numbers = #tpu.dot_dimension_numbers<[1], [0], [0], [1], [0, 0, 1, 1], [], []>} : vector<16x72xbf16>, vector<72x128xbf16>, vector<16x128xf32> -> vector<16x128xf32>
    %c0_3 = arith.constant 0 : index
    %c0_4 = arith.constant 0 : index
    %3 = vector.load %arg3[%c0_3, %c0_4] : memref<16x1xf32, #tpu.memory_space<vmem>>, vector<16x1xf32>
    %4 = vector.broadcast %3 : vector<16x1xf32> to vector<16x128xf32>
    %5 = arith.addf %2, %4 : vector<16x128xf32>
    %cst_5 = arith.constant 0.000000e+00 : f32
    %6 = vector.broadcast %cst_5 : f32 to vector<16x128xf32>
    %7 = arith.maximumf %5, %6 : vector<16x128xf32>
    %c0_6 = arith.constant 0 : index
    %c0_7 = arith.constant 0 : index
    %8 = vector.load %arg4[%c0_6, %c0_7] : memref<16x128xf32, #tpu.memory_space<vmem>>, vector<16x128xf32>
    tpu.vector_store %arg4[%c0_6, %c0_7], %7 {strides = array<i32>} : memref<16x128xf32, #tpu.memory_space<vmem>>, vector<16x128xf32>,
    return
  }
  func.func @transform_0(%arg0: i32) -> (i32, i32) {
    %c0_i32 = arith.constant 0 : i32
    %c0_i32_0 = arith.constant 0 : i32
    %c0_i32_1 = arith.constant 0 : i32
    return %c0_i32, %c0_i32_0 : i32, i32
  }
  func.func @transform_1(%arg0: i32) -> (i32, i32) {
    %c0_i32 = arith.constant 0 : i32
    %c0_i32_0 = arith.constant 0 : i32
    return %c0_i32, %arg0 : i32, i32
  }
  func.func @transform_2(%arg0: i32) -> (i32, i32) {
    %c0_i32 = arith.constant 0 : i32
    %c0_i32_0 = arith.constant 0 : i32
    %c0_i32_1 = arith.constant 0 : i32
    return %c0_i32, %c0_i32_0 : i32, i32
  }
  func.func @transform_3(%arg0: i32) -> (i32, i32) {
    %c0_i32 = arith.constant 0 : i32
    %c0_i32_0 = arith.constant 0 : i32
    return %c0_i32, %arg0 : i32, i32
  }
}

module attributes {stable_mosaic.version = 11 : i64} {
  func.func @_conv_mm_kernel(%arg0: i32, %arg1: memref<16x144xbf16, #tpu.memory_space<vmem>>, %arg2: memref<144x128xbf16, #tpu.memory_space<vmem>>, %arg3: memref<16x1xf32, #tpu.memory_space<vmem>>, %arg4: memref<16x128xf32, #tpu.memory_space<vmem>>, %arg5: memref<16x128xf32, #tpu.memory_space<vmem>>) attributes {dimension_semantics = [#tpu.dimension_semantics<parallel>], iteration_bounds = array<i64: 1>, scalar_prefetch = 0 : i64, scratch_operands = 0 : i64, tpu.core_type = #tpu.core_type<tc>, window_params = [{pipeline_mode = #tpu.pipeline_mode<synchronous>, transform_indices = @transform_0, window_bounds = array<i64: 16, 144>}, {transform_indices = @transform_1, window_bounds = array<i64: 144, 128>}, {pipeline_mode = #tpu.pipeline_mode<synchronous>, transform_indices = @transform_2, window_bounds = array<i64: 16, 1>}, {transform_indices = @transform_3, window_bounds = array<i64: 16, 128>}, {transform_indices = @transform_4, window_bounds = array<i64: 16, 128>}]} {
    %c0 = arith.constant 0 : index
    %c0_0 = arith.constant 0 : index
    %0 = vector.load %arg1[%c0, %c0_0] : memref<16x144xbf16, #tpu.memory_space<vmem>>, vector<16x144xbf16>
    %c0_1 = arith.constant 0 : index
    %c0_2 = arith.constant 0 : index
    %1 = vector.load %arg2[%c0_1, %c0_2] : memref<144x128xbf16, #tpu.memory_space<vmem>>, vector<144x128xbf16>
    %cst = arith.constant dense<0.000000e+00> : vector<16x128xf32>
    %2 = tpu.matmul %0, %1, %cst {dimension_numbers = #tpu.dot_dimension_numbers<[1], [0], [0], [1], [0, 0, 1, 1], [], []>} : vector<16x144xbf16>, vector<144x128xbf16>, vector<16x128xf32> -> vector<16x128xf32>
    %c0_3 = arith.constant 0 : index
    %c0_4 = arith.constant 0 : index
    %3 = vector.load %arg3[%c0_3, %c0_4] : memref<16x1xf32, #tpu.memory_space<vmem>>, vector<16x1xf32>
    %4 = vector.broadcast %3 : vector<16x1xf32> to vector<16x128xf32>
    %5 = arith.addf %2, %4 : vector<16x128xf32>
    %c0_5 = arith.constant 0 : index
    %c0_6 = arith.constant 0 : index
    %6 = vector.load %arg4[%c0_5, %c0_6] : memref<16x128xf32, #tpu.memory_space<vmem>>, vector<16x128xf32>
    %7 = arith.addf %5, %6 : vector<16x128xf32>
    %cst_7 = arith.constant 0.000000e+00 : f32
    %8 = vector.broadcast %cst_7 : f32 to vector<16x128xf32>
    %9 = arith.maximumf %7, %8 : vector<16x128xf32>
    %c0_8 = arith.constant 0 : index
    %c0_9 = arith.constant 0 : index
    %10 = vector.load %arg5[%c0_8, %c0_9] : memref<16x128xf32, #tpu.memory_space<vmem>>, vector<16x128xf32>
    tpu.vector_store %arg5[%c0_8, %c0_9], %9 {strides = array<i32>} : memref<16x128xf32, #tpu.memory_space<vmem>>, vector<16x128xf32>,
    return
  }
  func.func @transform_0(%arg0: i32) -> (i32, i32) {
    %c0_i32 = arith.constant 0 : i32
    %c0_i32_0 = arith.constant 0 : i32
    %c0_i32_1 = arith.constant 0 : i32
    return %c0_i32, %c0_i32_0 : i32, i32
  }
  func.func @transform_1(%arg0: i32) -> (i32, i32) {
    %c0_i32 = arith.constant 0 : i32
    %c0_i32_0 = arith.constant 0 : i32
    return %c0_i32, %arg0 : i32, i32
  }
  func.func @transform_2(%arg0: i32) -> (i32, i32) {
    %c0_i32 = arith.constant 0 : i32
    %c0_i32_0 = arith.constant 0 : i32
    %c0_i32_1 = arith.constant 0 : i32
    return %c0_i32, %c0_i32_0 : i32, i32
  }
  func.func @transform_3(%arg0: i32) -> (i32, i32) {
    %c0_i32 = arith.constant 0 : i32
    %c0_i32_0 = arith.constant 0 : i32
    return %c0_i32, %arg0 : i32, i32
  }
  func.func @transform_4(%arg0: i32) -> (i32, i32) {
    %c0_i32 = arith.constant 0 : i32
    %c0_i32_0 = arith.constant 0 : i32
    return %c0_i32, %arg0 : i32, i32
  }
}

module attributes {stable_mosaic.version = 11 : i64} {
  func.func @_ln_qkv_kernel(%arg0: i32, %arg1: memref<8x256xf32, #tpu.memory_space<vmem>>, %arg2: memref<1x256xf32, #tpu.memory_space<vmem>>, %arg3: memref<1x256xf32, #tpu.memory_space<vmem>>, %arg4: memref<256x768xbf16, #tpu.memory_space<vmem>>, %arg5: memref<1x768xf32, #tpu.memory_space<vmem>>, %arg6: memref<8x768xf32, #tpu.memory_space<vmem>>) attributes {dimension_semantics = [#tpu.dimension_semantics<parallel>], iteration_bounds = array<i64: 1>, scalar_prefetch = 0 : i64, scratch_operands = 0 : i64, tpu.core_type = #tpu.core_type<tc>, window_params = [{transform_indices = @transform_0, window_bounds = array<i64: 8, 256>}, {pipeline_mode = #tpu.pipeline_mode<synchronous>, transform_indices = @transform_1, window_bounds = array<i64: 1, 256>}, {pipeline_mode = #tpu.pipeline_mode<synchronous>, transform_indices = @transform_2, window_bounds = array<i64: 1, 256>}, {pipeline_mode = #tpu.pipeline_mode<synchronous>, transform_indices = @transform_3, window_bounds = array<i64: 256, 768>}, {pipeline_mode = #tpu.pipeline_mode<synchronous>, transform_indices = @transform_4, window_bounds = array<i64: 1, 768>}, {transform_indices = @transform_5, window_bounds = array<i64: 8, 768>}]} {
    %c0 = arith.constant 0 : index
    %c0_0 = arith.constant 0 : index
    %0 = vector.load %arg1[%c0, %c0_0] : memref<8x256xf32, #tpu.memory_space<vmem>>, vector<8x256xf32>
    %cst = arith.constant dense<0.000000e+00> : vector<8xf32>
    %1 = vector.multi_reduction <add>, %0, %cst [1] : vector<8x256xf32> to vector<8xf32>
    %2 = vector.shape_cast %1 : vector<8xf32> to vector<8x1xf32>
    %cst_1 = arith.constant 2.560000e+02 : f32
    %3 = vector.broadcast %cst_1 : f32 to vector<8x1xf32>
    %4 = arith.divf %2, %3 : vector<8x1xf32>
    %5 = vector.broadcast %4 : vector<8x1xf32> to vector<8x256xf32>
    %6 = arith.subf %0, %5 : vector<8x256xf32>
    %7 = arith.mulf %6, %6 : vector<8x256xf32>
    %cst_2 = arith.constant dense<0.000000e+00> : vector<8xf32>
    %8 = vector.multi_reduction <add>, %7, %cst_2 [1] : vector<8x256xf32> to vector<8xf32>
    %9 = vector.shape_cast %8 : vector<8xf32> to vector<8x1xf32>
    %cst_3 = arith.constant 2.560000e+02 : f32
    %10 = vector.broadcast %cst_3 : f32 to vector<8x1xf32>
    %11 = arith.divf %9, %10 : vector<8x1xf32>
    %12 = vector.broadcast %4 : vector<8x1xf32> to vector<8x256xf32>
    %13 = arith.subf %0, %12 : vector<8x256xf32>
    %cst_4 = arith.constant 9.99999974E-6 : f32
    %14 = vector.broadcast %cst_4 : f32 to vector<8x1xf32>
    %15 = arith.addf %11, %14 : vector<8x1xf32>
    %16 = math.rsqrt %15 : vector<8x1xf32>
    %17 = vector.broadcast %16 : vector<8x1xf32> to vector<8x256xf32>
    %18 = arith.mulf %13, %17 : vector<8x256xf32>
    %c0_5 = arith.constant 0 : index
    %c0_6 = arith.constant 0 : index
    %19 = vector.load %arg2[%c0_5, %c0_6] : memref<1x256xf32, #tpu.memory_space<vmem>>, vector<1x256xf32>
    %20 = vector.broadcast %19 : vector<1x256xf32> to vector<8x256xf32>
    %21 = arith.mulf %18, %20 : vector<8x256xf32>
    %c0_7 = arith.constant 0 : index
    %c0_8 = arith.constant 0 : index
    %22 = vector.load %arg3[%c0_7, %c0_8] : memref<1x256xf32, #tpu.memory_space<vmem>>, vector<1x256xf32>
    %23 = vector.broadcast %22 : vector<1x256xf32> to vector<8x256xf32>
    %24 = arith.addf %21, %23 : vector<8x256xf32>
    %25 = arith.truncf %24 : vector<8x256xf32> to vector<8x256xbf16>
    %c0_9 = arith.constant 0 : index
    %c0_10 = arith.constant 0 : index
    %26 = vector.load %arg4[%c0_9, %c0_10] : memref<256x768xbf16, #tpu.memory_space<vmem>>, vector<256x768xbf16>
    %cst_11 = arith.constant dense<0.000000e+00> : vector<8x768xf32>
    %27 = tpu.matmul %25, %26, %cst_11 {dimension_numbers = #tpu.dot_dimension_numbers<[1], [0], [0], [1], [0, 0, 1, 1], [], []>} : vector<8x256xbf16>, vector<256x768xbf16>, vector<8x768xf32> -> vector<8x768xf32>
    %c0_12 = arith.constant 0 : index
    %c0_13 = arith.constant 0 : index
    %28 = vector.load %arg5[%c0_12, %c0_13] : memref<1x768xf32, #tpu.memory_space<vmem>>, vector<1x768xf32>
    %29 = vector.broadcast %28 : vector<1x768xf32> to vector<8x768xf32>
    %30 = arith.addf %27, %29 : vector<8x768xf32>
    %c0_14 = arith.constant 0 : index
    %c0_15 = arith.constant 0 : index
    %31 = vector.load %arg6[%c0_14, %c0_15] : memref<8x768xf32, #tpu.memory_space<vmem>>, vector<8x768xf32>
    tpu.vector_store %arg6[%c0_14, %c0_15], %30 {strides = array<i32>} : memref<8x768xf32, #tpu.memory_space<vmem>>, vector<8x768xf32>,
    return
  }
  func.func @transform_0(%arg0: i32) -> (i32, i32) {
    %c0_i32 = arith.constant 0 : i32
    %c0_i32_0 = arith.constant 0 : i32
    return %arg0, %c0_i32 : i32, i32
  }
  func.func @transform_1(%arg0: i32) -> (i32, i32) {
    %c0_i32 = arith.constant 0 : i32
    %c0_i32_0 = arith.constant 0 : i32
    %c0_i32_1 = arith.constant 0 : i32
    return %c0_i32, %c0_i32_0 : i32, i32
  }
  func.func @transform_2(%arg0: i32) -> (i32, i32) {
    %c0_i32 = arith.constant 0 : i32
    %c0_i32_0 = arith.constant 0 : i32
    %c0_i32_1 = arith.constant 0 : i32
    return %c0_i32, %c0_i32_0 : i32, i32
  }
  func.func @transform_3(%arg0: i32) -> (i32, i32) {
    %c0_i32 = arith.constant 0 : i32
    %c0_i32_0 = arith.constant 0 : i32
    %c0_i32_1 = arith.constant 0 : i32
    return %c0_i32, %c0_i32_0 : i32, i32
  }
  func.func @transform_4(%arg0: i32) -> (i32, i32) {
    %c0_i32 = arith.constant 0 : i32
    %c0_i32_0 = arith.constant 0 : i32
    %c0_i32_1 = arith.constant 0 : i32
    return %c0_i32, %c0_i32_0 : i32, i32
  }
  func.func @transform_5(%arg0: i32) -> (i32, i32) {
    %c0_i32 = arith.constant 0 : i32
    %c0_i32_0 = arith.constant 0 : i32
    return %arg0, %c0_i32 : i32, i32
  }
}

module attributes {stable_mosaic.version = 11 : i64} {
  func.func @_attn_kernel(%arg0: i32, %arg1: memref<8x4x64xf32, #tpu.memory_space<vmem>>, %arg2: memref<8x4x64xf32, #tpu.memory_space<vmem>>, %arg3: memref<8x4x64xf32, #tpu.memory_space<vmem>>, %arg4: memref<8x4x64xf32, #tpu.memory_space<vmem>>) attributes {dimension_semantics = [#tpu.dimension_semantics<arbitrary>], iteration_bounds = array<i64: 1>, scalar_prefetch = 0 : i64, scratch_operands = 0 : i64, tpu.core_type = #tpu.core_type<tc>, window_params = [{pipeline_mode = #tpu.pipeline_mode<synchronous>, transform_indices = @transform_0, window_bounds = array<i64: 8, 4, 64>}, {pipeline_mode = #tpu.pipeline_mode<synchronous>, transform_indices = @transform_1, window_bounds = array<i64: 8, 4, 64>}, {pipeline_mode = #tpu.pipeline_mode<synchronous>, transform_indices = @transform_2, window_bounds = array<i64: 8, 4, 64>}, {pipeline_mode = #tpu.pipeline_mode<synchronous>, transform_indices = @transform_3, window_bounds = array<i64: 8, 4, 64>}]} {
    %c0 = arith.constant 0 : index
    %c0_0 = arith.constant 0 : index
    %c0_1 = arith.constant 0 : index
    %0 = vector.load %arg1[%c0, %c0_0, %c0_1] : memref<8x4x64xf32, #tpu.memory_space<vmem>>, vector<8x4x64xf32>
    %1 = arith.truncf %0 : vector<8x4x64xf32> to vector<8x4x64xbf16>
    %c0_2 = arith.constant 0 : index
    %c0_3 = arith.constant 0 : index
    %c0_4 = arith.constant 0 : index
    %2 = vector.load %arg2[%c0_2, %c0_3, %c0_4] : memref<8x4x64xf32, #tpu.memory_space<vmem>>, vector<8x4x64xf32>
    %3 = arith.truncf %2 : vector<8x4x64xf32> to vector<8x4x64xbf16>
    %c0_5 = arith.constant 0 : index
    %c0_6 = arith.constant 0 : index
    %c0_7 = arith.constant 0 : index
    %4 = vector.load %arg3[%c0_5, %c0_6, %c0_7] : memref<8x4x64xf32, #tpu.memory_space<vmem>>, vector<8x4x64xf32>
    %5 = arith.truncf %4 : vector<8x4x64xf32> to vector<8x4x64xbf16>
    "tpu.trace_start"() <{level = 10 : i32, message = "bqd,bkd->bqk"}> : () -> ()
    %cst = arith.constant dense<0.000000e+00> : vector<8x4x4xf32>
    %6 = tpu.matmul %1, %3, %cst {dimension_numbers = #tpu.dot_dimension_numbers<[2], [2], [1], [1], [0, 0, 0, 1, 1, 1], [0], [0]>} : vector<8x4x64xbf16>, vector<8x4x64xbf16>, vector<8x4x4xf32> -> vector<8x4x4xf32>
    "tpu.trace_stop"() : () -> ()
    %cst_8 = arith.constant 1.250000e-01 : f32
    %7 = vector.broadcast %cst_8 : f32 to vector<8x4x4xf32>
    %8 = arith.mulf %6, %7 : vector<8x4x4xf32>
    %cst_9 = arith.constant dense<0xFF800000> : vector<8x4xf32>
    %9 = vector.multi_reduction <maximumf>, %8, %cst_9 [2] : vector<8x4x4xf32> to vector<8x4xf32>
    %10 = vector.shape_cast %9 : vector<8x4xf32> to vector<8x4x1xf32>
    %11 = vector.broadcast %10 : vector<8x4x1xf32> to vector<8x4x4xf32>
    %12 = arith.subf %8, %11 : vector<8x4x4xf32>
    %13 = math.exp %12 : vector<8x4x4xf32>
    %cst_10 = arith.constant dense<0.000000e+00> : vector<8x4xf32>
    %14 = vector.multi_reduction <add>, %13, %cst_10 [2] : vector<8x4x4xf32> to vector<8x4xf32>
    %15 = vector.shape_cast %14 : vector<8x4xf32> to vector<8x4x1xf32>
    %16 = vector.broadcast %15 : vector<8x4x1xf32> to vector<8x4x4xf32>
    %17 = arith.divf %13, %16 : vector<8x4x4xf32>
    %18 = arith.truncf %17 : vector<8x4x4xf32> to vector<8x4x4xbf16>
    "tpu.trace_start"() <{level = 10 : i32, message = "bqk,bkd->bqd"}> : () -> ()
    %cst_11 = arith.constant dense<0.000000e+00> : vector<8x4x64xf32>
    %19 = tpu.matmul %18, %5, %cst_11 {dimension_numbers = #tpu.dot_dimension_numbers<[2], [1], [1], [2], [0, 0, 0, 1, 1, 2], [0], [0]>} : vector<8x4x4xbf16>, vector<8x4x64xbf16>, vector<8x4x64xf32> -> vector<8x4x64xf32>
    "tpu.trace_stop"() : () -> ()
    %c0_12 = arith.constant 0 : index
    %c0_13 = arith.constant 0 : index
    %c0_14 = arith.constant 0 : index
    %20 = vector.load %arg4[%c0_12, %c0_13, %c0_14] : memref<8x4x64xf32, #tpu.memory_space<vmem>>, vector<8x4x64xf32>
    tpu.vector_store %arg4[%c0_12, %c0_13, %c0_14], %19 {strides = array<i32>} : memref<8x4x64xf32, #tpu.memory_space<vmem>>, vector<8x4x64xf32>,
    return
  }
  func.func @transform_0(%arg0: i32) -> (i32, i32, i32) {
    %c0_i32 = arith.constant 0 : i32
    %c0_i32_0 = arith.constant 0 : i32
    %c0_i32_1 = arith.constant 0 : i32
    %c0_i32_2 = arith.constant 0 : i32
    return %c0_i32, %c0_i32_0, %c0_i32_1 : i32, i32, i32
  }
  func.func @transform_1(%arg0: i32) -> (i32, i32, i32) {
    %c0_i32 = arith.constant 0 : i32
    %c0_i32_0 = arith.constant 0 : i32
    %c0_i32_1 = arith.constant 0 : i32
    %c0_i32_2 = arith.constant 0 : i32
    return %c0_i32, %c0_i32_0, %c0_i32_1 : i32, i32, i32
  }
  func.func @transform_2(%arg0: i32) -> (i32, i32, i32) {
    %c0_i32 = arith.constant 0 : i32
    %c0_i32_0 = arith.constant 0 : i32
    %c0_i32_1 = arith.constant 0 : i32
    %c0_i32_2 = arith.constant 0 : i32
    return %c0_i32, %c0_i32_0, %c0_i32_1 : i32, i32, i32
  }
  func.func @transform_3(%arg0: i32) -> (i32, i32, i32) {
    %c0_i32 = arith.constant 0 : i32
    %c0_i32_0 = arith.constant 0 : i32
    %c0_i32_1 = arith.constant 0 : i32
    %c0_i32_2 = arith.constant 0 : i32
    return %c0_i32, %c0_i32_0, %c0_i32_1 : i32, i32, i32
  }
}

module attributes {stable_mosaic.version = 11 : i64} {
  func.func @_out_ffn_kernel(%arg0: i32, %arg1: memref<8x256xf32, #tpu.memory_space<vmem>>, %arg2: memref<8x256xf32, #tpu.memory_space<vmem>>, %arg3: memref<256x256xbf16, #tpu.memory_space<vmem>>, %arg4: memref<1x256xf32, #tpu.memory_space<vmem>>, %arg5: memref<1x256xf32, #tpu.memory_space<vmem>>, %arg6: memref<1x256xf32, #tpu.memory_space<vmem>>, %arg7: memref<256x64xbf16, #tpu.memory_space<vmem>>, %arg8: memref<1x64xf32, #tpu.memory_space<vmem>>, %arg9: memref<64x256xbf16, #tpu.memory_space<vmem>>, %arg10: memref<1x256xf32, #tpu.memory_space<vmem>>, %arg11: memref<8x256xf32, #tpu.memory_space<vmem>>) attributes {dimension_semantics = [#tpu.dimension_semantics<parallel>], iteration_bounds = array<i64: 1>, scalar_prefetch = 0 : i64, scratch_operands = 0 : i64, tpu.core_type = #tpu.core_type<tc>, window_params = [{transform_indices = @transform_0, window_bounds = array<i64: 8, 256>}, {transform_indices = @transform_1, window_bounds = array<i64: 8, 256>}, {pipeline_mode = #tpu.pipeline_mode<synchronous>, transform_indices = @transform_2, window_bounds = array<i64: 256, 256>}, {pipeline_mode = #tpu.pipeline_mode<synchronous>, transform_indices = @transform_3, window_bounds = array<i64: 1, 256>}, {pipeline_mode = #tpu.pipeline_mode<synchronous>, transform_indices = @transform_4, window_bounds = array<i64: 1, 256>}, {pipeline_mode = #tpu.pipeline_mode<synchronous>, transform_indices = @transform_5, window_bounds = array<i64: 1, 256>}, {pipeline_mode = #tpu.pipeline_mode<synchronous>, transform_indices = @transform_6, window_bounds = array<i64: 256, 64>}, {pipeline_mode = #tpu.pipeline_mode<synchronous>, transform_indices = @transform_7, window_bounds = array<i64: 1, 64>}, {pipeline_mode = #tpu.pipeline_mode<synchronous>, transform_indices = @transform_8, window_bounds = array<i64: 64, 256>}, {pipeline_mode = #tpu.pipeline_mode<synchronous>, transform_indices = @transform_9, window_bounds = array<i64: 1, 256>}, {transform_indices = @transform_10, window_bounds = array<i64: 8, 256>}]} {
    %c0 = arith.constant 0 : index
    %c0_0 = arith.constant 0 : index
    %0 = vector.load %arg2[%c0, %c0_0] : memref<8x256xf32, #tpu.memory_space<vmem>>, vector<8x256xf32>
    %c0_1 = arith.constant 0 : index
    %c0_2 = arith.constant 0 : index
    %1 = vector.load %arg4[%c0_1, %c0_2] : memref<1x256xf32, #tpu.memory_space<vmem>>, vector<1x256xf32>
    %2 = vector.broadcast %1 : vector<1x256xf32> to vector<8x256xf32>
    %3 = arith.addf %0, %2 : vector<8x256xf32>
    %c0_3 = arith.constant 0 : index
    %c0_4 = arith.constant 0 : index
    %4 = vector.load %arg1[%c0_3, %c0_4] : memref<8x256xf32, #tpu.memory_space<vmem>>, vector<8x256xf32>
    %5 = arith.truncf %4 : vector<8x256xf32> to vector<8x256xbf16>
    %c0_5 = arith.constant 0 : index
    %c0_6 = arith.constant 0 : index
    %6 = vector.load %arg3[%c0_5, %c0_6] : memref<256x256xbf16, #tpu.memory_space<vmem>>, vector<256x256xbf16>
    %cst = arith.constant dense<0.000000e+00> : vector<8x256xf32>
    %7 = tpu.matmul %5, %6, %cst {dimension_numbers = #tpu.dot_dimension_numbers<[1], [0], [0], [1], [0, 0, 1, 1], [], []>} : vector<8x256xbf16>, vector<256x256xbf16>, vector<8x256xf32> -> vector<8x256xf32>
    %8 = arith.addf %3, %7 : vector<8x256xf32>
    %cst_7 = arith.constant dense<0.000000e+00> : vector<8xf32>
    %9 = vector.multi_reduction <add>, %8, %cst_7 [1] : vector<8x256xf32> to vector<8xf32>
    %10 = vector.shape_cast %9 : vector<8xf32> to vector<8x1xf32>
    %cst_8 = arith.constant 2.560000e+02 : f32
    %11 = vector.broadcast %cst_8 : f32 to vector<8x1xf32>
    %12 = arith.divf %10, %11 : vector<8x1xf32>
    %13 = vector.broadcast %12 : vector<8x1xf32> to vector<8x256xf32>
    %14 = arith.subf %8, %13 : vector<8x256xf32>
    %15 = arith.mulf %14, %14 : vector<8x256xf32>
    %cst_9 = arith.constant dense<0.000000e+00> : vector<8xf32>
    %16 = vector.multi_reduction <add>, %15, %cst_9 [1] : vector<8x256xf32> to vector<8xf32>
    %17 = vector.shape_cast %16 : vector<8xf32> to vector<8x1xf32>
    %cst_10 = arith.constant 2.560000e+02 : f32
    %18 = vector.broadcast %cst_10 : f32 to vector<8x1xf32>
    %19 = arith.divf %17, %18 : vector<8x1xf32>
    %20 = vector.broadcast %12 : vector<8x1xf32> to vector<8x256xf32>
    %21 = arith.subf %8, %20 : vector<8x256xf32>
    %cst_11 = arith.constant 9.99999974E-6 : f32
    %22 = vector.broadcast %cst_11 : f32 to vector<8x1xf32>
    %23 = arith.addf %19, %22 : vector<8x1xf32>
    %24 = math.rsqrt %23 : vector<8x1xf32>
    %25 = vector.broadcast %24 : vector<8x1xf32> to vector<8x256xf32>
    %26 = arith.mulf %21, %25 : vector<8x256xf32>
    %c0_12 = arith.constant 0 : index
    %c0_13 = arith.constant 0 : index
    %27 = vector.load %arg5[%c0_12, %c0_13] : memref<1x256xf32, #tpu.memory_space<vmem>>, vector<1x256xf32>
    %28 = vector.broadcast %27 : vector<1x256xf32> to vector<8x256xf32>
    %29 = arith.mulf %26, %28 : vector<8x256xf32>
    %c0_14 = arith.constant 0 : index
    %c0_15 = arith.constant 0 : index
    %30 = vector.load %arg6[%c0_14, %c0_15] : memref<1x256xf32, #tpu.memory_space<vmem>>, vector<1x256xf32>
    %31 = vector.broadcast %30 : vector<1x256xf32> to vector<8x256xf32>
    %32 = arith.addf %29, %31 : vector<8x256xf32>
    %33 = arith.truncf %32 : vector<8x256xf32> to vector<8x256xbf16>
    %c0_16 = arith.constant 0 : index
    %c0_17 = arith.constant 0 : index
    %34 = vector.load %arg7[%c0_16, %c0_17] : memref<256x64xbf16, #tpu.memory_space<vmem>>, vector<256x64xbf16>
    %cst_18 = arith.constant dense<0.000000e+00> : vector<8x64xf32>
    %35 = tpu.matmul %33, %34, %cst_18 {dimension_numbers = #tpu.dot_dimension_numbers<[1], [0], [0], [1], [0, 0, 1, 1], [], []>} : vector<8x256xbf16>, vector<256x64xbf16>, vector<8x64xf32> -> vector<8x64xf32>
    %c0_19 = arith.constant 0 : index
    %c0_20 = arith.constant 0 : index
    %36 = vector.load %arg8[%c0_19, %c0_20] : memref<1x64xf32, #tpu.memory_space<vmem>>, vector<1x64xf32>
    %37 = vector.broadcast %36 : vector<1x64xf32> to vector<8x64xf32>
    %38 = arith.addf %35, %37 : vector<8x64xf32>
    %cst_21 = arith.constant 0.000000e+00 : f32
    %39 = vector.broadcast %cst_21 : f32 to vector<8x64xf32>
    %40 = arith.maximumf %38, %39 : vector<8x64xf32>
    %41 = arith.truncf %40 : vector<8x64xf32> to vector<8x64xbf16>
    %c0_22 = arith.constant 0 : index
    %c0_23 = arith.constant 0 : index
    %42 = vector.load %arg9[%c0_22, %c0_23] : memref<64x256xbf16, #tpu.memory_space<vmem>>, vector<64x256xbf16>
    %cst_24 = arith.constant dense<0.000000e+00> : vector<8x256xf32>
    %43 = tpu.matmul %41, %42, %cst_24 {dimension_numbers = #tpu.dot_dimension_numbers<[1], [0], [0], [1], [0, 0, 1, 1], [], []>} : vector<8x64xbf16>, vector<64x256xbf16>, vector<8x256xf32> -> vector<8x256xf32>
    %c0_25 = arith.constant 0 : index
    %c0_26 = arith.constant 0 : index
    %44 = vector.load %arg10[%c0_25, %c0_26] : memref<1x256xf32, #tpu.memory_space<vmem>>, vector<1x256xf32>
    %45 = vector.broadcast %44 : vector<1x256xf32> to vector<8x256xf32>
    %46 = arith.addf %43, %45 : vector<8x256xf32>
    %47 = arith.addf %8, %46 : vector<8x256xf32>
    %c0_27 = arith.constant 0 : index
    %c0_28 = arith.constant 0 : index
    %48 = vector.load %arg11[%c0_27, %c0_28] : memref<8x256xf32, #tpu.memory_space<vmem>>, vector<8x256xf32>
    tpu.vector_store %arg11[%c0_27, %c0_28], %47 {strides = array<i32>} : memref<8x256xf32, #tpu.memory_space<vmem>>, vector<8x256xf32>,
    return
  }
  func.func @transform_0(%arg0: i32) -> (i32, i32) {
    %c0_i32 = arith.constant 0 : i32
    %c0_i32_0 = arith.constant 0 : i32
    return %arg0, %c0_i32 : i32, i32
  }
  func.func @transform_1(%arg0: i32) -> (i32, i32) {
    %c0_i32 = arith.constant 0 : i32
    %c0_i32_0 = arith.constant 0 : i32
    return %arg0, %c0_i32 : i32, i32
  }
  func.func @transform_2(%arg0: i32) -> (i32, i32) {
    %c0_i32 = arith.constant 0 : i32
    %c0_i32_0 = arith.constant 0 : i32
    %c0_i32_1 = arith.constant 0 : i32
    return %c0_i32, %c0_i32_0 : i32, i32
  }
  func.func @transform_3(%arg0: i32) -> (i32, i32) {
    %c0_i32 = arith.constant 0 : i32
    %c0_i32_0 = arith.constant 0 : i32
    %c0_i32_1 = arith.constant 0 : i32
    return %c0_i32, %c0_i32_0 : i32, i32
  }
  func.func @transform_4(%arg0: i32) -> (i32, i32) {
    %c0_i32 = arith.constant 0 : i32
    %c0_i32_0 = arith.constant 0 : i32
    %c0_i32_1 = arith.constant 0 : i32
    return %c0_i32, %c0_i32_0 : i32, i32
  }
  func.func @transform_5(%arg0: i32) -> (i32, i32) {
    %c0_i32 = arith.constant 0 : i32
    %c0_i32_0 = arith.constant 0 : i32
    %c0_i32_1 = arith.constant 0 : i32
    return %c0_i32, %c0_i32_0 : i32, i32
  }
  func.func @transform_6(%arg0: i32) -> (i32, i32) {
    %c0_i32 = arith.constant 0 : i32
    %c0_i32_0 = arith.constant 0 : i32
    %c0_i32_1 = arith.constant 0 : i32
    return %c0_i32, %c0_i32_0 : i32, i32
  }
  func.func @transform_7(%arg0: i32) -> (i32, i32) {
    %c0_i32 = arith.constant 0 : i32
    %c0_i32_0 = arith.constant 0 : i32
    %c0_i32_1 = arith.constant 0 : i32
    return %c0_i32, %c0_i32_0 : i32, i32
  }
  func.func @transform_8(%arg0: i32) -> (i32, i32) {
    %c0_i32 = arith.constant 0 : i32
    %c0_i32_0 = arith.constant 0 : i32
    %c0_i32_1 = arith.constant 0 : i32
    return %c0_i32, %c0_i32_0 : i32, i32
  }
  func.func @transform_9(%arg0: i32) -> (i32, i32) {
    %c0_i32 = arith.constant 0 : i32
    %c0_i32_0 = arith.constant 0 : i32
    %c0_i32_1 = arith.constant 0 : i32
    return %c0_i32, %c0_i32_0 : i32, i32
  }
  func.func @transform_10(%arg0: i32) -> (i32, i32) {
    %c0_i32 = arith.constant 0 : i32
    %c0_i32_0 = arith.constant 0 : i32
    return %arg0, %c0_i32 : i32, i32
  }
}

module attributes {stable_mosaic.version = 11 : i64} {
  func.func @_mean_fc_kernel(%arg0: i32, %arg1: memref<2x4x256xf32, #tpu.memory_space<vmem>>, %arg2: memref<256x8xbf16, #tpu.memory_space<vmem>>, %arg3: memref<2x8xf32, #tpu.memory_space<vmem>>) attributes {dimension_semantics = [#tpu.dimension_semantics<arbitrary>], iteration_bounds = array<i64: 1>, scalar_prefetch = 0 : i64, scratch_operands = 0 : i64, tpu.core_type = #tpu.core_type<tc>, window_params = [{pipeline_mode = #tpu.pipeline_mode<synchronous>, transform_indices = @transform_0, window_bounds = array<i64: 2, 4, 256>}, {pipeline_mode = #tpu.pipeline_mode<synchronous>, transform_indices = @transform_1, window_bounds = array<i64: 256, 8>}, {pipeline_mode = #tpu.pipeline_mode<synchronous>, transform_indices = @transform_2, window_bounds = array<i64: 2, 8>}]} {
    %c0 = arith.constant 0 : index
    %c0_0 = arith.constant 0 : index
    %c0_1 = arith.constant 0 : index
    %0 = vector.load %arg1[%c0, %c0_0, %c0_1] : memref<2x4x256xf32, #tpu.memory_space<vmem>>, vector<2x4x256xf32>
    %cst = arith.constant dense<0.000000e+00> : vector<2x256xf32>
    %1 = vector.multi_reduction <add>, %0, %cst [1] : vector<2x4x256xf32> to vector<2x256xf32>
    %cst_2 = arith.constant 4.000000e+00 : f32
    %2 = vector.broadcast %cst_2 : f32 to vector<2x256xf32>
    %3 = arith.divf %1, %2 : vector<2x256xf32>
    %4 = arith.truncf %3 : vector<2x256xf32> to vector<2x256xbf16>
    %c0_3 = arith.constant 0 : index
    %c0_4 = arith.constant 0 : index
    %5 = vector.load %arg2[%c0_3, %c0_4] : memref<256x8xbf16, #tpu.memory_space<vmem>>, vector<256x8xbf16>
    %cst_5 = arith.constant dense<0.000000e+00> : vector<2x8xf32>
    %6 = tpu.matmul %4, %5, %cst_5 {dimension_numbers = #tpu.dot_dimension_numbers<[1], [0], [0], [1], [0, 0, 1, 1], [], []>} : vector<2x256xbf16>, vector<256x8xbf16>, vector<2x8xf32> -> vector<2x8xf32>
    %c0_6 = arith.constant 0 : index
    %c0_7 = arith.constant 0 : index
    %7 = vector.load %arg3[%c0_6, %c0_7] : memref<2x8xf32, #tpu.memory_space<vmem>>, vector<2x8xf32>
    tpu.vector_store %arg3[%c0_6, %c0_7], %6 {strides = array<i32>} : memref<2x8xf32, #tpu.memory_space<vmem>>, vector<2x8xf32>,
    return
  }
  func.func @transform_0(%arg0: i32) -> (i32, i32, i32) {
    %c0_i32 = arith.constant 0 : i32
    %c0_i32_0 = arith.constant 0 : i32
    %c0_i32_1 = arith.constant 0 : i32
    %c0_i32_2 = arith.constant 0 : i32
    return %c0_i32, %c0_i32_0, %c0_i32_1 : i32, i32, i32
  }
  func.func @transform_1(%arg0: i32) -> (i32, i32) {
    %c0_i32 = arith.constant 0 : i32
    %c0_i32_0 = arith.constant 0 : i32
    %c0_i32_1 = arith.constant 0 : i32
    return %c0_i32, %c0_i32_0 : i32, i32
  }
  func.func @transform_2(%arg0: i32) -> (i32, i32) {
    %c0_i32 = arith.constant 0 : i32
    %c0_i32_0 = arith.constant 0 : i32
    %c0_i32_1 = arith.constant 0 : i32
    return %c0_i32, %c0_i32_0 : i32, i32
  }
}

</mosaic_0001>

<bundles_post_ra>
// kernel: gt_forward.15
= control target key start
LH: loop header
LB: loop body
LE: loop exit
PB: predicated region body
PF: predicated region fallthrough
CT: control target
= control target key end

     0   :  { %s556_s12 = smov 0   ;;  %s558_s13 = smov 0   ;;  %s638_s0 = inlined_call_operand.vmem [shape: bf16[4,36], index: 0, kind: input, shape index: {}]   ;;  %s639_s1 = inlined_call_operand.vmem [shape: bf16[36,2048], index: 1, kind: input, shape index: {}]   ;;  %s640_s2 = inlined_call_operand.vmem [shape: f32[4,1], index: 2, kind: input, shape index: {}]   ;;  %s641_s3 = inlined_call_operand.vmem [shape: f32[4,2048], index: 3, kind: output, shape index: {}]  }
   0x1   :  { %s560_s14 = smov 0  }
   0x2 LB: > { %s427_s15 = sadd.s32 4294967295, %s533_s14   ;;  %s573_s16 = sadd.s32 1, %s533_s14   ;;  %s533_s14 = sphi %s560_s14, %s644_s14   ;;  %s529_s13 = sphi %s558_s13, %s643_s13   ;;  %s525_s12 = sphi %s556_s12, %s642_s12  }
   0x3   : > { %s38_s17 = ssub.s32 %s533_s14, %s573_s16  ;;  %s41_s18 = sadd.s32 1, %s529_s13 }
   0x4   : > { %p39_p0 = scmp.eq.s32.totalorder %s38_s17, 0  ;;  %p48_p1 = scmp.ne.s32.totalorder %s529_s13, %s525_s12 }
   0x5   : > { %p49_p2 = scmp.eq.s32.totalorder %s533_s14, 0  ;;  %p430_p4 = scmp.ge.s32.totalorder %s533_s14, 4 }
   0x6   : > { %s582_s19 = scalar_select %p39_p0, %s529_s13, %s41_s18  }
   0x7   : > { %p50_p3 = por %p49_p2, %p48_p1  ;;  %127 = sbr.rel (%p430_p4) target bundleno = 26 (0x1a), region = 24 }
   0xc   : > { %130 = sbr.rel (!%p50_p3) target bundleno = 26 (0x1a), region = 28  ;;  %s132_s20 = sand.u32 (%p50_p3), 1, %s529_s13  }
   0xd   : > { %s474_s21 = sshll.u32 (%p50_p3), %s533_s14, 4  ;;  %s483_s22 = smul.u32 (%p50_p3), 80, %s132_s20 }
   0xe   : > { %s137_s25 = scalar_lea.vmem (%p50_p3), %s639_s1, %s474_s21 }
   0xf   : > { %v150_v0 = vld [vmem:[%s137_s25] sm:$0xff] (%p50_p3)  ;;  %v152_v1 = vld [vmem:[%s137_s25 + $0x8] sm:$0xff] (%p50_p3)  ;;  %s134_s26 = scalar_lea.vmem (%p50_p3), [#allocation2], %s483_s22 }
  0x10   : > { %v154_v2 = vld [vmem:[%s137_s25 + $0x40] sm:$0xff] (%p50_p3)  ;;  %151 = vst [vmem:[%s134_s26] sm:$0xff] (%p50_p3), %v150_v0  ;;  %v156_v3 = vld [vmem:[%s137_s25 + $0x48] sm:$0xff] (%p50_p3) }
  0x11   : > { %153 = vst [vmem:[%s134_s26 + $0x8] sm:$0xff] %v152_v1  ;;  %v158_v4 = vld [vmem:[%s137_s25 + $0x80] sm:$0xff]  ;;  %v160_v5 = vld [vmem:[%s137_s25 + $0x88] sm:$0xff] }
  0x12   : > { %155 = vst [vmem:[%s134_s26 + $0x10] sm:$0xff] %v154_v2  ;;  %v162_v6 = vld [vmem:[%s137_s25 + $0xc0] sm:$0xff]  ;;  %v164_v7 = vld [vmem:[%s137_s25 + $0xc8] sm:$0xff] }
  0x13   : > { %157 = vst [vmem:[%s134_s26 + $0x18] sm:$0xff] %v156_v3  ;;  %v166_v8 = vld [vmem:[%s137_s25 + $0x100] sm:$0xff]  ;;  %v168_v9 = vld [vmem:[%s137_s25 + $0x108] sm:$0xff] }
  0x14   : > { %159 = vst [vmem:[%s134_s26 + $0x20] sm:$0xff] %v158_v4 }
  0x15   : > { %161 = vst [vmem:[%s134_s26 + $0x28] sm:$0xff] %v160_v5 }
  0x16   : > { %163 = vst [vmem:[%s134_s26 + $0x30] sm:$0xff] %v162_v6 }
  0x17   : > { %165 = vst [vmem:[%s134_s26 + $0x38] sm:$0xff] %v164_v7 }
  0x18   : > { %167 = vst [vmem:[%s134_s26 + $0x40] sm:$0xff] %v166_v8 }
  0x19   : > { %169 = vst [vmem:[%s134_s26 + $0x48] sm:$0xff] %v168_v9 }
  0x1a PF: > { %p433_p5 = scmp.ge.s32.totalorder %s533_s14, 1  ;;  %p174_p6 = scmp.lt.s32.totalorder %s533_s14, 5 }
  0x1c   : > { %p175_p7 = pnand %p433_p5, %p174_p6 }
  0x1d   : > { %s181_s27 = sand.u32 (!%p175_p7), 1, %s525_s12   ;;  %s434_s7 = sshll.u32 (!%p175_p7), %s427_s15, 2 }
  0x1e   : > { %178 = sbr.rel (%p175_p7) target bundleno = 192 (0xc0), region = 51  ;;  %p206_p8 = scmp.lt.s32.totalorder (!%p175_p7), %s434_s7, 15 }
  0x1f   : > { %s484_s28 = smul.u32 (!%p175_p7), 80, %s181_s27 }
  0x21   : > { %s596_s4 = scalar_lea.vmem (!%p175_p7), [#allocation2], %s484_s28 }
  0x23   : > { %v535_v10 = vmov 0   ;;  %v223_v11 = vld [vmem:[%s640_s2] sm:$0xf]  ;;  %v222_v13 = vld [vmem:[%s596_s4 + $0x48] sm:$0x33]  ;;  %vm283_vm0 = vcmask 1041408  }
  0x24   : > { %510 = vset.pattern.permute.xlu0 %v535_v10  ;;  %v221_v12 = vld [vmem:[%s596_s4 + $0x40] sm:$0x33]  ;;  %v257_v16 = vunpack.c.l.b16 %v222_v13  ;;  %v258_v17 = vunpack.c.h.b16 %v222_v13  ;;  %v481_v19 = vld [vmem:[%s596_s4 + $0x2c] sm:$0xf0]  ;;  %v456_v25 = vld [vmem:[%s596_s4 + $0x30] sm:$0xf0] }
  0x25   : > { %226 = vperm.xlu0 %510, %v223_v11   ;;  %v255_v14 = vunpack.c.l.b16 %v221_v12  ;;  %v256_v15 = vunpack.c.h.b16 %v221_v12  ;;  %v454_v18 = vld [vmem:[%s596_s4 + $0x20] sm:$0xf]  ;;  %v479_v24 = vld [vmem:[%s596_s4 + $0x24] sm:$0xf]  ;;  %v462_v26 = vld [vmem:[%s596_s4 + $0x28] sm:$0xf] }
  0x26   : > { %v269_v22 = vpack.c.b16 %v257_v16, %v257_v16  ;;  %v270_v23 = vpack.c.b16 %v258_v17, %v258_v17  ;;  %v482_v27 = vld [vmem:[%s596_s4 + $0x34] sm:$0xf0]  ;;  %v480_v28 = vld [vmem:[%s596_s4 + $0x2c] sm:$0xf]  ;;  %v464_v29 = vld [vmem:[%s596_s4 + $0x38] sm:$0xf0]  ;;  %v455_v34 = vor.u32 %v481_v19, %v454_v18  ;;  %v459_v35 = vor.u32 %v479_v24, %v456_v25 }
  0x27   : > { %v267_v20 = vpack.c.b16 %v255_v14, %v255_v14  ;;  %v268_v21 = vpack.c.b16 %v256_v15, %v256_v15  ;;  %v438_v36 = vld [vmem:[%s596_s4] sm:$0xf]  ;;  %v477_v37 = vld [vmem:[%s596_s4 + $0xc] sm:$0xf0]  ;;  %v463_v38 = vor.u32 %v482_v27, %v462_v26  ;;  %v467_v39 = vor.u32 %v480_v28, %v464_v29  ;;  %v475_v40 = vld [vmem:[%s596_s4 + $0x4] sm:$0xf] }
  0x28   : > { %v291_v32 = vsel %vm283_vm0, %v269_v22, 0  ;;  %v294_v33 = vsel %vm283_vm0, %v270_v23, 0  ;;  %v440_v41 = vld [vmem:[%s596_s4 + $0x10] sm:$0xf0]  ;;  %v446_v42 = vld [vmem:[%s596_s4 + $0x8] sm:$0xf]  ;;  %v439_v46 = vor.u32 %v477_v37, %v438_v36 }
  0x29   : > { %v285_v30 = vsel %vm283_vm0, %v267_v20, 0  ;;  %v288_v31 = vsel %vm283_vm0, %v268_v21, 0  ;;  %327 = vmatpush.bf16.msra.mxu2 %v291_v32  ;;  %340 = vmatpush.bf16.msra.mxu3 %v294_v33  ;;  %v478_v43 = vld [vmem:[%s596_s4 + $0x14] sm:$0xf0]  ;;  %v476_v44 = vld [vmem:[%s596_s4 + $0xc] sm:$0xf]  ;;  %v443_v47 = vor.u32 %v475_v40, %v440_v41 }
  0x2a   : > { %301 = vmatpush.bf16.msra.mxu0 %v285_v30  ;;  %314 = vmatpush.bf16.msra.mxu1 %v288_v31  ;;  %v448_v45 = vld [vmem:[%s596_s4 + $0x18] sm:$0xf0]  ;;  %v447_v48 = vor.u32 %v478_v43, %v446_v42  ;;  %v212_v50 = vld [vmem:[%s638_s0] sm:$0x3]  ;;  %vm279_vm1 = vcmask 293888   ;;  %s646_s7 = smov (!%p206_p8, %s434_s7), 15 }
  0x2b   : > { %v451_v49 = vor.u32 %v476_v44, %v448_v45  ;;  %s435_s8 = sshll.u32 %s646_s7, 2  ;;  %vm358_vm2 = vcmask 1043456  }
  0x2c   : > { %s209_s11 = scalar_lea.vmem %s641_s3, %s435_s8 }
  0x2d   : > { %328 = vmatpush.bf16.msra.mxu2 %v463_v38  ;;  %341 = vmatpush.bf16.msra.mxu3 %v467_v39 }
  0x2e   : > { %302 = vmatpush.bf16.msra.mxu0 %v455_v34  ;;  %315 = vmatpush.bf16.msra.mxu1 %v459_v35 }
  0x31   : > { %329 = vmatpush.bf16.msra.mxu2 %v447_v48  ;;  %342 = vmatpush.bf16.msra.mxu3 %v451_v49 }
  0x32   : > { %303 = vmatpush.bf16.msra.mxu0 %v439_v46  ;;  %316 = vmatpush.bf16.msra.mxu1 %v443_v47 }
  0x34   : > { %470 = vmatmul.msk.bf16.vlgmr.msra.gmra.mxu2 %vm279_vm1, %v212_v50  ;;  %471 = vmatmul.msk.bf16.vlgmr.msra.gmra.mxu3 %vm279_vm1, %v212_v50 }
  0x35   : > { %468 = vmatmul.msk.bf16.vlgmr.msra.gmra.mxu0 %vm279_vm1, %v212_v50  ;;  %469 = vmatmul.msk.bf16.vlgmr.msra.gmra.mxu1 %vm279_vm1, %v212_v50 }
  0x97   : > { %v227_v51 = vpop.permute.xlu0 %226 }
  0xb2   : > { %v305_v52 = vpop.f32.mrf.mxu0  ;;  %v318_v53 = vpop.f32.mrf.mxu1 }
  0xb3   : > { %v306_v54 = vadd.f32 %v305_v52, %v227_v51  ;;  %v319_v55 = vadd.f32 %v318_v53, %v227_v51 }
  0xb5   : > { %v348_v56 = vmax.f32 %v306_v54, 0.0  ;;  %v349_v57 = vmax.f32 %v319_v55, 0.0 }
  0xb7   : > { %v356_v58 = vrot.slane %v349_v57, 4  ;;  %v331_v59 = vpop.f32.mrf.mxu2  ;;  %v344_v60 = vpop.f32.mrf.mxu3 }
  0xb8   : > { %v332_v62 = vadd.f32 %v331_v59, %v227_v51  ;;  %v345_v63 = vadd.f32 %v344_v60, %v227_v51 }
  0xb9   : > { %v359_v61 = vsel %vm358_vm2, %v348_v56, %v356_v58 }
  0xba   : > { %363 = vst [vmem:[%s209_s11] sm:$0xff] %v359_v61  ;;  %v307_v0 = vpop.f32.mrf.mxu0  ;;  %v320_v1 = vpop.f32.mrf.mxu1  ;;  %v351_v2 = vmax.f32 %v345_v63, 0.0  ;;  %v350_v3 = vmax.f32 %v332_v62, 0.0 }
  0xbc   : > { %v357_v4 = vrot.slane %v351_v2, 4 }
  0xbe   : > { %v360_v5 = vsel %vm358_vm2, %v350_v3, %v357_v4 }
  0xbf   : > { %364 = vst [vmem:[%s209_s11 + $0x8] sm:$0xff] %v360_v5  ;;  %v333_v6 = vpop.f32.mrf.mxu2  ;;  %v346_v7 = vpop.f32.mrf.mxu3 }
  0xc0 PF: > { %p10_p9 = scmp.ge.s32.totalorder %s573_s16, 6   ;;  %s642_s12 = smov %s529_s13 }
  0xc1   : > { %s643_s13 = smov %s582_s19  ;;  %s644_s14 = smov %s573_s16 }
  0xc2   :  { %12 = sbr.rel (!%p10_p9) target bundleno = 2 (0x2), region = 90 }

// kernel: gt_forward.16
= control target key start
LH: loop header
LB: loop body
LE: loop exit
PB: predicated region body
PF: predicated region fallthrough
CT: control target
= control target key end

     0   :  { %s643_s15 = smov 0   ;;  %s645_s16 = smov 0   ;;  %s730_s0 = inlined_call_operand.vmem [shape: bf16[4,36], index: 0, kind: input, shape index: {}]   ;;  %s731_s1 = inlined_call_operand.vmem [shape: bf16[36,2048], index: 1, kind: input, shape index: {}]   ;;  %s732_s2 = inlined_call_operand.vmem [shape: f32[4,1], index: 2, kind: input, shape index: {}]   ;;  %s733_s3 = inlined_call_operand.vmem [shape: f32[4,2048], index: 3, kind: input, shape index: {}]   ;;  %s734_s4 = inlined_call_operand.vmem [shape: f32[4,2048], index: 4, kind: output, shape index: {}]  }
   0x1   :  { %s647_s17 = smov 0  }
   0x2 LB: > { %s507_s18 = sadd.s32 4294967295, %s615_s17   ;;  %s660_s19 = sadd.s32 1, %s615_s17   ;;  %s615_s17 = sphi %s647_s17, %s737_s17   ;;  %s611_s16 = sphi %s645_s16, %s736_s16   ;;  %s607_s15 = sphi %s643_s15, %s735_s15  }
   0x3   : > { %s39_s20 = ssub.s32 %s615_s17, %s660_s19  ;;  %s42_s21 = sadd.s32 1, %s611_s16 }
   0x4   : > { %p40_p0 = scmp.eq.s32.totalorder %s39_s20, 0  ;;  %p49_p1 = scmp.ne.s32.totalorder %s611_s16, %s607_s15 }
   0x5   : > { %p50_p2 = scmp.eq.s32.totalorder %s615_s17, 0  ;;  %p510_p4 = scmp.ge.s32.totalorder %s615_s17, 4 }
   0x6   : > { %s669_s22 = scalar_select %p40_p0, %s611_s16, %s42_s21  }
   0x7   : > { %p51_p3 = por %p50_p2, %p49_p1  ;;  %154 = sbr.rel (%p510_p4) target bundleno = 26 (0x1a), region = 24 }
   0xc   : > { %157 = sbr.rel (!%p51_p3) target bundleno = 26 (0x1a), region = 28  ;;  %s159_s23 = sand.u32 (%p51_p3), 1, %s611_s16  }
   0xd   : > { %s556_s24 = sshll.u32 (%p51_p3), %s615_s17, 4  ;;  %s565_s25 = smul.u32 (%p51_p3), 80, %s159_s23 }
   0xe   : > { %s164_s28 = scalar_lea.vmem (%p51_p3), %s731_s1, %s556_s24 }
   0xf   : > { %v177_v0 = vld [vmem:[%s164_s28] sm:$0xff] (%p51_p3)  ;;  %v179_v1 = vld [vmem:[%s164_s28 + $0x8] sm:$0xff] (%p51_p3)  ;;  %s161_s29 = scalar_lea.vmem (%p51_p3), [#allocation2], %s565_s25 }
  0x10   : > { %v181_v2 = vld [vmem:[%s164_s28 + $0x40] sm:$0xff] (%p51_p3)  ;;  %178 = vst [vmem:[%s161_s29] sm:$0xff] (%p51_p3), %v177_v0  ;;  %v183_v3 = vld [vmem:[%s164_s28 + $0x48] sm:$0xff] (%p51_p3) }
  0x11   : > { %180 = vst [vmem:[%s161_s29 + $0x8] sm:$0xff] %v179_v1  ;;  %v185_v4 = vld [vmem:[%s164_s28 + $0x80] sm:$0xff]  ;;  %v187_v5 = vld [vmem:[%s164_s28 + $0x88] sm:$0xff] }
  0x12   : > { %182 = vst [vmem:[%s161_s29 + $0x10] sm:$0xff] %v181_v2  ;;  %v189_v6 = vld [vmem:[%s164_s28 + $0xc0] sm:$0xff]  ;;  %v191_v7 = vld [vmem:[%s164_s28 + $0xc8] sm:$0xff] }
  0x13   : > { %184 = vst [vmem:[%s161_s29 + $0x18] sm:$0xff] %v183_v3  ;;  %v193_v8 = vld [vmem:[%s164_s28 + $0x100] sm:$0xff]  ;;  %v195_v9 = vld [vmem:[%s164_s28 + $0x108] sm:$0xff] }
  0x14   : > { %186 = vst [vmem:[%s161_s29 + $0x20] sm:$0xff] %v185_v4 }
  0x15   : > { %188 = vst [vmem:[%s161_s29 + $0x28] sm:$0xff] %v187_v5 }
  0x16   : > { %190 = vst [vmem:[%s161_s29 + $0x30] sm:$0xff] %v189_v6 }
  0x17   : > { %192 = vst [vmem:[%s161_s29 + $0x38] sm:$0xff] %v191_v7 }
  0x18   : > { %194 = vst [vmem:[%s161_s29 + $0x40] sm:$0xff] %v193_v8 }
  0x19   : > { %196 = vst [vmem:[%s161_s29 + $0x48] sm:$0xff] %v195_v9 }
  0x1a PF: > { %p513_p5 = scmp.ge.s32.totalorder %s615_s17, 1  ;;  %p210_p6 = scmp.lt.s32.totalorder %s615_s17, 5 }
  0x1c   : > { %p211_p7 = pnand %p513_p5, %p210_p6 }
  0x1d   : > { %s217_s30 = sand.u32 (!%p211_p7), 1, %s607_s15   ;;  %s514_s11 = sshll.u32 (!%p211_p7), %s507_s18, 2 }
  0x1e   : > { %214 = sbr.rel (%p211_p7) target bundleno = 195 (0xc3), region = 55  ;;  %p249_p8 = scmp.lt.s32.totalorder (!%p211_p7), %s514_s11, 15 }
  0x1f   : > { %s566_s5 = smul.u32 (!%p211_p7), 80, %s217_s30 }
  0x21   : > { %s683_s8 = scalar_lea.vmem (!%p211_p7), [#allocation2], %s566_s5 }
  0x23   : > { %v617_v10 = vmov 0   ;;  %v272_v11 = vld [vmem:[%s732_s2] sm:$0xf]  ;;  %v270_v12 = vld [vmem:[%s683_s8 + $0x40] sm:$0x33]  ;;  %vm332_vm0 = vcmask 1041408  }
  0x24   : > { %592 = vset.pattern.permute.xlu0 %v617_v10  ;;  %v271_v13 = vld [vmem:[%s683_s8 + $0x48] sm:$0x33]  ;;  %v304_v14 = vunpack.c.l.b16 %v270_v12  ;;  %v305_v15 = vunpack.c.h.b16 %v270_v12  ;;  %v536_v18 = vld [vmem:[%s683_s8 + $0x20] sm:$0xf]  ;;  %v563_v19 = vld [vmem:[%s683_s8 + $0x2c] sm:$0xf0] }
  0x25   : > { %275 = vperm.xlu0 %592, %v272_v11   ;;  %v306_v16 = vunpack.c.l.b16 %v271_v13  ;;  %v307_v17 = vunpack.c.h.b16 %v271_v13  ;;  %v561_v24 = vld [vmem:[%s683_s8 + $0x24] sm:$0xf]  ;;  %v538_v25 = vld [vmem:[%s683_s8 + $0x30] sm:$0xf0]  ;;  %v544_v26 = vld [vmem:[%s683_s8 + $0x28] sm:$0xf]  ;;  %v537_v34 = vor.u32 %v563_v19, %v536_v18 }
  0x26   : > { %v316_v20 = vpack.c.b16 %v304_v14, %v304_v14  ;;  %v317_v21 = vpack.c.b16 %v305_v15, %v305_v15  ;;  %v564_v27 = vld [vmem:[%s683_s8 + $0x34] sm:$0xf0]  ;;  %v562_v28 = vld [vmem:[%s683_s8 + $0x2c] sm:$0xf]  ;;  %v546_v29 = vld [vmem:[%s683_s8 + $0x38] sm:$0xf0]  ;;  %v541_v35 = vor.u32 %v561_v24, %v538_v25 }
  0x27   : > { %v318_v22 = vpack.c.b16 %v306_v16, %v306_v16  ;;  %v319_v23 = vpack.c.b16 %v307_v17, %v307_v17  ;;  %v520_v36 = vld [vmem:[%s683_s8] sm:$0xf]  ;;  %v559_v37 = vld [vmem:[%s683_s8 + $0xc] sm:$0xf0]  ;;  %v545_v38 = vor.u32 %v564_v27, %v544_v26  ;;  %v549_v39 = vor.u32 %v562_v28, %v546_v29  ;;  %v557_v40 = vld [vmem:[%s683_s8 + $0x4] sm:$0xf] }
  0x28   : > { %v334_v30 = vsel %vm332_vm0, %v316_v20, 0  ;;  %v337_v31 = vsel %vm332_vm0, %v317_v21, 0  ;;  %v522_v41 = vld [vmem:[%s683_s8 + $0x10] sm:$0xf0]  ;;  %v528_v42 = vld [vmem:[%s683_s8 + $0x8] sm:$0xf]  ;;  %v521_v46 = vor.u32 %v559_v37, %v520_v36 }
  0x29   : > { %v340_v32 = vsel %vm332_vm0, %v318_v22, 0  ;;  %v343_v33 = vsel %vm332_vm0, %v319_v23, 0  ;;  %350 = vmatpush.bf16.msra.mxu0 %v334_v30  ;;  %363 = vmatpush.bf16.msra.mxu1 %v337_v31  ;;  %v560_v43 = vld [vmem:[%s683_s8 + $0x14] sm:$0xf0]  ;;  %v558_v44 = vld [vmem:[%s683_s8 + $0xc] sm:$0xf]  ;;  %v525_v47 = vor.u32 %v557_v40, %v522_v41 }
  0x2a   : > { %376 = vmatpush.bf16.msra.mxu2 %v340_v32  ;;  %389 = vmatpush.bf16.msra.mxu3 %v343_v33  ;;  %v530_v45 = vld [vmem:[%s683_s8 + $0x18] sm:$0xf0]  ;;  %v529_v48 = vor.u32 %v560_v43, %v528_v42  ;;  %v261_v50 = vld [vmem:[%s730_s0] sm:$0x3]  ;;  %vm328_vm1 = vcmask 293888   ;;  %s739_s11 = smov (!%p249_p8, %s514_s11), 15 }
  0x2b   : > { %v533_v49 = vor.u32 %v558_v44, %v530_v45  ;;  %s515_s12 = sshll.u32 %s739_s11, 2  ;;  %vm426_vm2 = vcmask 1043456  }
  0x2c   : > { %s252_s15 = scalar_lea.vmem %s733_s3, %s515_s12  ;;  %s258_s20 = scalar_lea.vmem %s734_s4, %s515_s12 }
  0x2d   : > { %351 = vmatpush.bf16.msra.mxu0 %v537_v34  ;;  %364 = vmatpush.bf16.msra.mxu1 %v541_v35  ;;  %v397_v51 = vld [vmem:[%s252_s15] sm:$0xff]  ;;  %v398_v52 = vld [vmem:[%s252_s15 + $0x8] sm:$0xff] }
  0x2e   : > { %377 = vmatpush.bf16.msra.mxu2 %v545_v38  ;;  %390 = vmatpush.bf16.msra.mxu3 %v549_v39  ;;  %401 = vst [vmem:[#allocation1] ss:$2 sm:$0xff] %v397_v51 }
  0x2f   : > { %403 = vst [vmem:[#allocation1 + $0x10] ss:$2 sm:$0xff] %v398_v52 }
  0x31   : > { %352 = vmatpush.bf16.msra.mxu0 %v521_v46  ;;  %365 = vmatpush.bf16.msra.mxu1 %v525_v47 }
  0x32   : > { %378 = vmatpush.bf16.msra.mxu2 %v529_v48  ;;  %391 = vmatpush.bf16.msra.mxu3 %v533_v49 }
  0x34   : > { %550 = vmatmul.msk.bf16.vlgmr.msra.gmra.mxu0 %vm328_vm1, %v261_v50  ;;  %551 = vmatmul.msk.bf16.vlgmr.msra.gmra.mxu1 %vm328_vm1, %v261_v50 }
  0x35   : > { %552 = vmatmul.msk.bf16.vlgmr.msra.gmra.mxu2 %vm328_vm1, %v261_v50  ;;  %553 = vmatmul.msk.bf16.vlgmr.msra.gmra.mxu3 %vm328_vm1, %v261_v50  ;;  %v404_v56 = vld.sshfl [vmem:[#allocation1] sm:$0xff pattern:$0x75316420]  ;;  %v405_v57 = vld.sshfl [vmem:[#allocation1 + $0x8] sm:$0xff pattern:$0x75316420] }
  0x36   : > { %v406_v0 = vld.sshfl [vmem:[#allocation1 + $0x10] sm:$0xff pattern:$0x75316420]  ;;  %v407_v4 = vld.sshfl [vmem:[#allocation1 + $0x18] sm:$0xff pattern:$0x75316420] }
  0x97   : > { %v276_v53 = vpop.permute.xlu0 %275 }
  0xb1   : > { %v354_v54 = vpop.f32.mrf.mxu0  ;;  %v367_v55 = vpop.f32.mrf.mxu1 }
  0xb2   : > { %v355_v58 = vadd.f32 %v354_v54, %v276_v53  ;;  %v368_v59 = vadd.f32 %v367_v55, %v276_v53 }
  0xb4   : > { %v412_v60 = vadd.f32 %v404_v56, %v355_v58  ;;  %v413_v61 = vadd.f32 %v405_v57, %v368_v59 }
  0xb6   : > { %v416_v62 = vmax.f32 %v412_v60, 0.0  ;;  %v417_v63 = vmax.f32 %v413_v61, 0.0 }
  0xb8   : > { %v424_v1 = vrot.slane %v417_v63, 4  ;;  %v380_v2 = vpop.f32.mrf.mxu2  ;;  %v393_v3 = vpop.f32.mrf.mxu3 }
  0xb9   : > { %v381_v5 = vadd.f32 %v380_v2, %v276_v53  ;;  %v394_v6 = vadd.f32 %v393_v3, %v276_v53  ;;  %v356_v7 = vpop.f32.mrf.mxu0  ;;  %v369_v8 = vpop.f32.mrf.mxu1 }
  0xba   : > { %v427_v9 = vsel %vm426_vm2, %v416_v62, %v424_v1 }
  0xbb   : > { %v414_v10 = vadd.f32 %v406_v0, %v381_v5  ;;  %v415_v11 = vadd.f32 %v407_v4, %v394_v6  ;;  %431 = vst [vmem:[%s258_s20] sm:$0xff] %v427_v9 }
  0xbd   : > { %v419_v12 = vmax.f32 %v415_v11, 0.0  ;;  %v418_v13 = vmax.f32 %v414_v10, 0.0 }
  0xbf   : > { %v425_v14 = vrot.slane %v419_v12, 4 }
  0xc0   : > { %v382_v15 = vpop.f32.mrf.mxu2  ;;  %v395_v16 = vpop.f32.mrf.mxu3 }
  0xc1   : > { %v428_v17 = vsel %vm426_vm2, %v418_v13, %v425_v14 }
  0xc2   : > { %432 = vst [vmem:[%s258_s20 + $0x8] sm:$0xff] %v428_v17 }
  0xc3 PF: > { %p11_p9 = scmp.ge.s32.totalorder %s660_s19, 6   ;;  %s735_s15 = smov %s611_s16 }
  0xc4   : > { %s736_s16 = smov %s669_s22  ;;  %s737_s17 = smov %s660_s19 }
  0xc5   :  { %13 = sbr.rel (!%p11_p9) target bundleno = 2 (0x2), region = 98 }

// kernel: gt_forward.18
= control target key start
LH: loop header
LB: loop body
LE: loop exit
PB: predicated region body
PF: predicated region fallthrough
CT: control target
= control target key end

     0   :  { %v108_v1 = vmov 0   ;;  %vm33_vm0 = vcmask 1041408   ;;  %vm29_vm1 = vcmask 31744   ;;  %s150_s1 = inlined_call_operand.vmem [shape: bf16[4,512], index: 1, kind: input, shape index: {}]   ;;  %s151_s2 = inlined_call_operand.vmem [shape: f32[8,1], index: 2, kind: input, shape index: {}]   ;;  %s152_s0 = inlined_call_operand.vmem [shape: bf16[8,4], index: 0, kind: input, shape index: {}]   ;;  %s153_s3 = inlined_call_operand.vmem [shape: f32[8,512], index: 3, kind: output, shape index: {}]  }
   0x1   :  { %v16_v0 = vld [vmem:[%s150_s1] sm:$0xff]  ;;  %107 = vset.pattern.permute.xlu0 %v108_v1 }
   0x2   :  { %v17_v2 = vld [vmem:[%s151_s2] sm:$0xff]  ;;  %24 = vst [vmem:[#allocation1] ss:$4 sm:$0xff] %v16_v0 }
   0x3   :  { %20 = vperm.xlu0 %107, %v17_v2   ;;  %v15_v10 = vld [vmem:[%s152_s0] sm:$0xf] }
   0x9   :  { %v25_v3 = vld.sshfl [vmem:[#allocation1] sm:$0xff pattern:$0x73625140]  ;;  %v26_v4 = vld.sshfl [vmem:[#allocation1 + $0x8] sm:$0xff pattern:$0x73625140] }
   0xa   :  { %v34_v5 = vsel %vm33_vm0, %v25_v3, 0  ;;  %v36_v6 = vsel %vm33_vm0, %v26_v4, 0  ;;  %v27_v7 = vld.sshfl [vmem:[#allocation1 + $0x10] sm:$0xff pattern:$0x73625140] }
   0xb   :  { %49 = vmatpush.bf16.msra.mxu0 %v34_v5  ;;  %62 = vmatpush.bf16.msra.mxu1 %v36_v6  ;;  %v38_v8 = vsel %vm33_vm0, %v27_v7, 0  ;;  %v28_v9 = vld.sshfl [vmem:[#allocation1 + $0x18] sm:$0xff pattern:$0x73625140] }
   0xc   :  { %75 = vmatpush.bf16.msra.mxu2 %v38_v8  ;;  %v40_v11 = vsel %vm33_vm0, %v28_v9, 0 }
   0xd   :  { %88 = vmatpush.bf16.msra.mxu3 %v40_v11 }
   0xe   :  { %102 = vmatmul.msk.bf16.vlgmr.msra.gmra.mxu0 %vm29_vm1, %v15_v10  ;;  %103 = vmatmul.msk.bf16.vlgmr.msra.gmra.mxu1 %vm29_vm1, %v15_v10 }
   0xf   :  { %104 = vmatmul.msk.bf16.vlgmr.msra.gmra.mxu2 %vm29_vm1, %v15_v10 }
  0x10   :  { %105 = vmatmul.msk.bf16.vlgmr.msra.gmra.mxu3 %vm29_vm1, %v15_v10 }
  0x75   :  { %v21_v12 = vpop.permute.xlu0 %20 }
  0x8b   :  { %v51_v13 = vpop.f32.mrf.mxu0  ;;  %v64_v14 = vpop.f32.mrf.mxu1 }
  0x8c   :  { %v52_v15 = vadd.f32 %v51_v13, %v21_v12  ;;  %v65_v16 = vadd.f32 %v64_v14, %v21_v12 }
  0x8e   :  { %94 = vst [vmem:[%s153_s3] sm:$0xff] %v52_v15 }
  0x8f   :  { %95 = vst [vmem:[%s153_s3 + $0x8] sm:$0xff] %v65_v16 }
  0x92   :  { %v77_v17 = vpop.f32.mrf.mxu2 }
  0x93   :  { %v78_v18 = vadd.f32 %v77_v17, %v21_v12  ;;  %v90_v19 = vpop.f32.mrf.mxu3  ;;  %v53_v20 = vpop.f32.mrf.mxu0 }
  0x94   :  { %v91_v21 = vadd.f32 %v90_v19, %v21_v12  ;;  %v66_v22 = vpop.f32.mrf.mxu1 }
  0x95   :  { %96 = vst [vmem:[%s153_s3 + $0x10] sm:$0xff] %v78_v18 }
  0x96   :  { %97 = vst [vmem:[%s153_s3 + $0x18] sm:$0xff] %v91_v21 }
  0x9a   :  { %v79_v23 = vpop.f32.mrf.mxu2 }
  0x9b   :  { %v92_v24 = vpop.f32.mrf.mxu3 }

// kernel: gt_forward.17
= control target key start
LH: loop header
LB: loop body
LE: loop exit
PB: predicated region body
PF: predicated region fallthrough
CT: control target
= control target key end

     0   :  { %v209_v2 = vmov 0   ;;  %vm86_vm0 = vcmask 1041408   ;;  %vm82_vm1 = vcmask 293888   ;;  %s306_s1 = inlined_call_operand.vmem [shape: bf16[36,512], index: 1, kind: input, shape index: {}]   ;;  %s307_s2 = inlined_call_operand.vmem [shape: f32[8,1], index: 2, kind: input, shape index: {}]   ;;  %s308_s0 = inlined_call_operand.vmem [shape: bf16[8,36], index: 0, kind: input, shape index: {}]   ;;  %s309_s3 = inlined_call_operand.vmem [shape: f32[8,512], index: 3, kind: output, shape index: {}]  }
   0x1   :  { %v24_v0 = vld [vmem:[%s306_s1 + $0x40] sm:$0x33]  ;;  %v25_v1 = vld [vmem:[%s306_s1 + $0x48] sm:$0x33]  ;;  %208 = vset.pattern.permute.xlu0 %v209_v2  ;;  %v205_v8 = vld [vmem:[%s306_s1 + $0x2c] sm:$0xf0] }
   0x2   :  { %v58_v3 = vunpack.c.l.b16 %v24_v0  ;;  %v59_v4 = vunpack.c.h.b16 %v24_v0  ;;  %v60_v5 = vunpack.c.l.b16 %v25_v1  ;;  %v61_v6 = vunpack.c.h.b16 %v25_v1  ;;  %v181_v7 = vld [vmem:[%s306_s1 + $0x20] sm:$0xf]  ;;  %v203_v13 = vld [vmem:[%s306_s1 + $0x24] sm:$0xf]  ;;  %v183_v14 = vld [vmem:[%s306_s1 + $0x30] sm:$0xf0] }
   0x3   :  { %v189_v15 = vld [vmem:[%s306_s1 + $0x28] sm:$0xf]  ;;  %v206_v16 = vld [vmem:[%s306_s1 + $0x34] sm:$0xf0]  ;;  %v204_v17 = vld [vmem:[%s306_s1 + $0x2c] sm:$0xf]  ;;  %v182_v23 = vor.u32 %v205_v8, %v181_v7  ;;  %v186_v24 = vor.u32 %v203_v13, %v183_v14 }
   0x4   :  { %v70_v9 = vpack.c.b16 %v58_v3, %v58_v3  ;;  %v71_v10 = vpack.c.b16 %v59_v4, %v59_v4  ;;  %v72_v11 = vpack.c.b16 %v60_v5, %v60_v5  ;;  %v73_v12 = vpack.c.b16 %v61_v6, %v61_v6  ;;  %v191_v18 = vld [vmem:[%s306_s1 + $0x38] sm:$0xf0]  ;;  %v165_v25 = vld [vmem:[%s306_s1] sm:$0xf]  ;;  %v201_v26 = vld [vmem:[%s306_s1 + $0xc] sm:$0xf0] }
   0x5   :  { %v199_v27 = vld [vmem:[%s306_s1 + $0x4] sm:$0xf]  ;;  %v190_v28 = vor.u32 %v206_v16, %v189_v15  ;;  %v194_v29 = vor.u32 %v204_v17, %v191_v18  ;;  %v167_v30 = vld [vmem:[%s306_s1 + $0x10] sm:$0xf0]  ;;  %v173_v31 = vld [vmem:[%s306_s1 + $0x8] sm:$0xf]  ;;  %v166_v36 = vor.u32 %v201_v26, %v165_v25 }
   0x6   :  { %v88_v19 = vsel %vm86_vm0, %v70_v9, 0  ;;  %v91_v20 = vsel %vm86_vm0, %v71_v10, 0  ;;  %v94_v21 = vsel %vm86_vm0, %v72_v11, 0  ;;  %v97_v22 = vsel %vm86_vm0, %v73_v12, 0  ;;  %v26_v32 = vld [vmem:[%s307_s2] sm:$0xff] }
   0x7   :  { %104 = vmatpush.bf16.msra.mxu0 %v88_v19  ;;  %117 = vmatpush.bf16.msra.mxu1 %v91_v20  ;;  %v202_v33 = vld [vmem:[%s306_s1 + $0x14] sm:$0xf0]  ;;  %v200_v34 = vld [vmem:[%s306_s1 + $0xc] sm:$0xf]  ;;  %v175_v35 = vld [vmem:[%s306_s1 + $0x18] sm:$0xf0]  ;;  %v170_v37 = vor.u32 %v199_v27, %v167_v30 }
   0x8   :  { %130 = vmatpush.bf16.msra.mxu2 %v94_v21  ;;  %143 = vmatpush.bf16.msra.mxu3 %v97_v22  ;;  %v174_v38 = vor.u32 %v202_v33, %v173_v31  ;;  %v178_v39 = vor.u32 %v200_v34, %v175_v35  ;;  %v15_v40 = vld [vmem:[%s308_s0] sm:$0xf] }
   0x9   :  { %29 = vperm.xlu0 %208, %v26_v32  }
   0xb   :  { %105 = vmatpush.bf16.msra.mxu0 %v182_v23  ;;  %118 = vmatpush.bf16.msra.mxu1 %v186_v24 }
   0xc   :  { %131 = vmatpush.bf16.msra.mxu2 %v190_v28  ;;  %144 = vmatpush.bf16.msra.mxu3 %v194_v29 }
   0xf   :  { %106 = vmatpush.bf16.msra.mxu0 %v166_v36  ;;  %119 = vmatpush.bf16.msra.mxu1 %v170_v37 }
  0x10   :  { %132 = vmatpush.bf16.msra.mxu2 %v174_v38  ;;  %145 = vmatpush.bf16.msra.mxu3 %v178_v39 }
  0x12   :  { %195 = vmatmul.msk.bf16.vlgmr.msra.gmra.mxu0 %vm82_vm1, %v15_v40  ;;  %196 = vmatmul.msk.bf16.vlgmr.msra.gmra.mxu1 %vm82_vm1, %v15_v40 }
  0x13   :  { %197 = vmatmul.msk.bf16.vlgmr.msra.gmra.mxu2 %vm82_vm1, %v15_v40  ;;  %198 = vmatmul.msk.bf16.vlgmr.msra.gmra.mxu3 %vm82_vm1, %v15_v40 }
  0x7b   :  { %v30_v41 = vpop.permute.xlu0 %29 }
  0x8f   :  { %v108_v42 = vpop.f32.mrf.mxu0  ;;  %v121_v43 = vpop.f32.mrf.mxu1 }
  0x90   :  { %v109_v44 = vadd.f32 %v108_v42, %v30_v41  ;;  %v122_v45 = vadd.f32 %v121_v43, %v30_v41 }
  0x92   :  { %v151_v46 = vmax.f32 %v109_v44, 0.0  ;;  %v152_v47 = vmax.f32 %v122_v45, 0.0 }
  0x94   :  { %155 = vst [vmem:[%s309_s3] sm:$0xff] %v151_v46 }
  0x95   :  { %156 = vst [vmem:[%s309_s3 + $0x8] sm:$0xff] %v152_v47 }
  0x96   :  { %v134_v48 = vpop.f32.mrf.mxu2  ;;  %v147_v49 = vpop.f32.mrf.mxu3 }
  0x97   :  { %v135_v50 = vadd.f32 %v134_v48, %v30_v41  ;;  %v148_v51 = vadd.f32 %v147_v49, %v30_v41  ;;  %v110_v52 = vpop.f32.mrf.mxu0  ;;  %v123_v53 = vpop.f32.mrf.mxu1 }
  0x99   :  { %v153_v54 = vmax.f32 %v135_v50, 0.0  ;;  %v154_v55 = vmax.f32 %v148_v51, 0.0 }
  0x9b   :  { %157 = vst [vmem:[%s309_s3 + $0x10] sm:$0xff] %v153_v54 }
  0x9c   :  { %158 = vst [vmem:[%s309_s3 + $0x18] sm:$0xff] %v154_v55 }
  0x9e   :  { %v136_v56 = vpop.f32.mrf.mxu2  ;;  %v149_v57 = vpop.f32.mrf.mxu3 }

// kernel: gt_forward.19
= control target key start
LH: loop header
LB: loop body
LE: loop exit
PB: predicated region body
PF: predicated region fallthrough
CT: control target
= control target key end

     0   :  { %v308_v2 = vmov 0   ;;  %vm137_vm0 = vcmask 1043456   ;;  %vm133_vm1 = vcmask 588800   ;;  %s470_s1 = inlined_call_operand.vmem [shape: bf16[72,512], index: 1, kind: input, shape index: {}]   ;;  %s471_s2 = inlined_call_operand.vmem [shape: f32[8,1], index: 2, kind: input, shape index: {}]   ;;  %s472_s0 = inlined_call_operand.vmem [shape: bf16[8,72], index: 0, kind: input, shape index: {}]   ;;  %s473_s3 = inlined_call_operand.vmem [shape: f32[8,512], index: 3, kind: input, shape index: {}]   ;;  %s474_s4 = inlined_call_operand.vmem [shape: f32[8,512], index: 4, kind: output, shape index: {}]  }
   0x1   :  { %v35_v0 = vld [vmem:[%s470_s1 + $0x80] sm:$0xff]  ;;  %v36_v1 = vld [vmem:[%s470_s1 + $0x88] sm:$0xff]  ;;  %307 = vset.pattern.permute.xlu0 %v308_v2  ;;  %v304_v8 = vld [vmem:[%s470_s1 + $0x6c] sm:$0xf0] }
   0x2   :  { %v93_v3 = vunpack.c.l.b16 %v35_v0  ;;  %v94_v4 = vunpack.c.h.b16 %v35_v0  ;;  %v95_v5 = vunpack.c.l.b16 %v36_v1  ;;  %v96_v6 = vunpack.c.h.b16 %v36_v1  ;;  %v272_v7 = vld [vmem:[%s470_s1 + $0x60] sm:$0xf]  ;;  %v302_v13 = vld [vmem:[%s470_s1 + $0x64] sm:$0xf]  ;;  %v274_v14 = vld [vmem:[%s470_s1 + $0x70] sm:$0xf0] }
   0x3   :  { %v280_v15 = vld [vmem:[%s470_s1 + $0x68] sm:$0xf]  ;;  %v305_v16 = vld [vmem:[%s470_s1 + $0x74] sm:$0xf0]  ;;  %v303_v17 = vld [vmem:[%s470_s1 + $0x6c] sm:$0xf]  ;;  %v273_v23 = vor.u32 %v304_v8, %v272_v7  ;;  %v277_v24 = vor.u32 %v302_v13, %v274_v14 }
   0x4   :  { %v113_v9 = vpack.c.b16 %v93_v3, %v93_v3  ;;  %v114_v10 = vpack.c.b16 %v94_v4, %v94_v4  ;;  %v115_v11 = vpack.c.b16 %v95_v5, %v95_v5  ;;  %v116_v12 = vpack.c.b16 %v96_v6, %v96_v6  ;;  %v282_v18 = vld [vmem:[%s470_s1 + $0x78] sm:$0xf0]  ;;  %v256_v25 = vld [vmem:[%s470_s1 + $0x40] sm:$0xf]  ;;  %v300_v26 = vld [vmem:[%s470_s1 + $0x4c] sm:$0xf0] }
   0x5   :  { %v281_v27 = vor.u32 %v305_v16, %v280_v15  ;;  %v285_v28 = vor.u32 %v303_v17, %v282_v18  ;;  %v298_v29 = vld [vmem:[%s470_s1 + $0x44] sm:$0xf]  ;;  %v258_v30 = vld [vmem:[%s470_s1 + $0x50] sm:$0xf0]  ;;  %v264_v31 = vld [vmem:[%s470_s1 + $0x48] sm:$0xf]  ;;  %v257_v35 = vor.u32 %v300_v26, %v256_v25 }
   0x6   :  { %v139_v19 = vsel %vm137_vm0, %v113_v9, 0  ;;  %v142_v20 = vsel %vm137_vm0, %v114_v10, 0  ;;  %v145_v21 = vsel %vm137_vm0, %v115_v11, 0  ;;  %v148_v22 = vsel %vm137_vm0, %v116_v12, 0  ;;  %v301_v32 = vld [vmem:[%s470_s1 + $0x54] sm:$0xf0] }
   0x7   :  { %153 = vmatpush.bf16.msra.mxu0 %v139_v19  ;;  %166 = vmatpush.bf16.msra.mxu1 %v142_v20  ;;  %v299_v33 = vld [vmem:[%s470_s1 + $0x4c] sm:$0xf]  ;;  %v266_v34 = vld [vmem:[%s470_s1 + $0x58] sm:$0xf0]  ;;  %v261_v36 = vor.u32 %v298_v29, %v258_v30  ;;  %v240_v37 = vld [vmem:[%s470_s1 + $0x20] sm:$0xf]  ;;  %v265_v40 = vor.u32 %v301_v32, %v264_v31 }
   0x8   :  { %179 = vmatpush.bf16.msra.mxu2 %v145_v21  ;;  %192 = vmatpush.bf16.msra.mxu3 %v148_v22  ;;  %v296_v38 = vld [vmem:[%s470_s1 + $0x2c] sm:$0xf0]  ;;  %v294_v39 = vld [vmem:[%s470_s1 + $0x24] sm:$0xf]  ;;  %v269_v41 = vor.u32 %v299_v33, %v266_v34  ;;  %v242_v42 = vld [vmem:[%s470_s1 + $0x30] sm:$0xf0] }
   0x9   :  { %v248_v43 = vld [vmem:[%s470_s1 + $0x28] sm:$0xf]  ;;  %v297_v44 = vld [vmem:[%s470_s1 + $0x34] sm:$0xf0]  ;;  %v295_v45 = vld [vmem:[%s470_s1 + $0x2c] sm:$0xf]  ;;  %v241_v48 = vor.u32 %v296_v38, %v240_v37  ;;  %v245_v49 = vor.u32 %v294_v39, %v242_v42 }
   0xa   :  { %v250_v46 = vld [vmem:[%s470_s1 + $0x38] sm:$0xf0]  ;;  %v37_v47 = vld [vmem:[%s471_s2] sm:$0xff]  ;;  %v292_v51 = vld [vmem:[%s470_s1 + $0xc] sm:$0xf0]  ;;  %v249_v52 = vor.u32 %v297_v44, %v248_v43 }
   0xb   :  { %154 = vmatpush.bf16.msra.mxu0 %v273_v23  ;;  %167 = vmatpush.bf16.msra.mxu1 %v277_v24  ;;  %v224_v50 = vld [vmem:[%s470_s1] sm:$0xf]  ;;  %v253_v53 = vor.u32 %v295_v45, %v250_v46  ;;  %v290_v54 = vld [vmem:[%s470_s1 + $0x4] sm:$0xf]  ;;  %v226_v55 = vld [vmem:[%s470_s1 + $0x10] sm:$0xf0] }
   0xc   :  { %180 = vmatpush.bf16.msra.mxu2 %v281_v27  ;;  %193 = vmatpush.bf16.msra.mxu3 %v285_v28  ;;  %v232_v56 = vld [vmem:[%s470_s1 + $0x8] sm:$0xf]  ;;  %v293_v57 = vld [vmem:[%s470_s1 + $0x14] sm:$0xf0]  ;;  %v291_v58 = vld [vmem:[%s470_s1 + $0xc] sm:$0xf]  ;;  %v225_v60 = vor.u32 %v292_v51, %v224_v50  ;;  %v229_v61 = vor.u32 %v290_v54, %v226_v55 }
   0xd   :  { %40 = vperm.xlu0 %307, %v37_v47   ;;  %v234_v59 = vld [vmem:[%s470_s1 + $0x18] sm:$0xf0]  ;;  %v233_v62 = vor.u32 %v293_v57, %v232_v56  ;;  %v18_v0 = vld [vmem:[%s472_s0] sm:$0xf]  ;;  %v203_v5 = vld [vmem:[%s473_s3 + $0x8] sm:$0xff] }
   0xe   :  { %v237_v63 = vor.u32 %v291_v58, %v234_v59  ;;  %v202_v4 = vld [vmem:[%s473_s3] sm:$0xff]  ;;  %v204_v13 = vld [vmem:[%s473_s3 + $0x10] sm:$0xff]  ;;  %v205_v15 = vld [vmem:[%s473_s3 + $0x18] sm:$0xff] }
   0xf   :  { %155 = vmatpush.bf16.msra.mxu0 %v257_v35  ;;  %168 = vmatpush.bf16.msra.mxu1 %v261_v36 }
  0x10   :  { %181 = vmatpush.bf16.msra.mxu2 %v265_v40  ;;  %194 = vmatpush.bf16.msra.mxu3 %v269_v41 }
  0x13   :  { %156 = vmatpush.bf16.msra.mxu0 %v241_v48  ;;  %169 = vmatpush.bf16.msra.mxu1 %v245_v49 }
  0x14   :  { %182 = vmatpush.bf16.msra.mxu2 %v249_v52  ;;  %195 = vmatpush.bf16.msra.mxu3 %v253_v53 }
  0x17   :  { %157 = vmatpush.bf16.msra.mxu0 %v225_v60  ;;  %170 = vmatpush.bf16.msra.mxu1 %v229_v61 }
  0x18   :  { %183 = vmatpush.bf16.msra.mxu2 %v233_v62  ;;  %196 = vmatpush.bf16.msra.mxu3 %v237_v63 }
  0x1a   :  { %286 = vmatmul.msk.bf16.vlgmr.msra.gmra.mxu0 %vm133_vm1, %v18_v0  ;;  %287 = vmatmul.msk.bf16.vlgmr.msra.gmra.mxu1 %vm133_vm1, %v18_v0 }
  0x1b   :  { %288 = vmatmul.msk.bf16.vlgmr.msra.gmra.mxu2 %vm133_vm1, %v18_v0  ;;  %289 = vmatmul.msk.bf16.vlgmr.msra.gmra.mxu3 %vm133_vm1, %v18_v0 }
  0x7f   :  { %v41_v1 = vpop.permute.xlu0 %40 }
  0x97   :  { %v159_v2 = vpop.f32.mrf.mxu0  ;;  %v172_v3 = vpop.f32.mrf.mxu1 }
  0x98   :  { %v160_v6 = vadd.f32 %v159_v2, %v41_v1  ;;  %v173_v7 = vadd.f32 %v172_v3, %v41_v1 }
  0x9a   :  { %v206_v8 = vadd.f32 %v202_v4, %v160_v6  ;;  %v207_v9 = vadd.f32 %v203_v5, %v173_v7 }
  0x9c   :  { %v210_v10 = vmax.f32 %v206_v8, 0.0  ;;  %v211_v11 = vmax.f32 %v207_v9, 0.0 }
  0x9e   :  { %214 = vst [vmem:[%s474_s4] sm:$0xff] %v210_v10  ;;  %v185_v12 = vpop.f32.mrf.mxu2  ;;  %v198_v14 = vpop.f32.mrf.mxu3 }
  0x9f   :  { %215 = vst [vmem:[%s474_s4 + $0x8] sm:$0xff] %v211_v11  ;;  %v186_v16 = vadd.f32 %v185_v12, %v41_v1  ;;  %v199_v17 = vadd.f32 %v198_v14, %v41_v1  ;;  %v161_v18 = vpop.f32.mrf.mxu0  ;;  %v174_v19 = vpop.f32.mrf.mxu1 }
  0xa1   :  { %v208_v20 = vadd.f32 %v204_v13, %v186_v16  ;;  %v209_v21 = vadd.f32 %v205_v15, %v199_v17 }
  0xa3   :  { %v212_v22 = vmax.f32 %v208_v20, 0.0  ;;  %v213_v23 = vmax.f32 %v209_v21, 0.0 }
  0xa5   :  { %216 = vst [vmem:[%s474_s4 + $0x10] sm:$0xff] %v212_v22 }
  0xa6   :  { %217 = vst [vmem:[%s474_s4 + $0x18] sm:$0xff] %v213_v23  ;;  %v187_v24 = vpop.f32.mrf.mxu2  ;;  %v200_v25 = vpop.f32.mrf.mxu3 }

// kernel: gt_forward.21
= control target key start
LH: loop header
LB: loop body
LE: loop exit
PB: predicated region body
PF: predicated region fallthrough
CT: control target
= control target key end

     0   :  { %vm39_vm0 = vcmask 1043456   ;;  %v71_v1 = vmov 0   ;;  %vm35_vm1 = vcmask 64512   ;;  %s110_s1 = inlined_call_operand.vmem [shape: bf16[8,128], index: 1, kind: input, shape index: {}]   ;;  %s111_s0 = inlined_call_operand.vmem [shape: bf16[16,8], index: 0, kind: input, shape index: {}]   ;;  %s112_s2 = inlined_call_operand.vmem [shape: f32[16,1], index: 2, kind: input, shape index: {}]   ;;  %s113_s3 = inlined_call_operand.vmem [shape: f32[16,128], index: 3, kind: output, shape index: {}]  }
   0x1   :  { %v17_v0 = vld [vmem:[%s110_s1] sm:$0xf]  ;;  %70 = vset.pattern.permute.xlu0 %v71_v1  ;;  %v19_v5 = vld [vmem:[%s112_s2 + $0x8] sm:$0xff] }
   0x2   :  { %v18_v2 = vld [vmem:[%s112_s2] sm:$0xff]  ;;  %v41_v3 = vsel %vm39_vm0, %v17_v0, 0 }
   0x3   :  { %v68_v4 = vld [vmem:[%s111_s0] sm:$0xff]  ;;  %22 = vperm.xlu0 %70, %v18_v2   ;;  %50 = vmatpush.bf16.msra.mxu0 %v41_v3 }
   0x6   :  { %67 = vmatmul.msk.bf16.vlgmr.msra.gmra.mxu0 %vm35_vm1, %v68_v4 }
   0xb   :  { %27 = vperm.xlu0 %70, %v19_v5  }
  0x75   :  { %v23_v6 = vpop.permute.xlu0 %22 }
  0x7d   :  { %v28_v9 = vpop.permute.xlu0 %27 }
  0x83   :  { %v52_v7 = vpop.f32.mrf.mxu0 }
  0x84   :  { %v53_v8 = vadd.f32 %v52_v7, %v23_v6 }
  0x86   :  { %57 = vst [vmem:[%s113_s3] sm:$0xff] %v53_v8 }
  0x8b   :  { %v54_v10 = vpop.f32.mrf.mxu0 }
  0x8c   :  { %v55_v11 = vadd.f32 %v54_v10, %v28_v9 }
  0x8e   :  { %58 = vst [vmem:[%s113_s3 + $0x8] sm:$0xff] %v55_v11 }

// kernel: gt_forward.20
= control target key start
LH: loop header
LB: loop body
LE: loop exit
PB: predicated region body
PF: predicated region fallthrough
CT: control target
= control target key end

     0   :  { %v128_v1 = vmov 0   ;;  %vm74_vm0 = vcmask 1043456   ;;  %vm70_vm1 = vcmask 588800   ;;  %s179_s1 = inlined_call_operand.vmem [shape: bf16[72,128], index: 1, kind: input, shape index: {}]   ;;  %s180_s2 = inlined_call_operand.vmem [shape: f32[16,1], index: 2, kind: input, shape index: {}]   ;;  %s181_s0 = inlined_call_operand.vmem [shape: bf16[16,72], index: 0, kind: input, shape index: {}]   ;;  %s182_s3 = inlined_call_operand.vmem [shape: f32[16,128], index: 3, kind: output, shape index: {}]  }
   0x1   :  { %v25_v0 = vld [vmem:[%s179_s1 + $0x20] sm:$0xf]  ;;  %127 = vset.pattern.permute.xlu0 %v128_v1  ;;  %v125_v6 = vld [vmem:[%s179_s1 + $0x18] sm:$0xff]  ;;  %v27_v7 = vld [vmem:[%s180_s2 + $0x8] sm:$0xff] }
   0x2   :  { %v60_v2 = vunpack.c.l.b16 %v25_v0  ;;  %v26_v3 = vld [vmem:[%s180_s2] sm:$0xff]  ;;  %v124_v8 = vld [vmem:[%s179_s1 + $0x10] sm:$0xff]  ;;  %v123_v9 = vld [vmem:[%s179_s1 + $0x8] sm:$0xff] }
   0x3   :  { %30 = vperm.xlu0 %127, %v26_v3   ;;  %v122_v10 = vld [vmem:[%s179_s1] sm:$0xff] }
   0x4   :  { %v65_v4 = vpack.c.b16 %v60_v2, %v60_v2  ;;  %v121_v11 = vld [vmem:[%s181_s0] sm:$0xff] }
   0x6   :  { %v76_v5 = vsel %vm74_vm0, %v65_v4, 0 }
   0x7   :  { %81 = vmatpush.bf16.msra.mxu0 %v76_v5 }
   0xb   :  { %82 = vmatpush.bf16.msra.mxu0 %v125_v6  ;;  %35 = vperm.xlu0 %127, %v27_v7  }
   0xf   :  { %83 = vmatpush.bf16.msra.mxu0 %v124_v8 }
  0x13   :  { %84 = vmatpush.bf16.msra.mxu0 %v123_v9 }
  0x17   :  { %85 = vmatpush.bf16.msra.mxu0 %v122_v10 }
  0x1a   :  { %120 = vmatmul.msk.bf16.vlgmr.msra.gmra.mxu0 %vm70_vm1, %v121_v11 }
  0x75   :  { %v31_v12 = vpop.permute.xlu0 %30 }
  0x7d   :  { %v36_v16 = vpop.permute.xlu0 %35 }
  0x97   :  { %v87_v13 = vpop.f32.mrf.mxu0 }
  0x98   :  { %v88_v14 = vadd.f32 %v87_v13, %v31_v12 }
  0x9a   :  { %v92_v15 = vmax.f32 %v88_v14, 0.0 }
  0x9c   :  { %94 = vst [vmem:[%s182_s3] sm:$0xff] %v92_v15 }
  0x9f   :  { %v89_v17 = vpop.f32.mrf.mxu0 }
  0xa0   :  { %v90_v18 = vadd.f32 %v89_v17, %v36_v16 }
  0xa2   :  { %v93_v19 = vmax.f32 %v90_v18, 0.0 }
  0xa4   :  { %95 = vst [vmem:[%s182_s3 + $0x8] sm:$0xff] %v93_v19 }

// kernel: gt_forward.22
= control target key start
LH: loop header
LB: loop body
LE: loop exit
PB: predicated region body
PF: predicated region fallthrough
CT: control target
= control target key end

     0   :  { %v215_v4 = vmov 0   ;;  %vm113_vm0 = vcmask 130048   ;;  %s298_s1 = inlined_call_operand.vmem [shape: bf16[144,128], index: 1, kind: input, shape index: {}]   ;;  %s299_s0 = inlined_call_operand.vmem [shape: bf16[16,144], index: 0, kind: input, shape index: {}]   ;;  %s300_s2 = inlined_call_operand.vmem [shape: f32[16,1], index: 2, kind: input, shape index: {}]   ;;  %s301_s3 = inlined_call_operand.vmem [shape: f32[16,128], index: 3, kind: input, shape index: {}]   ;;  %s302_s4 = inlined_call_operand.vmem [shape: f32[16,128], index: 4, kind: output, shape index: {}]  }
   0x1   :  { %v211_v0 = vld [vmem:[%s298_s1 + $0x38] sm:$0xff]  ;;  %v210_v1 = vld [vmem:[%s298_s1 + $0x30] sm:$0xff]  ;;  %v212_v2 = vld [vmem:[%s298_s1 + $0x40] sm:$0xff]  ;;  %214 = vset.pattern.permute.xlu0 %v215_v4 }
   0x2   :  { %117 = vmatpush.bf16.msra.mxu0 %v211_v0  ;;  %v202_v3 = vld [vmem:[%s299_s0 + $0x4] sm:$0xf]  ;;  %v161_v5 = vld [vmem:[%s299_s0 + $0x8] sm:$0xf0]  ;;  %138 = vmatpush.bf16.msra.mxu1 %v212_v2  ;;  %v207_v11 = vld [vmem:[%s298_s1 + $0x18] sm:$0xff] }
   0x3   :  { %v164_v6 = vor.u32 %v202_v3, %v161_v5  ;;  %v38_v7 = vld [vmem:[%s300_s2] sm:$0xff]  ;;  %v209_v8 = vld [vmem:[%s298_s1 + $0x28] sm:$0xff]  ;;  %v206_v12 = vld [vmem:[%s298_s1 + $0x10] sm:$0xff] }
   0x4   :  { %42 = vperm.xlu0 %214, %v38_v7   ;;  %v208_v9 = vld [vmem:[%s298_s1 + $0x20] sm:$0xff]  ;;  %v39_v10 = vld [vmem:[%s300_s2 + $0x8] sm:$0xff] }
   0x5   :  { %201 = vmatmul.msk.bf16.vlgmr.msra.gmra.mxu1 %vm113_vm0, %v164_v6  ;;  %v205_v13 = vld [vmem:[%s298_s1 + $0x8] sm:$0xff]  ;;  %v204_v14 = vld [vmem:[%s298_s1] sm:$0xff] }
   0x6   :  { %118 = vmatpush.bf16.msra.mxu0 %v210_v1  ;;  %v159_v15 = vld [vmem:[%s299_s0] sm:$0xf]  ;;  %v203_v16 = vld [vmem:[%s299_s0 + $0x4] sm:$0xf0] }
   0x7   :  { %v160_v17 = vor.u32 %v203_v16, %v159_v15  ;;  %v145_v22 = vld [vmem:[%s301_s3] sm:$0xff]  ;;  %v146_v30 = vld [vmem:[%s301_s3 + $0x8] sm:$0xff] }
   0xa   :  { %119 = vmatpush.bf16.msra.mxu0 %v209_v8 }
   0xc   :  { %47 = vperm.xlu0 %214, %v39_v10  }
   0xe   :  { %120 = vmatpush.bf16.msra.mxu0 %v208_v9 }
  0x12   :  { %121 = vmatpush.bf16.msra.mxu0 %v207_v11 }
  0x16   :  { %122 = vmatpush.bf16.msra.mxu0 %v206_v12 }
  0x1a   :  { %123 = vmatpush.bf16.msra.mxu0 %v205_v13 }
  0x1e   :  { %124 = vmatpush.bf16.msra.mxu0 %v204_v14 }
  0x21   :  { %125 = vmatmul.bf16.vlgmr.msra.gmra.mxu0 %v160_v17 }
  0x76   :  { %v43_v18 = vpop.permute.xlu0 %42 }
  0x7e   :  { %v48_v26 = vpop.permute.xlu0 %47 }
  0x82   :  { %v140_v19 = vpop.f32.mrf.mxu1 }
  0x8a   :  { %v142_v29 = vpop.f32.mrf.mxu1 }
  0x9e   :  { %v126_v20 = vpop.f32.mrf.mxu0 }
  0x9f   :  { %v127_v21 = vadd.f32 %v126_v20, %v43_v18 }
  0xa1   :  { %v141_v23 = vadd.f32 %v140_v19, %v127_v21 }
  0xa3   :  { %v147_v24 = vadd.f32 %v145_v22, %v141_v23 }
  0xa5   :  { %v149_v25 = vmax.f32 %v147_v24, 0.0 }
  0xa6   :  { %v128_v27 = vpop.f32.mrf.mxu0 }
  0xa7   :  { %151 = vst [vmem:[%s302_s4] sm:$0xff] %v149_v25  ;;  %v129_v28 = vadd.f32 %v128_v27, %v48_v26 }
  0xa9   :  { %v143_v31 = vadd.f32 %v142_v29, %v129_v28 }
  0xab   :  { %v148_v32 = vadd.f32 %v146_v30, %v143_v31 }
  0xad   :  { %v150_v33 = vmax.f32 %v148_v32, 0.0 }
  0xaf   :  { %152 = vst [vmem:[%s302_s4 + $0x8] sm:$0xff] %v150_v33 }

// kernel: gt_forward.24
= control target key start
LH: loop header
LB: loop body
LE: loop exit
PB: predicated region body
PF: predicated region fallthrough
CT: control target
= control target key end

     0   :  { %vm63_vm0 = vcmask 523264   ;;  %vm224_vm1 = vcmask 27648   ;;  %vm429_vm2 = vcmask 1041408   ;;  %vm425_vm7 = vcmask 31744   ;;  %s879_s1 = inlined_call_operand.vmem [shape: f32[8,4,64], index: 1, kind: input, shape index: {}]   ;;  %s880_s0 = inlined_call_operand.vmem [shape: f32[8,4,64], index: 0, kind: input, shape index: {}]   ;;  %s881_s2 = inlined_call_operand.vmem [shape: f32[8,4,64], index: 2, kind: input, shape index: {}]   ;;  %s882_s3 = inlined_call_operand.vmem [shape: f32[8,4,64], index: 3, kind: output, shape index: {}]  }
   0x1   :  { %v31_v0 = vld [vmem:[%s879_s1] sm:$0xf]  ;;  %v32_v1 = vld [vmem:[%s879_s1 + $0x4] sm:$0xf]  ;;  %v33_v2 = vld [vmem:[%s879_s1 + $0x8] sm:$0xf] }
   0x2   :  { %v39_v3 = vpack.c.bf16 %v31_v0, %v31_v0  ;;  %v40_v4 = vpack.c.bf16 %v32_v1, %v32_v1  ;;  %v41_v5 = vpack.c.bf16 %v33_v2, %v33_v2  ;;  %v34_v6 = vld [vmem:[%s879_s1 + $0xc] sm:$0xf]  ;;  %v15_v8 = vld [vmem:[%s880_s0] sm:$0xf]  ;;  %v16_v9 = vld [vmem:[%s880_s0 + $0x4] sm:$0xf] }
   0x3   :  { %v42_v7 = vpack.c.bf16 %v34_v6, %v34_v6  ;;  %v37_v10 = vld [vmem:[%s879_s1 + $0x18] sm:$0xf]  ;;  %v38_v14 = vld [vmem:[%s879_s1 + $0x1c] sm:$0xf]  ;;  %v36_v18 = vld [vmem:[%s879_s1 + $0x14] sm:$0xf]  ;;  %v23_v26 = vpack.c.bf16 %v15_v8, %v15_v8  ;;  %v24_v27 = vpack.c.bf16 %v16_v9, %v16_v9 }
   0x4   :  { %v68_v11 = vsel %vm63_vm0, %v39_v3, 0  ;;  %v87_v12 = vsel %vm63_vm0, %v40_v4, 0  ;;  %v106_v13 = vsel %vm63_vm0, %v41_v5, 0  ;;  %v45_v16 = vpack.c.bf16 %v37_v10, %v37_v10  ;;  %v35_v19 = vld [vmem:[%s879_s1 + $0x10] sm:$0xf] }
   0x5   :  { %77 = vmatpush.bf16.xpose.msra.mxu0 %v68_v11  ;;  %96 = vmatpush.bf16.xpose.msra.mxu1 %v87_v12  ;;  %v125_v15 = vsel %vm63_vm0, %v42_v7, 0  ;;  %v46_v17 = vpack.c.bf16 %v38_v14, %v38_v14  ;;  %v17_v20 = vld [vmem:[%s880_s0 + $0x8] sm:$0xf]  ;;  %v18_v21 = vld [vmem:[%s880_s0 + $0xc] sm:$0xf]  ;;  %v44_v22 = vpack.c.bf16 %v36_v18, %v36_v18  ;;  %v43_v23 = vpack.c.bf16 %v35_v19, %v35_v19 }
   0x6   :  { %115 = vmatpush.bf16.xpose.msra.mxu2 %v106_v13  ;;  %134 = vmatpush.bf16.xpose.msra.mxu3 %v125_v15  ;;  %v182_v24 = vsel %vm63_vm0, %v45_v16, 0  ;;  %v25_v30 = vpack.c.bf16 %v17_v20, %v17_v20  ;;  %v26_v31 = vpack.c.bf16 %v18_v21, %v18_v21  ;;  %v20_v32 = vld [vmem:[%s880_s0 + $0x14] sm:$0xf]  ;;  %v19_v33 = vld [vmem:[%s880_s0 + $0x10] sm:$0xf] }
   0x7   :  { %v201_v25 = vsel %vm63_vm0, %v46_v17, 0  ;;  %v163_v28 = vsel %vm63_vm0, %v44_v22, 0  ;;  %v144_v29 = vsel %vm63_vm0, %v43_v23, 0  ;;  %v21_v34 = vld [vmem:[%s880_s0 + $0x18] sm:$0xf]  ;;  %v28_v36 = vpack.c.bf16 %v20_v32, %v20_v32 }
   0x8   :  { %v22_v35 = vld [vmem:[%s880_s0 + $0x1c] sm:$0xf]  ;;  %v27_v37 = vpack.c.bf16 %v19_v33, %v19_v33  ;;  %v29_v38 = vpack.c.bf16 %v21_v34, %v21_v34 }
   0x9   :  { %v30_v39 = vpack.c.bf16 %v22_v35, %v22_v35 }
   0xc   :  { %592 = vmatmul.msk.bf16.vlgmr.msra.gmra.mxu0 %vm63_vm0, %v23_v26  ;;  %593 = vmatmul.msk.bf16.vlgmr.msra.gmra.mxu1 %vm63_vm0, %v24_v27 }
   0xd   :  { %172 = vmatpush.bf16.xpose.msrb.mxu1 %v163_v28  ;;  %153 = vmatpush.bf16.xpose.msrb.mxu0 %v144_v29 }
   0xe   :  { %191 = vmatpush.bf16.xpose.msrb.mxu2 %v182_v24  ;;  %210 = vmatpush.bf16.xpose.msrb.mxu3 %v201_v25 }
   0xf   :  { %594 = vmatmul.msk.bf16.vlgmr.msra.gmra.mxu2 %vm63_vm0, %v25_v30  ;;  %595 = vmatmul.msk.bf16.vlgmr.msra.gmra.mxu3 %vm63_vm0, %v26_v31 }
  0x1c   :  { %597 = vmatmul.msk.bf16.vlgmr.msrb.gmra.mxu1 %vm63_vm0, %v28_v36  ;;  %596 = vmatmul.msk.bf16.vlgmr.msrb.gmra.mxu0 %vm63_vm0, %v27_v37 }
  0x1f   :  { %598 = vmatmul.msk.bf16.vlgmr.msrb.gmra.mxu2 %vm63_vm0, %v29_v38  ;;  %599 = vmatmul.msk.bf16.vlgmr.msrb.gmra.mxu3 %vm63_vm0, %v30_v39 }
  0x89   :  { %v79_v40 = vpop.f32.mrf.mxu0  ;;  %v98_v41 = vpop.f32.mrf.mxu1 }
  0x8a   :  { %v216_v42 = vmul.f32 0.125, %v79_v40  ;;  %v217_v44 = vmul.f32 0.125, %v98_v41 }
  0x8c   :  { %v225_v43 = vsel %vm224_vm1, %v216_v42, -inf  ;;  %v228_v50 = vsel %vm224_vm1, %v217_v44, -inf }
  0x8d   :  { %226 = vmax.xlane.f32.xlu1 %v225_v43 }
  0x91   :  { %v100_v48 = vpop.f32.mrf.mxu1  ;;  %v81_v49 = vpop.f32.mrf.mxu0 }
  0x92   :  { %v117_v45 = vpop.f32.mrf.mxu2  ;;  %v136_v46 = vpop.f32.mrf.mxu3  ;;  %v47_v48 = vld [vmem:[%s881_s2] sm:$0xf] }
  0x93   :  { %v218_v47 = vmul.f32 0.125, %v117_v45  ;;  %v219_v52 = vmul.f32 0.125, %v136_v46  ;;  %v55_v49 = vpack.c.bf16 %v47_v48, %v47_v48 }
  0x95   :  { %v231_v51 = vsel %vm224_vm1, %v218_v47, -inf  ;;  %229 = vmax.xlane.f32.xlu1 %v228_v50  ;;  %v234_v56 = vsel %vm224_vm1, %v219_v52, -inf  ;;  %v431_v50 = vsel %vm429_vm2, %v55_v49, 0 }
  0x96   :  { %232 = vmax.xlane.f32.xlu0 %v231_v51  ;;  %440 = vmatpush.bf16.msra.mxu0 %v431_v50  ;;  %v49_v51 = vld [vmem:[%s881_s2 + $0x8] sm:$0xf] }
  0x99   :  { %v174_v55 = vpop.f32.mrf.mxu1  ;;  %v155_v57 = vpop.f32.mrf.mxu0 }
  0x9a   :  { %v119_v53 = vpop.f32.mrf.mxu2  ;;  %v138_v54 = vpop.f32.mrf.mxu3  ;;  %v221_v58 = vmul.f32 0.125, %v174_v55  ;;  %v220_v60 = vmul.f32 0.125, %v155_v57  ;;  %v50_v55 = vld [vmem:[%s881_s2 + $0xc] sm:$0xf]  ;;  %v48_v57 = vld [vmem:[%s881_s2 + $0x4] sm:$0xf] }
  0x9c   :  { %v240_v59 = vsel %vm224_vm1, %v221_v58, -inf  ;;  %v237_v0 = vsel %vm224_vm1, %v220_v60, -inf }
  0x9d   :  { %241 = vmax.xlane.f32.xlu1 %v240_v59 }
  0x9e   :  { %235 = vmax.xlane.f32.xlu0 %v234_v56  ;;  %v58_v56 = vpack.c.bf16 %v50_v55, %v50_v55 }
  0xa0   :  { %v488_v59 = vsel %vm429_vm2, %v58_v56, 0 }
  0xa1   :  { %v157_v1 = vpop.f32.mrf.mxu0  ;;  %v176_v2 = vpop.f32.mrf.mxu1  ;;  %497 = vmatpush.bf16.msra.mxu3 %v488_v59 }
  0xa2   :  { %v193_v61 = vpop.f32.mrf.mxu2  ;;  %v212_v62 = vpop.f32.mrf.mxu3  ;;  %v53_v1 = vld [vmem:[%s881_s2 + $0x18] sm:$0xf]  ;;  %v51_v2 = vld [vmem:[%s881_s2 + $0x10] sm:$0xf] }
  0xa3   :  { %v222_v63 = vmul.f32 0.125, %v193_v61  ;;  %v223_v4 = vmul.f32 0.125, %v212_v62 }
  0xa5   :  { %v243_v3 = vsel %vm224_vm1, %v222_v63, -inf  ;;  %v246_v7 = vsel %vm224_vm1, %v223_v4, -inf }
  0xa6   :  { %244 = vmax.xlane.f32.xlu2 %v243_v3  ;;  %238 = vmax.xlane.f32.xlu0 %v237_v0 }
  0xaa   :  { %v195_v5 = vpop.f32.mrf.mxu2  ;;  %v214_v6 = vpop.f32.mrf.mxu3 }
  0xab   :  { %v59_v5 = vpack.c.bf16 %v51_v2, %v51_v2 }
  0xae   :  { %247 = vmax.xlane.f32.xlu2 %v246_v7 }
 0x100   :  { %v227_v8 = vpop.xlane.xlu1 %226 }
 0x101   :  { %v249_v9 = vsub.f32 %v216_v42, %v227_v8 }
 0x103   :  { %v257_v10 = vmul.f32 1.442695, %v249_v9  ;;  %v507_v9 = vsel %vm429_vm2, %v59_v5, 0 }
 0x104   :  { %516 = vmatpush.bf16.msrb.mxu0 %v507_v9 }
 0x105   :  { %608 = vpow2.f32 %v257_v10 }
 0x108   :  { %v230_v13 = vpop.xlane.xlu1 %229 }
 0x109   :  { %v233_v11 = vpop.xlane.xlu0 %232  ;;  %v250_v15 = vsub.f32 %v217_v44, %v230_v13 }
 0x10a   :  { %v251_v12 = vsub.f32 %v218_v47, %v233_v11 }
 0x10b   :  { %v732_v16 = vpop.eup %608  ;;  %v259_v18 = vmul.f32 1.442695, %v250_v15 }
 0x10c   :  { %v261_v14 = vmul.f32 1.442695, %v251_v12  ;;  %v273_v17 = vsel %vm224_vm1, %v732_v16, 0.0 }
 0x10d   :  { %274 = vadd.xlane.f32.xlu1 %v273_v17 }
 0x10e   :  { %610 = vpow2.f32 %v261_v14 }
 0x10f   :  { %612 = vpow2.f32 %v259_v18 }
 0x110   :  { %v242_v24 = vpop.xlane.xlu1 %241 }
 0x111   :  { %v236_v19 = vpop.xlane.xlu0 %235  ;;  %v254_v31 = vsub.f32 %v221_v58, %v242_v24  ;;  %v56_v58 = vpack.c.bf16 %v48_v57, %v48_v57 }
 0x112   :  { %v252_v20 = vsub.f32 %v219_v52, %v236_v19  ;;  %v57_v52 = vpack.c.bf16 %v49_v51, %v49_v51 }
 0x113   :  { %v267_v36 = vmul.f32 1.442695, %v254_v31 }
 0x114   :  { %v736_v21 = vpop.eup %610  ;;  %v263_v22 = vmul.f32 1.442695, %v252_v20  ;;  %v469_v53 = vsel %vm429_vm2, %v57_v52, 0 }
 0x115   :  { %v279_v23 = vsel %vm224_vm1, %v736_v21, 0.0  ;;  %v740_v27 = vpop.eup %612  ;;  %478 = vmatpush.bf16.msra.mxu2 %v469_v53 }
 0x116   :  { %614 = vpow2.f32 %v263_v22  ;;  %280 = vadd.xlane.f32.xlu2 %v279_v23  ;;  %v276_v34 = vsel %vm224_vm1, %v740_v27, 0.0  ;;  %v54_v23 = vld [vmem:[%s881_s2 + $0x1c] sm:$0xf] }
 0x119   :  { %v245_v25 = vpop.xlane.xlu2 %244  ;;  %v239_v26 = vpop.xlane.xlu0 %238 }
 0x11a   :  { %v255_v28 = vsub.f32 %v222_v63, %v245_v25  ;;  %v253_v29 = vsub.f32 %v220_v60, %v239_v26  ;;  %v450_v60 = vsel %vm429_vm2, %v56_v58, 0  ;;  %v62_v26 = vpack.c.bf16 %v54_v23, %v54_v23 }
 0x11b   :  { %459 = vmatpush.bf16.msra.mxu1 %v450_v60 }
 0x11c   :  { %v742_v30 = vpop.eup %614  ;;  %v269_v32 = vmul.f32 1.442695, %v255_v28  ;;  %v265_v33 = vmul.f32 1.442695, %v253_v29  ;;  %v52_v28 = vld [vmem:[%s881_s2 + $0x14] sm:$0xf] }
 0x11d   :  { %v282_v35 = vsel %vm224_vm1, %v742_v30, 0.0  ;;  %v60_v31 = vpack.c.bf16 %v52_v28, %v52_v28 }
 0x11e   :  { %616 = vpow2.f32 %v269_v32  ;;  %277 = vadd.xlane.f32.xlu2 %v276_v34  ;;  %283 = vadd.xlane.f32.xlu0 %v282_v35 }
 0x11f   :  { %618 = vpow2.f32 %v265_v33  ;;  %v526_v35 = vsel %vm429_vm2, %v60_v31, 0 }
 0x120   :  { %620 = vpow2.f32 %v267_v36  ;;  %535 = vmatpush.bf16.msrb.mxu1 %v526_v35 }
 0x121   :  { %v248_v37 = vpop.xlane.xlu2 %247 }
 0x122   :  { %v256_v38 = vsub.f32 %v223_v4, %v248_v37  ;;  %v61_v4 = vpack.c.bf16 %v53_v1, %v53_v1 }
 0x124   :  { %v748_v39 = vpop.eup %616  ;;  %v271_v40 = vmul.f32 1.442695, %v256_v38  ;;  %v545_v8 = vsel %vm429_vm2, %v61_v4, 0 }
 0x125   :  { %v750_v41 = vpop.eup %618  ;;  %v291_v42 = vsel %vm224_vm1, %v748_v39, 0.0  ;;  %554 = vmatpush.bf16.msrb.mxu2 %v545_v8 }
 0x126   :  { %622 = vpow2.f32 %v271_v40  ;;  %292 = vadd.xlane.f32.xlu0 %v291_v42  ;;  %v285_v43 = vsel %vm224_vm1, %v750_v41, 0.0  ;;  %v756_v44 = vpop.eup %620 }
 0x127   :  { %286 = vadd.xlane.f32.xlu2 %v285_v43  ;;  %v288_v47 = vsel %vm224_vm1, %v756_v44, 0.0 }
 0x12c   :  { %v758_v45 = vpop.eup %622 }
 0x12d   :  { %v294_v46 = vsel %vm224_vm1, %v758_v45, 0.0 }
 0x12e   :  { %295 = vadd.xlane.f32.xlu1 %v294_v46  ;;  %289 = vadd.xlane.f32.xlu0 %v288_v47 }
 0x180   :  { %v275_v54 = vpop.xlane.xlu1 %274 }
 0x181   :  { %624 = vrcp.f32 %v275_v54  ;;  %v308_v3 = vand.u32 2147483648, %v275_v54  ;;  %v306_v7 = vand.u32 2147483647, %v275_v54  ;;  %vm302_vm4 = vweird.f32 %v275_v54 }
 0x183   :  { %v309_v12 = vor.u32 1.1754944e-38, %v308_v3  ;;  %vm307_vm6 = vcmp.eq.f32.partialorder %v306_v7, 8.507059e+37 }
 0x187   :  { %v625_v61 = vpop.eup %624 }
 0x188   :  { %v298_v63 = vmul.f32 %v625_v61, %v275_v54  ;;  %vm303_vm3 = vweird.f32 %v625_v61 }
 0x189   :  { %v281_v62 = vpop.xlane.xlu2 %280  ;;  %vm304_vm5 = vmor %vm302_vm4, %vm303_vm3 }
 0x18a   :  { %626 = vrcp.f32 %v281_v62  ;;  %v299_v0 = vsub.f32 1.0, %v298_v63  ;;  %v338_v22 = vand.u32 2147483648, %v281_v62  ;;  %v336_v25 = vand.u32 2147483647, %v281_v62 }
 0x18b   :  { %vm332_vm9 = vweird.f32 %v281_v62 }
 0x18c   :  { %v300_v6 = vmul.f32 %v625_v61, %v299_v0  ;;  %v339_v34 = vor.u32 1.1754944e-38, %v338_v22  ;;  %vm337_vm11 = vcmp.eq.f32.partialorder %v336_v25, 8.507059e+37 }
 0x18e   :  { %v301_v11 = vadd.f32 %v625_v61, %v300_v6 }
 0x190   :  { %v627_v10 = vpop.eup %626  ;;  %v305_v17 = vsel %vm304_vm5, %v625_v61, %v301_v11 }
 0x191   :  { %v328_v13 = vmul.f32 %v627_v10, %v281_v62  ;;  %v278_v14 = vpop.xlane.xlu2 %277  ;;  %v788_v15 = vpop.xlane.xlu0 %283  ;;  %v310_v18 = vsel %vm307_vm6, %v309_v12, %v305_v17  ;;  %vm333_vm8 = vweird.f32 %v627_v10 }
 0x192   :  { %628 = vrcp.f32 %v278_v14  ;;  %v311_v20 = vmul.f32 %v732_v16, %v310_v18  ;;  %v564_v16 = vsel %vm429_vm2, %v62_v26, 0  ;;  %vm334_vm10 = vmor %vm332_vm9, %vm333_vm8  ;;  %v321_v49 = vand.u32 2147483647, %v278_v14 }
 0x193   :  { %v329_v19 = vsub.f32 1.0, %v328_v13  ;;  %630 = vrcp.f32 %v788_v15  ;;  %573 = vmatpush.bf16.msrb.mxu3 %v564_v16  ;;  %v323_v50 = vand.u32 2147483648, %v278_v14  ;;  %v353_v53 = vand.u32 2147483648, %v788_v15 }
 0x194   :  { %v417_v29 = vpack.c.bf16 %v311_v20, %v311_v20  ;;  %v351_v56 = vand.u32 2147483647, %v788_v15  ;;  %vm317_vm14 = vweird.f32 %v278_v14  ;;  %vm347_vm0 = vweird.f32 %v788_v15 }
 0x195   :  { %v330_v24 = vmul.f32 %v627_v10, %v329_v19  ;;  %v324_v58 = vor.u32 1.1754944e-38, %v323_v50  ;;  %vm322_vm1 = vcmp.eq.f32.partialorder %v321_v49, 8.507059e+37  ;;  %v354_v62 = vor.u32 1.1754944e-38, %v353_v53 }
 0x196   :  { %600 = vmatmul.msk.bf16.vlgmr.msra.gmra.mxu0 %vm425_vm7, %v417_v29  ;;  %vm352_vm3 = vcmp.eq.f32.partialorder %v351_v56, 8.507059e+37 }
 0x197   :  { %v331_v32 = vadd.f32 %v627_v10, %v330_v24 }
 0x198   :  { %v629_v33 = vpop.eup %628 }
 0x199   :  { %v631_v36 = vpop.eup %630  ;;  %v335_v37 = vsel %vm334_vm10, %v627_v10, %v331_v32  ;;  %v313_v38 = vmul.f32 %v629_v33, %v278_v14  ;;  %v801_v40 = vpop.xlane.xlu0 %292  ;;  %vm318_vm12 = vweird.f32 %v629_v33 }
 0x19a   :  { %v340_v42 = vsel %vm337_vm11, %v339_v34, %v335_v37  ;;  %v343_v43 = vmul.f32 %v631_v36, %v788_v15  ;;  %v804_v46 = vpop.xlane.xlu2 %286  ;;  %632 = vrcp.f32 %v801_v40  ;;  %vm348_vm13 = vweird.f32 %v631_v36  ;;  %vm319_vm15 = vmor %vm317_vm14, %vm318_vm12 }
 0x19b   :  { %v341_v47 = vmul.f32 %v736_v21, %v340_v42  ;;  %v314_v48 = vsub.f32 1.0, %v313_v38  ;;  %634 = vrcp.f32 %v804_v46  ;;  %vm349_vm2 = vmor %vm347_vm0, %vm348_vm13  ;;  %v368_v10 = vand.u32 2147483648, %v804_v46 }
 0x19c   :  { %v344_v51 = vsub.f32 1.0, %v343_v43  ;;  %v398_v11 = vand.u32 2147483648, %v801_v40  ;;  %v396_v13 = vand.u32 2147483647, %v801_v40  ;;  %vm392_vm6 = vweird.f32 %v801_v40 }
 0x19d   :  { %v315_v52 = vmul.f32 %v629_v33, %v314_v48  ;;  %v419_v54 = vpack.c.bf16 %v341_v47, %v341_v47  ;;  %vm362_vm8 = vweird.f32 %v804_v46  ;;  %v369_v22 = vor.u32 1.1754944e-38, %v368_v10 }
 0x19e   :  { %v345_v55 = vmul.f32 %v631_v36, %v344_v51  ;;  %v399_v19 = vor.u32 1.1754944e-38, %v398_v11  ;;  %vm397_vm11 = vcmp.eq.f32.partialorder %v396_v13, 8.507059e+37 }
 0x19f   :  { %v316_v57 = vadd.f32 %v629_v33, %v315_v52  ;;  %602 = vmatmul.msk.bf16.vlgmr.msra.gmra.mxu2 %vm425_vm7, %v419_v54 }
 0x1a0   :  { %v633_v21 = vpop.eup %632  ;;  %v346_v59 = vadd.f32 %v631_v36, %v345_v55 }
 0x1a1   :  { %v635_v60 = vpop.eup %634  ;;  %v320_v61 = vsel %vm319_vm15, %v629_v33, %v316_v57  ;;  %v388_v63 = vmul.f32 %v633_v21, %v801_v40  ;;  %v814_v0 = vpop.xlane.xlu1 %295  ;;  %vm393_vm4 = vweird.f32 %v633_v21 }
 0x1a2   :  { %v325_v1 = vsel %vm322_vm1, %v324_v58, %v320_v61  ;;  %v350_v2 = vsel %vm349_vm2, %v631_v36, %v346_v59  ;;  %v358_v3 = vmul.f32 %v635_v60, %v804_v46  ;;  %v817_v4 = vpop.xlane.xlu0 %289  ;;  %636 = vrcp.f32 %v814_v0  ;;  %vm394_vm9 = vmor %vm392_vm6, %vm393_vm4 }
 0x1a3   :  { %v326_v5 = vmul.f32 %v740_v27, %v325_v1  ;;  %v355_v6 = vsel %vm352_vm3, %v354_v62, %v350_v2  ;;  %v389_v7 = vsub.f32 1.0, %v388_v63  ;;  %638 = vrcp.f32 %v817_v4 }
 0x1a4   :  { %v356_v8 = vmul.f32 %v742_v30, %v355_v6  ;;  %v359_v9 = vsub.f32 1.0, %v358_v3  ;;  %vm363_vm5 = vweird.f32 %v635_v60  ;;  %v366_v27 = vand.u32 2147483647, %v804_v46 }
 0x1a5   :  { %v390_v12 = vmul.f32 %v633_v21, %v389_v7  ;;  %v418_v17 = vpack.c.bf16 %v326_v5, %v326_v5  ;;  %vm364_vm10 = vmor %vm362_vm8, %vm363_vm5  ;;  %v411_v34 = vand.u32 2147483647, %v814_v0  ;;  %v413_v35 = vand.u32 2147483648, %v814_v0 }
 0x1a6   :  { %v360_v14 = vmul.f32 %v635_v60, %v359_v9  ;;  %v420_v30 = vpack.c.bf16 %v356_v8, %v356_v8  ;;  %vm367_vm12 = vcmp.eq.f32.partialorder %v366_v27, 8.507059e+37  ;;  %vm407_vm14 = vweird.f32 %v814_v0 }
 0x1a7   :  { %v391_v15 = vadd.f32 %v633_v21, %v390_v12  ;;  %601 = vmatmul.msk.bf16.vlgmr.msra.gmra.mxu1 %vm425_vm7, %v418_v17  ;;  %v383_v42 = vand.u32 2147483648, %v817_v4  ;;  %v381_v43 = vand.u32 2147483647, %v817_v4  ;;  %v414_v46 = vor.u32 1.1754944e-38, %v413_v35 }
 0x1a8   :  { %v361_v18 = vadd.f32 %v635_v60, %v360_v14  ;;  %v637_v20 = vpop.eup %636  ;;  %603 = vmatmul.msk.bf16.vlgmr.msra.gmra.mxu3 %vm425_vm7, %v420_v30  ;;  %vm412_vm1 = vcmp.eq.f32.partialorder %v411_v34, 8.507059e+37  ;;  %vm377_vm2 = vweird.f32 %v817_v4  ;;  %vm579_vm5 = vcmask 519168  }
 0x1a9   :  { %v395_v23 = vsel %vm394_vm9, %v633_v21, %v391_v15  ;;  %v403_v26 = vmul.f32 %v637_v20, %v814_v0  ;;  %v639_v28 = vpop.eup %638  ;;  %vm408_vm13 = vweird.f32 %v637_v20  ;;  %v384_v50 = vor.u32 1.1754944e-38, %v383_v42 }
 0x1aa   :  { %v365_v24 = vsel %vm364_vm10, %v635_v60, %v361_v18  ;;  %v400_v25 = vsel %vm397_vm11, %v399_v19, %v395_v23  ;;  %v373_v33 = vmul.f32 %v639_v28, %v817_v4  ;;  %vm378_vm15 = vweird.f32 %v639_v28  ;;  %vm409_vm0 = vmor %vm407_vm14, %vm408_vm13 }
 0x1ab   :  { %v370_v29 = vsel %vm367_vm12, %v369_v22, %v365_v24  ;;  %v401_v31 = vmul.f32 %v748_v39, %v400_v25  ;;  %v404_v16 = vsub.f32 1.0, %v403_v26  ;;  %vm379_vm3 = vmor %vm377_vm2, %vm378_vm15  ;;  %vm382_vm4 = vcmp.eq.f32.partialorder %v381_v43, 8.507059e+37 }
 0x1ac   :  { %v371_v32 = vmul.f32 %v750_v41, %v370_v29  ;;  %v374_v40 = vsub.f32 1.0, %v373_v33 }
 0x1ad   :  { %v423_v36 = vpack.c.bf16 %v401_v31, %v401_v31  ;;  %v405_v38 = vmul.f32 %v637_v20, %v404_v16 }
 0x1ae   :  { %v421_v37 = vpack.c.bf16 %v371_v32, %v371_v32  ;;  %v375_v41 = vmul.f32 %v639_v28, %v374_v40 }
 0x1af   :  { %606 = vmatmul.msk.bf16.vlgmr.msrb.gmra.mxu2 %vm425_vm7, %v423_v36  ;;  %v406_v39 = vadd.f32 %v637_v20, %v405_v38 }
 0x1b0   :  { %604 = vmatmul.msk.bf16.vlgmr.msrb.gmra.mxu0 %vm425_vm7, %v421_v37  ;;  %v376_v48 = vadd.f32 %v639_v28, %v375_v41 }
 0x1b1   :  { %v410_v47 = vsel %vm409_vm0, %v637_v20, %v406_v39 }
 0x1b2   :  { %v415_v49 = vsel %vm412_vm1, %v414_v46, %v410_v47  ;;  %v380_v52 = vsel %vm379_vm3, %v639_v28, %v376_v48 }
 0x1b3   :  { %v416_v51 = vmul.f32 %v758_v45, %v415_v49  ;;  %v385_v53 = vsel %vm382_vm4, %v384_v50, %v380_v52 }
 0x1b4   :  { %v386_v55 = vmul.f32 %v756_v44, %v385_v53 }
 0x1b5   :  { %v424_v54 = vpack.c.bf16 %v416_v51, %v416_v51 }
 0x1b6   :  { %v422_v56 = vpack.c.bf16 %v386_v55, %v386_v55 }
 0x1b8   :  { %607 = vmatmul.msk.bf16.vlgmr.msrb.gmra.mxu3 %vm425_vm7, %v424_v54  ;;  %605 = vmatmul.msk.bf16.vlgmr.msrb.gmra.mxu1 %vm425_vm7, %v422_v56 }
 0x213   :  { %v442_v57 = vpop.f32.mrf.mxu0 }
 0x214   :  { %580 = vst.msk [vmem:[%s882_s3] sm:$0xf] %vm579_vm5, %v442_v57 }
 0x21b   :  { %v444_v21 = vpop.f32.mrf.mxu0 }
 0x222   :  { %v480_v45 = vpop.f32.mrf.mxu2 }
 0x223   :  { %582 = vst.msk [vmem:[%s882_s3 + $0x8] sm:$0xf] %vm579_vm5, %v480_v45 }
 0x224   :  { %v461_v44 = vpop.f32.mrf.mxu1 }
 0x225   :  { %581 = vst.msk [vmem:[%s882_s3 + $0x4] sm:$0xf] %vm579_vm5, %v461_v44 }
 0x22a   :  { %v482_v58 = vpop.f32.mrf.mxu2 }
 0x22b   :  { %v499_v59 = vpop.f32.mrf.mxu3 }
 0x22c   :  { %583 = vst.msk [vmem:[%s882_s3 + $0xc] sm:$0xf] %vm579_vm5, %v499_v59  ;;  %v463_v61 = vpop.f32.mrf.mxu1 }
 0x22d   :  { %v518_v60 = vpop.f32.mrf.mxu0 }
 0x22e   :  { %584 = vst.msk [vmem:[%s882_s3 + $0x10] sm:$0xf] %vm579_vm5, %v518_v60 }
 0x232   :  { %v556_v62 = vpop.f32.mrf.mxu2 }
 0x233   :  { %586 = vst.msk [vmem:[%s882_s3 + $0x18] sm:$0xf] %vm579_vm5, %v556_v62  ;;  %v501_v63 = vpop.f32.mrf.mxu3 }
 0x235   :  { %v520_v0 = vpop.f32.mrf.mxu0  ;;  %v537_v1 = vpop.f32.mrf.mxu1 }
 0x236   :  { %585 = vst.msk [vmem:[%s882_s3 + $0x14] sm:$0xf] %vm579_vm5, %v537_v1 }
 0x23a   :  { %v558_v2 = vpop.f32.mrf.mxu2 }
 0x23b   :  { %v575_v3 = vpop.f32.mrf.mxu3 }
 0x23c   :  { %587 = vst.msk [vmem:[%s882_s3 + $0x1c] sm:$0xf] %vm579_vm5, %v575_v3 }
 0x23d   :  { %v539_v4 = vpop.f32.mrf.mxu1 }
 0x243   :  { %v577_v5 = vpop.f32.mrf.mxu3 }

// kernel: gt_forward.23
= control target key start
LH: loop header
LB: loop body
LE: loop exit
PB: predicated region body
PF: predicated region fallthrough
CT: control target
= control target key end

     0   :  { %v1313_v3 = vmov 256.0   ;;  %s2001_s0 = inlined_call_operand.vmem [shape: f32[8,256], index: 0, kind: input, shape index: {}]   ;;  %s2002_s3 = inlined_call_operand.vmem [shape: bf16[256,768], index: 3, kind: input, shape index: {}]   ;;  %s2003_s1 = inlined_call_operand.vmem [shape: f32[1,256], index: 1, kind: input, shape index: {}]   ;;  %s2004_s2 = inlined_call_operand.vmem [shape: f32[1,256], index: 2, kind: input, shape index: {}]   ;;  %s2005_s4 = inlined_call_operand.vmem [shape: f32[1,768], index: 4, kind: input, shape index: {}]   ;;  %s2006_s5 = inlined_call_operand.vmem [shape: f32[8,768], index: 5, kind: output, shape index: {}]  }
   0x1   :  { %v1347_v0 = vld [vmem:[%s2001_s0] sm:$0xff]  ;;  %v1352_v1 = vld [vmem:[%s2001_s0 + $0x8] sm:$0xff]  ;;  %1309 = vrcp.f32 %v1313_v3  ;;  %v998_v7 = vld [vmem:[%s2002_s3 + $0x150] sm:$0xf] }
   0x2   :  { %v22_v2 = vadd.f32 %v1352_v1, %v1347_v0  ;;  %v1257_v8 = vld [vmem:[%s2002_s3 + $0x164] sm:$0xf0]  ;;  %v1190_v9 = vld [vmem:[%s2002_s3 + $0x2d0] sm:$0xf]  ;;  %v1254_v12 = vld [vmem:[%s2002_s3 + $0x154] sm:$0xf] }
   0x3   :  { %v999_v10 = vor.u32 %v1257_v8, %v998_v7  ;;  %v1305_v11 = vld [vmem:[%s2002_s3 + $0x2e4] sm:$0xf0]  ;;  %v1000_v13 = vld [vmem:[%s2002_s3 + $0x168] sm:$0xf0]  ;;  %v1302_v16 = vld [vmem:[%s2002_s3 + $0x2d4] sm:$0xf] }
   0x4   :  { %23 = vadd.xlane.f32.xlu0 %v22_v2  ;;  %v1191_v14 = vor.u32 %v1305_v11, %v1190_v9  ;;  %v1003_v15 = vor.u32 %v1254_v12, %v1000_v13  ;;  %v1192_v17 = vld [vmem:[%s2002_s3 + $0x2e8] sm:$0xf0]  ;;  %v974_v18 = vld [vmem:[%s2002_s3 + $0x120] sm:$0xf]  ;;  %v1251_v20 = vld [vmem:[%s2002_s3 + $0x134] sm:$0xf0] }
   0x5   :  { %662 = vmatpush.bf16.msra.mxu0 %v999_v10  ;;  %v1195_v19 = vor.u32 %v1302_v16, %v1192_v17  ;;  %v1166_v21 = vld [vmem:[%s2002_s3 + $0x2a0] sm:$0xf]  ;;  %v1299_v22 = vld [vmem:[%s2002_s3 + $0x2b4] sm:$0xf0]  ;;  %v975_v23 = vor.u32 %v1251_v20, %v974_v18  ;;  %v1248_v25 = vld [vmem:[%s2002_s3 + $0x124] sm:$0xf] }
   0x6   :  { %675 = vmatpush.bf16.msra.mxu1 %v1191_v14  ;;  %688 = vmatpush.bf16.msra.mxu2 %v1003_v15  ;;  %v1167_v24 = vor.u32 %v1299_v22, %v1166_v21  ;;  %v976_v26 = vld [vmem:[%s2002_s3 + $0x138] sm:$0xf0]  ;;  %v1296_v27 = vld [vmem:[%s2002_s3 + $0x2a4] sm:$0xf]  ;;  %v950_v30 = vld [vmem:[%s2002_s3 + $0xf0] sm:$0xf] }
   0x7   :  { %v1356_v4 = vpop.eup %1309  ;;  %701 = vmatpush.bf16.msra.mxu3 %v1195_v19  ;;  %v979_v28 = vor.u32 %v1248_v25, %v976_v26  ;;  %v1168_v29 = vld [vmem:[%s2002_s3 + $0x2b8] sm:$0xf0]  ;;  %v1245_v31 = vld [vmem:[%s2002_s3 + $0x104] sm:$0xf0]  ;;  %v1142_v33 = vld [vmem:[%s2002_s3 + $0x270] sm:$0xf] }
   0x8   :  { %v1359_v5 = vmul.f32 256.0, %v1356_v4  ;;  %v1171_v32 = vor.u32 %v1296_v27, %v1168_v29  ;;  %v1293_v34 = vld [vmem:[%s2002_s3 + $0x284] sm:$0xf0]  ;;  %v1242_v35 = vld [vmem:[%s2002_s3 + $0xf4] sm:$0xf]  ;;  %v951_v36 = vor.u32 %v1245_v31, %v950_v30  ;;  %vm30_vm0 = vweird.f32 %v1356_v4 }
   0x9   :  { %663 = vmatpush.bf16.msra.mxu0 %v975_v23  ;;  %v952_v37 = vld [vmem:[%s2002_s3 + $0x108] sm:$0xf0]  ;;  %v1290_v38 = vld [vmem:[%s2002_s3 + $0x274] sm:$0xf]  ;;  %v1143_v40 = vor.u32 %v1293_v34, %v1142_v33  ;;  %v926_v42 = vld [vmem:[%s2002_s3 + $0xc0] sm:$0xf] }
   0xa   :  { %v27_v6 = vsub.f32 1.0, %v1359_v5  ;;  %v1144_v39 = vld [vmem:[%s2002_s3 + $0x288] sm:$0xf0]  ;;  %676 = vmatpush.bf16.msra.mxu1 %v1167_v24  ;;  %689 = vmatpush.bf16.msra.mxu2 %v979_v28  ;;  %v955_v41 = vor.u32 %v1242_v35, %v952_v37  ;;  %v1239_v43 = vld [vmem:[%s2002_s3 + $0xd4] sm:$0xf0] }
   0xb   :  { %v1118_v44 = vld [vmem:[%s2002_s3 + $0x240] sm:$0xf]  ;;  %702 = vmatpush.bf16.msra.mxu3 %v1171_v32  ;;  %v1147_v45 = vor.u32 %v1290_v38, %v1144_v39  ;;  %v1287_v46 = vld [vmem:[%s2002_s3 + $0x254] sm:$0xf0]  ;;  %v1236_v47 = vld [vmem:[%s2002_s3 + $0xc4] sm:$0xf]  ;;  %v927_v51 = vor.u32 %v1239_v43, %v926_v42 }
   0xc   :  { %v928_v48 = vld [vmem:[%s2002_s3 + $0xd8] sm:$0xf0]  ;;  %v1284_v49 = vld [vmem:[%s2002_s3 + $0x244] sm:$0xf]  ;;  %v1119_v52 = vor.u32 %v1287_v46, %v1118_v44  ;;  %v902_v54 = vld [vmem:[%s2002_s3 + $0x90] sm:$0xf]  ;;  %v28_v57 = vmul.f32 %v1356_v4, %v27_v6 }
   0xd   :  { %v1120_v50 = vld [vmem:[%s2002_s3 + $0x258] sm:$0xf0]  ;;  %664 = vmatpush.bf16.msra.mxu0 %v951_v36  ;;  %v931_v53 = vor.u32 %v1236_v47, %v928_v48  ;;  %v1233_v55 = vld [vmem:[%s2002_s3 + $0xa4] sm:$0xf0]  ;;  %v1094_v56 = vld [vmem:[%s2002_s3 + $0x210] sm:$0xf] }
   0xe   :  { %677 = vmatpush.bf16.msra.mxu1 %v1143_v40  ;;  %690 = vmatpush.bf16.msra.mxu2 %v955_v41  ;;  %v1123_v58 = vor.u32 %v1284_v49, %v1120_v50  ;;  %v1281_v59 = vld [vmem:[%s2002_s3 + $0x224] sm:$0xf0]  ;;  %v1230_v60 = vld [vmem:[%s2002_s3 + $0x94] sm:$0xf]  ;;  %v904_v61 = vld [vmem:[%s2002_s3 + $0xa8] sm:$0xf0]  ;;  %v903_v2 = vor.u32 %v1233_v55, %v902_v54  ;;  %v29_v9 = vadd.f32 %v1356_v4, %v28_v57 }
   0xf   :  { %703 = vmatpush.bf16.msra.mxu3 %v1147_v45  ;;  %v1278_v62 = vld [vmem:[%s2002_s3 + $0x214] sm:$0xf]  ;;  %v1096_v63 = vld [vmem:[%s2002_s3 + $0x228] sm:$0xf0]  ;;  %v1095_v3 = vor.u32 %v1281_v59, %v1094_v56  ;;  %v907_v5 = vor.u32 %v1230_v60, %v904_v61  ;;  %v878_v6 = vld [vmem:[%s2002_s3 + $0x60] sm:$0xf] }
  0x10   :  { %v1227_v7 = vld [vmem:[%s2002_s3 + $0x74] sm:$0xf0]  ;;  %v1070_v8 = vld [vmem:[%s2002_s3 + $0x1e0] sm:$0xf]  ;;  %v1099_v10 = vor.u32 %v1278_v62, %v1096_v63  ;;  %v1224_v12 = vld [vmem:[%s2002_s3 + $0x64] sm:$0xf]  ;;  %v1519_v22 = vsel %vm30_vm0, %v1356_v4, %v29_v9 }
  0x11   :  { %665 = vmatpush.bf16.msra.mxu0 %v927_v51  ;;  %v1275_v11 = vld [vmem:[%s2002_s3 + $0x1f4] sm:$0xf0]  ;;  %v880_v13 = vld [vmem:[%s2002_s3 + $0x78] sm:$0xf0]  ;;  %v1272_v14 = vld [vmem:[%s2002_s3 + $0x1e4] sm:$0xf]  ;;  %v879_v16 = vor.u32 %v1227_v7, %v878_v6 }
  0x12   :  { %678 = vmatpush.bf16.msra.mxu1 %v1119_v52  ;;  %691 = vmatpush.bf16.msra.mxu2 %v931_v53  ;;  %v1072_v15 = vld [vmem:[%s2002_s3 + $0x1f8] sm:$0xf0]  ;;  %v1071_v17 = vor.u32 %v1275_v11, %v1070_v8  ;;  %v883_v18 = vor.u32 %v1224_v12, %v880_v13  ;;  %v854_v19 = vld [vmem:[%s2002_s3 + $0x30] sm:$0xf]  ;;  %v1221_v20 = vld [vmem:[%s2002_s3 + $0x44] sm:$0xf0] }
  0x13   :  { %704 = vmatpush.bf16.msra.mxu3 %v1123_v58  ;;  %v1046_v21 = vld [vmem:[%s2002_s3 + $0x1b0] sm:$0xf]  ;;  %v1075_v23 = vor.u32 %v1272_v14, %v1072_v15  ;;  %v1269_v24 = vld [vmem:[%s2002_s3 + $0x1c4] sm:$0xf0]  ;;  %v1218_v25 = vld [vmem:[%s2002_s3 + $0x34] sm:$0xf]  ;;  %v855_v29 = vor.u32 %v1221_v20, %v854_v19 }
  0x14   :  { %v856_v26 = vld [vmem:[%s2002_s3 + $0x48] sm:$0xf0]  ;;  %v1266_v27 = vld [vmem:[%s2002_s3 + $0x1b4] sm:$0xf]  ;;  %v1047_v31 = vor.u32 %v1269_v24, %v1046_v21  ;;  %v1022_v39 = vld [vmem:[%s2002_s3 + $0x180] sm:$0xf] }
  0x15   :  { %666 = vmatpush.bf16.msra.mxu0 %v903_v2  ;;  %v1048_v4 = vld [vmem:[%s2002_s3 + $0x1c8] sm:$0xf0]  ;;  %v859_v32 = vor.u32 %v1218_v25, %v856_v26  ;;  %v1263_v41 = vld [vmem:[%s2002_s3 + $0x194] sm:$0xf0]  ;;  %v1212_v42 = vld [vmem:[%s2002_s3 + $0x4] sm:$0xf] }
  0x16   :  { %679 = vmatpush.bf16.msra.mxu1 %v1095_v3  ;;  %692 = vmatpush.bf16.msra.mxu2 %v907_v5  ;;  %v1051_v33 = vor.u32 %v1266_v27, %v1048_v4  ;;  %v832_v43 = vld [vmem:[%s2002_s3 + $0x18] sm:$0xf0]  ;;  %v1023_v44 = vor.u32 %v1263_v41, %v1022_v39  ;;  %v1260_v46 = vld [vmem:[%s2002_s3 + $0x184] sm:$0xf]  ;;  %v1006_v48 = vld [vmem:[%s2002_s3 + $0x158] sm:$0xf] }
  0x17   :  { %705 = vmatpush.bf16.msra.mxu3 %v1099_v10  ;;  %v835_v45 = vor.u32 %v1212_v42, %v832_v43  ;;  %v1024_v47 = vld [vmem:[%s2002_s3 + $0x198] sm:$0xf0]  ;;  %v1258_v50 = vld [vmem:[%s2002_s3 + $0x16c] sm:$0xf0]  ;;  %v1198_v51 = vld [vmem:[%s2002_s3 + $0x2d8] sm:$0xf] }
  0x18   :  { %v1027_v49 = vor.u32 %v1260_v46, %v1024_v47  ;;  %v1306_v52 = vld [vmem:[%s2002_s3 + $0x2ec] sm:$0xf0]  ;;  %v1007_v53 = vor.u32 %v1258_v50, %v1006_v48  ;;  %v1255_v55 = vld [vmem:[%s2002_s3 + $0x15c] sm:$0xf]  ;;  %v1008_v56 = vld [vmem:[%s2002_s3 + $0x170] sm:$0xf0] }
  0x19   :  { %667 = vmatpush.bf16.msra.mxu0 %v879_v16  ;;  %v1199_v54 = vor.u32 %v1306_v52, %v1198_v51  ;;  %v1303_v57 = vld [vmem:[%s2002_s3 + $0x2dc] sm:$0xf]  ;;  %v1011_v58 = vor.u32 %v1255_v55, %v1008_v56  ;;  %v1200_v59 = vld [vmem:[%s2002_s3 + $0x2f0] sm:$0xf0]  ;;  %v982_v60 = vld [vmem:[%s2002_s3 + $0x128] sm:$0xf] }
  0x1a   :  { %680 = vmatpush.bf16.msra.mxu1 %v1071_v17  ;;  %693 = vmatpush.bf16.msra.mxu2 %v883_v18  ;;  %v1252_v61 = vld [vmem:[%s2002_s3 + $0x13c] sm:$0xf0]  ;;  %v1203_v62 = vor.u32 %v1303_v57, %v1200_v59  ;;  %v1174_v2 = vld [vmem:[%s2002_s3 + $0x2a8] sm:$0xf]  ;;  %v1249_v5 = vld [vmem:[%s2002_s3 + $0x12c] sm:$0xf] }
  0x1b   :  { %706 = vmatpush.bf16.msra.mxu3 %v1075_v23  ;;  %v983_v63 = vor.u32 %v1252_v61, %v982_v60  ;;  %v1300_v3 = vld [vmem:[%s2002_s3 + $0x2bc] sm:$0xf0]  ;;  %v984_v7 = vld [vmem:[%s2002_s3 + $0x140] sm:$0xf0]  ;;  %v1297_v8 = vld [vmem:[%s2002_s3 + $0x2ac] sm:$0xf] }
  0x1c   :  { %v1175_v6 = vor.u32 %v1300_v3, %v1174_v2  ;;  %v1176_v9 = vld [vmem:[%s2002_s3 + $0x2c0] sm:$0xf0]  ;;  %v987_v10 = vor.u32 %v1249_v5, %v984_v7  ;;  %v958_v12 = vld [vmem:[%s2002_s3 + $0xf8] sm:$0xf]  ;;  %v1246_v13 = vld [vmem:[%s2002_s3 + $0x10c] sm:$0xf0] }
  0x1d   :  { %668 = vmatpush.bf16.msra.mxu0 %v855_v29  ;;  %v1179_v11 = vor.u32 %v1297_v8, %v1176_v9  ;;  %v1150_v14 = vld [vmem:[%s2002_s3 + $0x278] sm:$0xf]  ;;  %v959_v15 = vor.u32 %v1246_v13, %v958_v12  ;;  %v1294_v16 = vld [vmem:[%s2002_s3 + $0x28c] sm:$0xf0]  ;;  %v1243_v17 = vld [vmem:[%s2002_s3 + $0xfc] sm:$0xf] }
  0x1e   :  { %681 = vmatpush.bf16.msra.mxu1 %v1047_v31  ;;  %694 = vmatpush.bf16.msra.mxu2 %v859_v32  ;;  %v960_v18 = vld [vmem:[%s2002_s3 + $0x110] sm:$0xf0]  ;;  %v1151_v19 = vor.u32 %v1294_v16, %v1150_v14  ;;  %v1291_v21 = vld [vmem:[%s2002_s3 + $0x27c] sm:$0xf]  ;;  %v934_v25 = vld [vmem:[%s2002_s3 + $0xc8] sm:$0xf] }
  0x1f   :  { %707 = vmatpush.bf16.msra.mxu3 %v1051_v33  ;;  %v963_v20 = vor.u32 %v1243_v17, %v960_v18  ;;  %v1152_v23 = vld [vmem:[%s2002_s3 + $0x290] sm:$0xf0]  ;;  %v1240_v26 = vld [vmem:[%s2002_s3 + $0xdc] sm:$0xf0]  ;;  %v1126_v27 = vld [vmem:[%s2002_s3 + $0x248] sm:$0xf] }
  0x20   :  { %v1155_v24 = vor.u32 %v1291_v21, %v1152_v23  ;;  %v935_v4 = vor.u32 %v1240_v26, %v934_v25  ;;  %v1237_v29 = vld [vmem:[%s2002_s3 + $0xcc] sm:$0xf]  ;;  %v1231_v41 = vld [vmem:[%s2002_s3 + $0x9c] sm:$0xf]  ;;  %v912_v42 = vld [vmem:[%s2002_s3 + $0xb0] sm:$0xf0] }
  0x21   :  { %v1285_v33 = vld [vmem:[%s2002_s3 + $0x24c] sm:$0xf]  ;;  %v1104_v46 = vld [vmem:[%s2002_s3 + $0x230] sm:$0xf0]  ;;  %v886_v48 = vld [vmem:[%s2002_s3 + $0x68] sm:$0xf] }
  0x22   :  { %682 = vmatpush.bf16.msra.mxu1 %v1023_v44  ;;  %695 = vmatpush.bf16.msra.mxu2 %v835_v45  ;;  %v915_v44 = vor.u32 %v1231_v41, %v912_v42  ;;  %v1279_v45 = vld [vmem:[%s2002_s3 + $0x21c] sm:$0xf]  ;;  %v1078_v50 = vld [vmem:[%s2002_s3 + $0x1e8] sm:$0xf]  ;;  %v1276_v52 = vld [vmem:[%s2002_s3 + $0x1fc] sm:$0xf0] }
  0x23   :  { %708 = vmatpush.bf16.msra.mxu3 %v1027_v49  ;;  %v1107_v47 = vor.u32 %v1279_v45, %v1104_v46  ;;  %v1228_v49 = vld [vmem:[%s2002_s3 + $0x7c] sm:$0xf0]  ;;  %v1079_v55 = vor.u32 %v1276_v52, %v1078_v50  ;;  %v1273_v57 = vld [vmem:[%s2002_s3 + $0x1ec] sm:$0xf]  ;;  %v862_v60 = vld [vmem:[%s2002_s3 + $0x38] sm:$0xf] }
  0x24   :  { %v887_v51 = vor.u32 %v1228_v49, %v886_v48  ;;  %v1222_v61 = vld [vmem:[%s2002_s3 + $0x4c] sm:$0xf0]  ;;  %v1219_v3 = vld [vmem:[%s2002_s3 + $0x3c] sm:$0xf]  ;;  %v864_v5 = vld [vmem:[%s2002_s3 + $0x50] sm:$0xf0] }
  0x25   :  { %v1270_v2 = vld [vmem:[%s2002_s3 + $0x1cc] sm:$0xf0]  ;;  %v867_v7 = vor.u32 %v1219_v3, %v864_v5  ;;  %v1267_v8 = vld [vmem:[%s2002_s3 + $0x1bc] sm:$0xf]  ;;  %v1056_v9 = vld [vmem:[%s2002_s3 + $0x1d0] sm:$0xf0] }
  0x26   :  { %727 = vmatpush.bf16.msrb.mxu1 %v1199_v54  ;;  %740 = vmatpush.bf16.msrb.mxu2 %v1011_v58  ;;  %v888_v54 = vld [vmem:[%s2002_s3 + $0x80] sm:$0xf0]  ;;  %v1216_v12 = vld [vmem:[%s2002_s3 + $0x1c] sm:$0xf0]  ;;  %v1030_v13 = vld [vmem:[%s2002_s3 + $0x188] sm:$0xf] }
  0x27   :  { %753 = vmatpush.bf16.msrb.mxu3 %v1203_v62  ;;  %v1080_v58 = vld [vmem:[%s2002_s3 + $0x200] sm:$0xf0]  ;;  %v1054_v62 = vld [vmem:[%s2002_s3 + $0x1b8] sm:$0xf]  ;;  %v1213_v16 = vld [vmem:[%s2002_s3 + $0xc] sm:$0xf] }
  0x28   :  { %v1083_v59 = vor.u32 %v1273_v57, %v1080_v58  ;;  %v840_v17 = vld [vmem:[%s2002_s3 + $0x20] sm:$0xf0]  ;;  %v1014_v42 = vld [vmem:[%s2002_s3 + $0x160] sm:$0xf]  ;;  %v1208_v49 = vld [vmem:[%s2002_s3 + $0x2f8] sm:$0xf0] }
  0x29   :  { %v1032_v21 = vld [vmem:[%s2002_s3 + $0x1a0] sm:$0xf0]  ;;  %v1182_v58 = vld [vmem:[%s2002_s3 + $0x2b0] sm:$0xf]  ;;  %v966_v5 = vld [vmem:[%s2002_s3 + $0x100] sm:$0xf] }
  0x2a   :  { %728 = vmatpush.bf16.msrb.mxu1 %v1175_v6  ;;  %741 = vmatpush.bf16.msrb.mxu2 %v987_v10  ;;  %v1055_v6 = vor.u32 %v1270_v2, %v1054_v62  ;;  %v1059_v10 = vor.u32 %v1267_v8, %v1056_v9  ;;  %v1304_v48 = vld [vmem:[%s2002_s3 + $0x2e4] sm:$0xf]  ;;  %v1298_v62 = vld [vmem:[%s2002_s3 + $0x2b4] sm:$0xf]  ;;  %v1158_v9 = vld [vmem:[%s2002_s3 + $0x280] sm:$0xf] }
  0x2b   :  { %754 = vmatpush.bf16.msrb.mxu3 %v1179_v11  ;;  %v838_v11 = vld [vmem:[%s2002_s3 + $0x8] sm:$0xf]  ;;  %v1211_v57 = vor.u32 %v1304_v48, %v1208_v49 }
  0x2c   :  { %v839_v14 = vor.u32 %v1216_v12, %v838_v11  ;;  %v1244_v11 = vld [vmem:[%s2002_s3 + $0x104] sm:$0xf]  ;;  %v968_v12 = vld [vmem:[%s2002_s3 + $0x118] sm:$0xf0] }
  0x2e   :  { %729 = vmatpush.bf16.msrb.mxu1 %v1151_v19  ;;  %742 = vmatpush.bf16.msrb.mxu2 %v963_v20  ;;  %v843_v19 = vor.u32 %v1213_v16, %v840_v17  ;;  %v1261_v20 = vld [vmem:[%s2002_s3 + $0x18c] sm:$0xf]  ;;  %v942_v17 = vld [vmem:[%s2002_s3 + $0xd0] sm:$0xf] }
  0x2f   :  { %755 = vmatpush.bf16.msrb.mxu3 %v1155_v24  ;;  %v1035_v24 = vor.u32 %v1261_v20, %v1032_v21  ;;  %v1134_v21 = vld [vmem:[%s2002_s3 + $0x250] sm:$0xf] }
  0x77   :  { %v24_v28 = vpop.xlane.xlu0 %23 }
  0x78   :  { %v32_v30 = vmul.f32 %v1519_v22, %v24_v28  ;;  %v1288_v28 = vld [vmem:[%s2002_s3 + $0x25c] sm:$0xf0] }
  0x79   :  { %v1127_v31 = vor.u32 %v1288_v28, %v1126_v27 }
  0x7a   :  { %v1538_v34 = vsub.f32 %v1347_v0, %v32_v30  ;;  %v1541_v35 = vsub.f32 %v1352_v1, %v32_v30  ;;  %v830_v0 = vld [vmem:[%s2002_s3] sm:$0xf]  ;;  %v1215_v1 = vld [vmem:[%s2002_s3 + $0x14] sm:$0xf0]  ;;  %v936_v30 = vld [vmem:[%s2002_s3 + $0xe0] sm:$0xf0] }
  0x7b   :  { %v831_v40 = vor.u32 %v1215_v1, %v830_v0  ;;  %v939_v32 = vor.u32 %v1237_v29, %v936_v30  ;;  %v1234_v0 = vld [vmem:[%s2002_s3 + $0xac] sm:$0xf0]  ;;  %v1102_v1 = vld [vmem:[%s2002_s3 + $0x218] sm:$0xf]  ;;  %730 = vmatpush.bf16.msrb.mxu1 %v1127_v31  ;;  %v54_v30 = vld [vmem:[%s2003_s1] sm:$0x3] }
  0x7c   :  { %v35_v36 = vmul.f32 %v1538_v34, %v1538_v34  ;;  %v36_v37 = vmul.f32 %v1541_v35, %v1541_v35 }
  0x7d   :  { %669 = vmatpush.bf16.msra.mxu0 %v831_v40  ;;  %v1282_v40 = vld [vmem:[%s2002_s3 + $0x22c] sm:$0xf0]  ;;  %743 = vmatpush.bf16.msrb.mxu2 %v939_v32 }
  0x7e   :  { %v37_v38 = vadd.f32 %v36_v37, %v35_v36  ;;  %v1128_v36 = vld [vmem:[%s2002_s3 + $0x260] sm:$0xf0]  ;;  %v1103_v43 = vor.u32 %v1282_v40, %v1102_v1 }
  0x7f   :  { %v1131_v37 = vor.u32 %v1285_v33, %v1128_v36  ;;  %v56_v33 = vperm.slane %v54_v30, 0  ;;  %v57_v36 = vperm.slane %v54_v30, 1  ;;  %v1235_v30 = vld [vmem:[%s2002_s3 + $0xb4] sm:$0xf0] }
  0x80   :  { %38 = vadd.xlane.f32.xlu0 %v37_v38  ;;  %v910_v38 = vld [vmem:[%s2002_s3 + $0x98] sm:$0xf]  ;;  %731 = vmatpush.bf16.msrb.mxu1 %v1103_v43 }
  0x81   :  { %714 = vmatpush.bf16.msrb.mxu0 %v1007_v53  ;;  %v911_v39 = vor.u32 %v1234_v0, %v910_v38  ;;  %756 = vmatpush.bf16.msrb.mxu3 %v1131_v37  ;;  %v1225_v53 = vld [vmem:[%s2002_s3 + $0x6c] sm:$0xf]  ;;  %v1259_v43 = vld [vmem:[%s2002_s3 + $0x174] sm:$0xf0] }
  0x82   :  { %744 = vmatpush.bf16.msrb.mxu2 %v915_v44  ;;  %v891_v56 = vor.u32 %v1225_v53, %v888_v54  ;;  %v1206_v44 = vld [vmem:[%s2002_s3 + $0x2e0] sm:$0xf]  ;;  %v1015_v52 = vor.u32 %v1259_v43, %v1014_v42  ;;  %v990_v54 = vld [vmem:[%s2002_s3 + $0x130] sm:$0xf] }
  0x84   :  { %732 = vmatpush.bf16.msrb.mxu1 %v1079_v55  ;;  %v1253_v55 = vld [vmem:[%s2002_s3 + $0x144] sm:$0xf0] }
  0x85   :  { %715 = vmatpush.bf16.msrb.mxu0 %v983_v63  ;;  %757 = vmatpush.bf16.msrb.mxu3 %v1107_v47  ;;  %v863_v63 = vor.u32 %v1222_v61, %v862_v60  ;;  %v1016_v47 = vld [vmem:[%s2002_s3 + $0x178] sm:$0xf0]  ;;  %v1250_v60 = vld [vmem:[%s2002_s3 + $0x134] sm:$0xf]  ;;  %v992_v61 = vld [vmem:[%s2002_s3 + $0x148] sm:$0xf0]  ;;  %v991_v2 = vor.u32 %v1253_v55, %v990_v54 }
  0x86   :  { %745 = vmatpush.bf16.msrb.mxu2 %v891_v56 }
  0x88   :  { %733 = vmatpush.bf16.msrb.mxu1 %v1055_v6  ;;  %v1247_v6 = vld [vmem:[%s2002_s3 + $0x114] sm:$0xf0] }
  0x89   :  { %716 = vmatpush.bf16.msrb.mxu0 %v959_v15  ;;  %758 = vmatpush.bf16.msrb.mxu3 %v1083_v59  ;;  %v1264_v15 = vld [vmem:[%s2002_s3 + $0x19c] sm:$0xf0]  ;;  %v1301_v59 = vld [vmem:[%s2002_s3 + $0x2c4] sm:$0xf0] }
  0x8a   :  { %746 = vmatpush.bf16.msrb.mxu2 %v867_v7  ;;  %v1031_v18 = vor.u32 %v1264_v15, %v1030_v13  ;;  %v1183_v3 = vor.u32 %v1301_v59, %v1182_v58  ;;  %v995_v7 = vor.u32 %v1250_v60, %v992_v61  ;;  %v1292_v13 = vld [vmem:[%s2002_s3 + $0x284] sm:$0xf]  ;;  %v967_v15 = vor.u32 %v1247_v6, %v966_v5  ;;  %v872_v59 = vld [vmem:[%s2002_s3 + $0x58] sm:$0xf0] }
  0x8b   :  { %v1220_v58 = vld [vmem:[%s2002_s3 + $0x44] sm:$0xf]  ;;  %v1064_v61 = vld [vmem:[%s2002_s3 + $0x1d8] sm:$0xf0] }
  0x8c   :  { %734 = vmatpush.bf16.msrb.mxu1 %v1031_v18  ;;  %v1241_v18 = vld [vmem:[%s2002_s3 + $0xe4] sm:$0xf0]  ;;  %v1268_v60 = vld [vmem:[%s2002_s3 + $0x1c4] sm:$0xf]  ;;  %v875_v5 = vor.u32 %v1220_v58, %v872_v59 }
  0x8d   :  { %717 = vmatpush.bf16.msrb.mxu0 %v935_v4  ;;  %759 = vmatpush.bf16.msrb.mxu3 %v1059_v10  ;;  %v1295_v10 = vld [vmem:[%s2002_s3 + $0x294] sm:$0xf0]  ;;  %v1067_v6 = vor.u32 %v1268_v60, %v1064_v61 }
  0x8e   :  { %747 = vmatpush.bf16.msrb.mxu2 %v843_v19  ;;  %v1159_v16 = vor.u32 %v1295_v10, %v1158_v9  ;;  %v971_v19 = vor.u32 %v1244_v11, %v968_v12  ;;  %v1214_v9 = vld [vmem:[%s2002_s3 + $0x14] sm:$0xf]  ;;  %v848_v10 = vld [vmem:[%s2002_s3 + $0x28] sm:$0xf0] }
  0x8f   :  { %v1262_v11 = vld [vmem:[%s2002_s3 + $0x194] sm:$0xf]  ;;  %v1040_v12 = vld [vmem:[%s2002_s3 + $0x1a8] sm:$0xf0] }
  0x91   :  { %718 = vmatpush.bf16.msrb.mxu0 %v911_v39  ;;  %760 = vmatpush.bf16.msrb.mxu3 %v1035_v24  ;;  %v1238_v24 = vld [vmem:[%s2002_s3 + $0xd4] sm:$0xf] }
  0x95   :  { %719 = vmatpush.bf16.msrb.mxu0 %v887_v51 }
  0x99   :  { %720 = vmatpush.bf16.msrb.mxu0 %v863_v63  ;;  %v1184_v63 = vld [vmem:[%s2002_s3 + $0x2c8] sm:$0xf0] }
  0x9a   :  { %v1187_v8 = vor.u32 %v1298_v62, %v1184_v63 }
  0x9d   :  { %721 = vmatpush.bf16.msrb.mxu0 %v839_v14  ;;  %v1160_v14 = vld [vmem:[%s2002_s3 + $0x298] sm:$0xf0] }
  0x9e   :  { %v1163_v20 = vor.u32 %v1292_v13, %v1160_v14 }
  0xf3   :  { %v39_v23 = vpop.xlane.xlu0 %38 }
  0xf4   :  { %v40_v25 = vmul.f32 %v39_v23, %v1519_v22  ;;  %v62_v22 = vld [vmem:[%s2004_s2] sm:$0x3]  ;;  %v1289_v23 = vld [vmem:[%s2002_s3 + $0x264] sm:$0xf0] }
  0xf5   :  { %v64_v38 = vperm.slane %v62_v22, 0  ;;  %v65_v0 = vperm.slane %v62_v22, 1 }
  0xf6   :  { %v41_v26 = vadd.f32 1e-05, %v40_v25  ;;  %v944_v25 = vld [vmem:[%s2002_s3 + $0xe8] sm:$0xf0] }
  0xf8   :  { %1311 = vrsqrt.f32 %v41_v26  ;;  %vm48_vm2 = vweird.f32 %v41_v26 }
  0xfe   :  { %v1312_v27 = vpop.eup %1311 }
  0xff   :  { %v43_v4 = vmul.f32 %v1312_v27, %v41_v26  ;;  %vm49_vm1 = vweird.f32 %v1312_v27  ;;  %v1286_v26 = vld [vmem:[%s2002_s3 + $0x254] sm:$0xf] }
 0x100   :  { %vm50_vm3 = vmor %vm48_vm2, %vm49_vm1 }
 0x101   :  { %v44_v28 = vmul.f32 %v1312_v27, %v43_v4  ;;  %v943_v4 = vor.u32 %v1241_v18, %v942_v17  ;;  %v168_v17 = vld [vmem:[%s2005_s4] sm:$0x3f] }
 0x102   :  { %v170_v18 = vperm.slane %v168_v17, 0 }
 0x103   :  { %v45_v29 = vmul.f32 0.5, %v44_v28  ;;  %v1135_v28 = vor.u32 %v1289_v23, %v1134_v21 }
 0x105   :  { %v46_v31 = vsub.f32 1.5, %v45_v29  ;;  %v918_v29 = vld [vmem:[%s2002_s3 + $0xa0] sm:$0xf] }
 0x107   :  { %v47_v32 = vmul.f32 %v1312_v27, %v46_v31  ;;  %v947_v31 = vor.u32 %v1238_v24, %v944_v25  ;;  %v171_v24 = vperm.slane %v168_v17, 1 }
 0x109   :  { %v51_v37 = vsel %vm50_vm3, %v1312_v27, %v47_v32  ;;  %v1136_v27 = vld [vmem:[%s2002_s3 + $0x268] sm:$0xf0]  ;;  %v1110_v32 = vld [vmem:[%s2002_s3 + $0x220] sm:$0xf] }
 0x10a   :  { %v52_v1 = vmul.f32 %v51_v37, %v1538_v34  ;;  %v53_v39 = vmul.f32 %v51_v37, %v1541_v35  ;;  %v1307_v34 = vld [vmem:[%s2002_s3 + $0x2f4] sm:$0xf0]  ;;  %v1256_v35 = vld [vmem:[%s2002_s3 + $0x164] sm:$0xf]  ;;  %v1139_v22 = vor.u32 %v1286_v26, %v1136_v27  ;;  %v920_v37 = vld [vmem:[%s2002_s3 + $0xb8] sm:$0xf0] }
 0x10b   :  { %v1207_v53 = vor.u32 %v1307_v34, %v1206_v44  ;;  %v1019_v56 = vor.u32 %v1256_v35, %v1016_v47  ;;  %v1086_v44 = vld [vmem:[%s2002_s3 + $0x1f0] sm:$0xf]  ;;  %v1277_v34 = vld [vmem:[%s2002_s3 + $0x204] sm:$0xf0]  ;;  %v1226_v35 = vld [vmem:[%s2002_s3 + $0x74] sm:$0xf] }
 0x10c   :  { %v60_v40 = vmul.f32 %v56_v33, %v52_v1  ;;  %v61_v41 = vmul.f32 %v57_v36, %v53_v39  ;;  %v1283_v33 = vld [vmem:[%s2002_s3 + $0x234] sm:$0xf0]  ;;  %v1232_v36 = vld [vmem:[%s2002_s3 + $0xa4] sm:$0xf]  ;;  %v919_v1 = vor.u32 %v1235_v30, %v918_v29  ;;  %v1088_v47 = vld [vmem:[%s2002_s3 + $0x208] sm:$0xf0]  ;;  %v1087_v49 = vor.u32 %v1277_v34, %v1086_v44 }
 0x10d   :  { %v1111_v39 = vor.u32 %v1283_v33, %v1110_v32  ;;  %v923_v42 = vor.u32 %v1232_v36, %v920_v37  ;;  %v173_v36 = vperm.slane %v168_v17, 3 }
 0x10e   :  { %v68_v45 = vadd.f32 %v64_v38, %v60_v40  ;;  %v69_v46 = vadd.f32 %v65_v0, %v61_v41  ;;  %v1280_v38 = vld [vmem:[%s2002_s3 + $0x224] sm:$0xf]  ;;  %v1112_v0 = vld [vmem:[%s2002_s3 + $0x238] sm:$0xf0]  ;;  %v894_v40 = vld [vmem:[%s2002_s3 + $0x70] sm:$0xf] }
 0x10f   :  { %v1229_v41 = vld [vmem:[%s2002_s3 + $0x84] sm:$0xf0]  ;;  %v1115_v43 = vor.u32 %v1280_v38, %v1112_v0 }
 0x110   :  { %v1796_v50 = vpack.c.bf16 %v68_v45, %v68_v45  ;;  %v1798_v51 = vpack.c.bf16 %v69_v46, %v69_v46  ;;  %v896_v45 = vld [vmem:[%s2002_s3 + $0x88] sm:$0xf0]  ;;  %v1274_v46 = vld [vmem:[%s2002_s3 + $0x1f4] sm:$0xf]  ;;  %v895_v48 = vor.u32 %v1229_v41, %v894_v40  ;;  %v174_v41 = vperm.slane %v168_v17, 4 }
 0x111   :  { %v899_v54 = vor.u32 %v1226_v35, %v896_v45  ;;  %v1091_v55 = vor.u32 %v1274_v46, %v1088_v47  ;;  %v175_v46 = vperm.slane %v168_v17, 5 }
 0x112   :  { %670 = vmatmul.bf16.vlgmr.msra.gmra.mxu0 %v1796_v50  ;;  %683 = vmatmul.bf16.vlgmr.msra.gmra.mxu1 %v1798_v51 }
 0x113   :  { %696 = vmatmul.bf16.vlgmr.msra.gmra.mxu2 %v1796_v50  ;;  %709 = vmatmul.bf16.vlgmr.msra.gmra.mxu3 %v1798_v51 }
 0x114   :  { %766 = vmatpush.bf16.msra.mxu0 %v1015_v52  ;;  %779 = vmatpush.bf16.msra.mxu1 %v1207_v53  ;;  %v870_v52 = vld [vmem:[%s2002_s3 + $0x40] sm:$0xf]  ;;  %v1223_v53 = vld [vmem:[%s2002_s3 + $0x54] sm:$0xf0] }
 0x115   :  { %792 = vmatpush.bf16.msra.mxu2 %v1019_v56  ;;  %805 = vmatpush.bf16.msra.mxu3 %v1211_v57  ;;  %v1062_v56 = vld [vmem:[%s2002_s3 + $0x1c0] sm:$0xf]  ;;  %v1271_v57 = vld [vmem:[%s2002_s3 + $0x1d4] sm:$0xf0]  ;;  %v871_v62 = vor.u32 %v1223_v53, %v870_v52 }
 0x116   :  { %v1063_v63 = vor.u32 %v1271_v57, %v1062_v56 }
 0x118   :  { %767 = vmatpush.bf16.msra.mxu0 %v991_v2  ;;  %780 = vmatpush.bf16.msra.mxu1 %v1183_v3  ;;  %v846_v2 = vld [vmem:[%s2002_s3 + $0x10] sm:$0xf]  ;;  %v1217_v3 = vld [vmem:[%s2002_s3 + $0x24] sm:$0xf0] }
 0x119   :  { %793 = vmatpush.bf16.msra.mxu2 %v995_v7  ;;  %806 = vmatpush.bf16.msra.mxu3 %v1187_v8  ;;  %v1038_v7 = vld [vmem:[%s2002_s3 + $0x190] sm:$0xf]  ;;  %v1265_v8 = vld [vmem:[%s2002_s3 + $0x1a4] sm:$0xf0]  ;;  %v847_v13 = vor.u32 %v1217_v3, %v846_v2 }
 0x11a   :  { %v1039_v14 = vor.u32 %v1265_v8, %v1038_v7 }
 0x11c   :  { %768 = vmatpush.bf16.msra.mxu0 %v967_v15  ;;  %781 = vmatpush.bf16.msra.mxu1 %v1159_v16  ;;  %v851_v15 = vor.u32 %v1214_v9, %v848_v10  ;;  %v1043_v16 = vor.u32 %v1262_v11, %v1040_v12 }
 0x11d   :  { %794 = vmatpush.bf16.msra.mxu2 %v971_v19  ;;  %807 = vmatpush.bf16.msra.mxu3 %v1163_v20 }
 0x120   :  { %769 = vmatpush.bf16.msra.mxu0 %v943_v4  ;;  %782 = vmatpush.bf16.msra.mxu1 %v1135_v28  ;;  %v172_v28 = vperm.slane %v168_v17, 2 }
 0x121   :  { %795 = vmatpush.bf16.msra.mxu2 %v947_v31  ;;  %808 = vmatpush.bf16.msra.mxu3 %v1139_v22 }
 0x122   :  { %722 = vmatmul.bf16.vlgmr.msrb.gmra.mxu0 %v1796_v50  ;;  %735 = vmatmul.bf16.vlgmr.msrb.gmra.mxu1 %v1798_v51 }
 0x123   :  { %748 = vmatmul.bf16.vlgmr.msrb.gmra.mxu2 %v1796_v50  ;;  %761 = vmatmul.bf16.vlgmr.msrb.gmra.mxu3 %v1798_v51 }
 0x124   :  { %770 = vmatpush.bf16.msra.mxu0 %v919_v1  ;;  %783 = vmatpush.bf16.msra.mxu1 %v1111_v39 }
 0x125   :  { %796 = vmatpush.bf16.msra.mxu2 %v923_v42  ;;  %809 = vmatpush.bf16.msra.mxu3 %v1115_v43 }
 0x128   :  { %771 = vmatpush.bf16.msra.mxu0 %v895_v48  ;;  %784 = vmatpush.bf16.msra.mxu1 %v1087_v49 }
 0x129   :  { %797 = vmatpush.bf16.msra.mxu2 %v899_v54  ;;  %810 = vmatpush.bf16.msra.mxu3 %v1091_v55 }
 0x12c   :  { %772 = vmatpush.bf16.msra.mxu0 %v871_v62  ;;  %785 = vmatpush.bf16.msra.mxu1 %v1063_v63 }
 0x12d   :  { %798 = vmatpush.bf16.msra.mxu2 %v875_v5  ;;  %811 = vmatpush.bf16.msra.mxu3 %v1067_v6 }
 0x130   :  { %773 = vmatpush.bf16.msra.mxu0 %v847_v13  ;;  %786 = vmatpush.bf16.msra.mxu1 %v1039_v14 }
 0x131   :  { %799 = vmatpush.bf16.msra.mxu2 %v851_v15  ;;  %812 = vmatpush.bf16.msra.mxu3 %v1043_v16 }
 0x133   :  { %774 = vmatmul.bf16.vlgmr.msra.gmra.mxu0 %v1796_v50  ;;  %787 = vmatmul.bf16.vlgmr.msra.gmra.mxu1 %v1798_v51 }
 0x134   :  { %800 = vmatmul.bf16.vlgmr.msra.gmra.mxu2 %v1796_v50  ;;  %813 = vmatmul.bf16.vlgmr.msra.gmra.mxu3 %v1798_v51 }
 0x18f   :  { %v671_v19 = vpop.f32.mrf.mxu0  ;;  %v684_v20 = vpop.f32.mrf.mxu1 }
 0x190   :  { %v672_v21 = vadd.f32 %v671_v19, %v170_v18 }
 0x192   :  { %v685_v23 = vadd.f32 %v684_v20, %v672_v21 }
 0x194   :  { %818 = vst [vmem:[%s2006_s5] sm:$0xff] %v685_v23 }
 0x196   :  { %v697_v25 = vpop.f32.mrf.mxu2  ;;  %v710_v26 = vpop.f32.mrf.mxu3 }
 0x197   :  { %v698_v27 = vadd.f32 %v697_v25, %v171_v24  ;;  %v673_v50 = vpop.f32.mrf.mxu0  ;;  %v686_v4 = vpop.f32.mrf.mxu1 }
 0x199   :  { %v711_v51 = vadd.f32 %v710_v26, %v698_v27 }
 0x19b   :  { %819 = vst [vmem:[%s2006_s5 + $0x8] sm:$0xff] %v711_v51 }
 0x19e   :  { %v699_v29 = vpop.f32.mrf.mxu2  ;;  %v712_v30 = vpop.f32.mrf.mxu3 }
 0x19f   :  { %v723_v31 = vpop.f32.mrf.mxu0  ;;  %v736_v22 = vpop.f32.mrf.mxu1 }
 0x1a0   :  { %v724_v32 = vadd.f32 %v723_v31, %v172_v28 }
 0x1a2   :  { %v737_v33 = vadd.f32 %v736_v22, %v724_v32 }
 0x1a4   :  { %820 = vst [vmem:[%s2006_s5 + $0x10] sm:$0xff] %v737_v33 }
 0x1a6   :  { %v749_v37 = vpop.f32.mrf.mxu2  ;;  %v762_v38 = vpop.f32.mrf.mxu3 }
 0x1a7   :  { %v750_v0 = vadd.f32 %v749_v37, %v173_v36  ;;  %v725_v1 = vpop.f32.mrf.mxu0  ;;  %v738_v39 = vpop.f32.mrf.mxu1 }
 0x1a9   :  { %v763_v40 = vadd.f32 %v762_v38, %v750_v0 }
 0x1ab   :  { %821 = vst [vmem:[%s2006_s5 + $0x18] sm:$0xff] %v763_v40 }
 0x1ae   :  { %v751_v42 = vpop.f32.mrf.mxu2  ;;  %v764_v43 = vpop.f32.mrf.mxu3 }
 0x1b0   :  { %v775_v44 = vpop.f32.mrf.mxu0  ;;  %v788_v34 = vpop.f32.mrf.mxu1 }
 0x1b1   :  { %v776_v35 = vadd.f32 %v775_v44, %v174_v41 }
 0x1b3   :  { %v789_v45 = vadd.f32 %v788_v34, %v776_v35 }
 0x1b5   :  { %822 = vst [vmem:[%s2006_s5 + $0x20] sm:$0xff] %v789_v45 }
 0x1b7   :  { %v801_v47 = vpop.f32.mrf.mxu2  ;;  %v814_v48 = vpop.f32.mrf.mxu3 }
 0x1b8   :  { %v802_v49 = vadd.f32 %v801_v47, %v175_v46  ;;  %v777_v52 = vpop.f32.mrf.mxu0  ;;  %v790_v53 = vpop.f32.mrf.mxu1 }
 0x1ba   :  { %v815_v54 = vadd.f32 %v814_v48, %v802_v49 }
 0x1bc   :  { %823 = vst [vmem:[%s2006_s5 + $0x28] sm:$0xff] %v815_v54 }
 0x1bf   :  { %v803_v55 = vpop.f32.mrf.mxu2  ;;  %v816_v56 = vpop.f32.mrf.mxu3 }

// kernel: gt_forward.29
= control target key start
LH: loop header
LB: loop body
LE: loop exit
PB: predicated region body
PF: predicated region fallthrough
CT: control target
= control target key end

     0   :  { %v368_v2 = vmov 4.0   ;;  %s446_s0 = inlined_call_operand.vmem [shape: f32[2,4,256], index: 0, kind: input, shape index: {}]   ;;  %s447_s1 = inlined_call_operand.vmem [shape: bf16[256,8], index: 1, kind: input, shape index: {}]   ;;  %s448_s2 = inlined_call_operand.hbm [shape: f32[2,8], index: 2, kind: output, shape index: {}]  }
   0x1   :  { %v329_v0 = vld [vmem:[%s447_s1 + $0x38] sm:$0xff]  ;;  %340 = vrcp.f32 %v368_v2  ;;  %v328_v3 = vld [vmem:[%s447_s1 + $0x30] sm:$0xff]  ;;  %v12_v5 = vld [vmem:[%s446_s0] sm:$0xff] }
   0x2   :  { %v337_v1 = vld [vmem:[%s447_s1 + $0x78] sm:$0xff]  ;;  %214 = vmatpush.bf16.msra.mxu0 %v329_v0  ;;  %v336_v4 = vld [vmem:[%s447_s1 + $0x70] sm:$0xff]  ;;  %v13_v6 = vld [vmem:[%s446_s0 + $0x8] sm:$0xff]  ;;  %16 = vst [vmem:[#allocation1] ss:$2 sm:$0xff] %v12_v5 }
   0x3   :  { %227 = vmatpush.bf16.msra.mxu1 %v337_v1  ;;  %v327_v7 = vld [vmem:[%s447_s1 + $0x28] sm:$0xff] }
   0x4   :  { %v335_v8 = vld [vmem:[%s447_s1 + $0x68] sm:$0xff] }
   0x6   :  { %215 = vmatpush.bf16.msra.mxu0 %v328_v3 }
   0x7   :  { %228 = vmatpush.bf16.msra.mxu1 %v336_v4 }
   0x8   :  { %7 = vsyncpa [#allocation3], 0  ;;  %v341_v9 = vpop.eup %340  ;;  %20 = vst [vmem:[#allocation1 + $0x10] ss:$2 sm:$0xff] %v13_v6  ;;  %v326_v11 = vld [vmem:[%s447_s1 + $0x20] sm:$0xff]  ;;  %vm27_vm0 = vcmask 1043456  }
   0x9   :  { %v57_v10 = vmul.f32 4.0, %v341_v9  ;;  %v334_v12 = vld [vmem:[%s447_s1 + $0x60] sm:$0xff]  ;;  %v325_v13 = vld [vmem:[%s447_s1 + $0x18] sm:$0xff]  ;;  %v18_v16 = vld.sshfl [vmem:[#allocation1 + $0x8] sm:$0xff pattern:$0x75316420]  ;;  %vm61_vm1 = vweird.f32 %v341_v9 }
   0xa   :  { %216 = vmatpush.bf16.msra.mxu0 %v327_v7  ;;  %v17_v15 = vld.sshfl [vmem:[#allocation1] sm:$0xff pattern:$0x75316420]  ;;  %v333_v17 = vld [vmem:[%s447_s1 + $0x58] sm:$0xff]  ;;  %v35_v20 = vsel %vm27_vm0, %v18_v16, 0.0  ;;  %v324_v31 = vld [vmem:[%s447_s1 + $0x10] sm:$0xff] }
   0xb   :  { %229 = vmatpush.bf16.msra.mxu1 %v335_v8  ;;  %v58_v14 = vsub.f32 1.0, %v57_v10  ;;  %v28_v19 = vsel %vm27_vm0, %v17_v15, 0.0  ;;  %v36_v24 = vrot.slane %v35_v20, 4  ;;  %v332_v32 = vld [vmem:[%s447_s1 + $0x50] sm:$0xff]  ;;  %v323_v42 = vld [vmem:[%s447_s1 + $0x8] sm:$0xff]  ;;  %v322_v53 = vld [vmem:[%s447_s1] sm:$0xff] }
   0xc   :  { %v29_v21 = vrot.slane %v28_v19, 4  ;;  %v331_v43 = vld [vmem:[%s447_s1 + $0x48] sm:$0xff]  ;;  %v330_v54 = vld [vmem:[%s447_s1 + $0x40] sm:$0xff]  ;;  %vm111_vm2 = vcmask 1041409   ;;  %s369_s1 = smov [#allocation2]   ;;  %s249_s19 = sshll.u32 %s448_s2, 4  ;;  %s250_s19 = int_to_ptr.hbm [resolvable:$true] %s249_s19 }
   0xd   :  { %v59_v26 = vmul.f32 %v341_v9, %v58_v14  ;;  %v37_v29 = vadd.f32 %v36_v24, %v35_v20  ;;  %s247_s16 = sshll.u32 %s369_s1, 4  ;;  %vm240_vm3 = vcmask 58368   ;;  %s248_s16 = int_to_ptr.vmem [resolvable:$true] %s247_s16 }
   0xe   :  { %217 = vmatpush.bf16.msra.mxu0 %v326_v11  ;;  %v30_v28 = vadd.f32 %v29_v21, %v28_v19 }
   0xf   :  { %230 = vmatpush.bf16.msra.mxu1 %v334_v12  ;;  %v21_v18 = vld.sshfl [vmem:[#allocation1 + $0x10] sm:$0xff pattern:$0x75316420]  ;;  %v22_v23 = vld.sshfl [vmem:[#allocation1 + $0x18] sm:$0xff pattern:$0x75316420]  ;;  %v60_v38 = vadd.f32 %v341_v9, %v59_v26 }
  0x10   :  { %v42_v22 = vsel %vm27_vm0, %v21_v18, 0.0  ;;  %v49_v27 = vsel %vm27_vm0, %v22_v23, 0.0  ;;  %v31_v34 = vrot.slane %v30_v28, 2  ;;  %v38_v35 = vrot.slane %v37_v29, 2 }
  0x11   :  { %v43_v25 = vrot.slane %v42_v22, 4  ;;  %v50_v30 = vrot.slane %v49_v27, 4  ;;  %v62_v49 = vsel %vm61_vm1, %v341_v9, %v60_v38 }
  0x12   :  { %218 = vmatpush.bf16.msra.mxu0 %v325_v13  ;;  %v32_v39 = vadd.f32 %v31_v34, %v30_v28  ;;  %v39_v40 = vadd.f32 %v38_v35, %v37_v29 }
  0x13   :  { %231 = vmatpush.bf16.msra.mxu1 %v333_v17  ;;  %v44_v33 = vadd.f32 %v43_v25, %v42_v22  ;;  %v51_v36 = vadd.f32 %v50_v30, %v49_v27 }
  0x14   :  { %v33_v45 = vrot.slane %v32_v39, 1  ;;  %v40_v46 = vrot.slane %v39_v40, 1 }
  0x15   :  { %v45_v37 = vrot.slane %v44_v33, 2  ;;  %v52_v41 = vrot.slane %v51_v36, 2 }
  0x16   :  { %219 = vmatpush.bf16.msra.mxu0 %v324_v31  ;;  %v34_v50 = vadd.f32 %v33_v45, %v32_v39  ;;  %v41_v51 = vadd.f32 %v40_v46, %v39_v40 }
  0x17   :  { %232 = vmatpush.bf16.msra.mxu1 %v332_v32  ;;  %v46_v44 = vadd.f32 %v45_v37, %v44_v33  ;;  %v53_v47 = vadd.f32 %v52_v41, %v51_v36 }
  0x18   :  { %v63_v56 = vmul.f32 %v62_v49, %v34_v50  ;;  %v64_v58 = vmul.f32 %v62_v49, %v41_v51 }
  0x19   :  { %v47_v48 = vrot.slane %v46_v44, 1  ;;  %v54_v52 = vrot.slane %v53_v47, 1 }
  0x1a   :  { %220 = vmatpush.bf16.msra.mxu0 %v323_v42  ;;  %v67_v60 = vpack.c.bf16 %v63_v56, %v63_v56  ;;  %v68_v62 = vpack.c.bf16 %v64_v58, %v64_v58 }
  0x1b   :  { %233 = vmatpush.bf16.msra.mxu1 %v331_v43  ;;  %v48_v55 = vadd.f32 %v47_v48, %v46_v44  ;;  %v55_v57 = vadd.f32 %v54_v52, %v53_v47 }
  0x1c   :  { %v107_v0 = vunpack.c.l.b16 %v67_v60  ;;  %v108_v2 = vunpack.c.l.b16 %v68_v62 }
  0x1d   :  { %v65_v59 = vmul.f32 %v62_v49, %v48_v55  ;;  %v66_v61 = vmul.f32 %v62_v49, %v55_v57 }
  0x1e   :  { %221 = vmatpush.bf16.msra.mxu0 %v322_v53 }
  0x1f   :  { %234 = vmatpush.bf16.msra.mxu1 %v330_v54  ;;  %v69_v63 = vpack.c.bf16 %v65_v59, %v65_v59  ;;  %v70_v1 = vpack.c.bf16 %v66_v61, %v66_v61 }
  0x21   :  { %v109_v3 = vunpack.c.l.b16 %v69_v63  ;;  %v110_v4 = vunpack.c.l.b16 %v70_v1 }
  0x23   :  { %v112_v5 = vsel %vm111_vm2, %v109_v3, %v107_v0  ;;  %v113_v7 = vsel %vm111_vm2, %v110_v4, %v108_v2 }
  0x24   :  { %v114_v6 = vpack.c.b16 %v112_v5, %v112_v5  ;;  %v115_v8 = vpack.c.b16 %v113_v7, %v113_v7 }
  0x26   :  { %222 = vmatmul.bf16.vlgmr.msra.gmra.mxu0 %v114_v6  ;;  %235 = vmatmul.bf16.vlgmr.msra.gmra.mxu1 %v115_v8 }
  0xa3   :  { %v223_v9 = vpop.f32.mrf.mxu0  ;;  %v236_v10 = vpop.f32.mrf.mxu1 }
  0xa4   :  { %v237_v11 = vadd.f32 %v236_v10, %v223_v9 }
  0xa6   :  { %241 = vst.msk [vmem:[#allocation2] sm:$0x3] %vm240_vm3, %v237_v11 }
  0xa7   :  { %252 = dma.vmem_to_hbm [thread:$0]  %s248_s16, 32, %s250_s19, [#allocation3]  }
  0xab   :  { %v225_v12 = vpop.f32.mrf.mxu0  ;;  %v238_v13 = vpop.f32.mrf.mxu1 }
  0xac   :  { %366 = dma.done.wait [#allocation3], 32  }
  0xad   :  { %367 = vsyncadd [#allocation3], 4294967264 }
  0xae   :  { %257 = vsyncpa [#allocation3], 1 }

// kernel: gt_forward.25
= control target key start
LH: loop header
LB: loop body
LE: loop exit
PB: predicated region body
PF: predicated region fallthrough
CT: control target
= control target key end

     0   :  { %vm560_vm4 = vcmask 523264   ;;  %s1283_s2 = inlined_call_operand.vmem [shape: bf16[256,256], index: 2, kind: input, shape index: {}]   ;;  %s1284_s0 = inlined_call_operand.vmem [shape: f32[8,256], index: 0, kind: input, shape index: {}]   ;;  %s1285_s3 = inlined_call_operand.vmem [shape: f32[1,256], index: 3, kind: input, shape index: {}, may-alias: {3,5,9}]   ;;  %s1286_s1 = inlined_call_operand.vmem [shape: f32[8,256], index: 1, kind: input, shape index: {}]   ;;  %s1287_s6 = inlined_call_operand.vmem [shape: bf16[256,64], index: 6, kind: input, shape index: {}]   ;;  %s1288_s7 = inlined_call_operand.vmem [shape: f32[1,64], index: 7, kind: input, shape index: {}]   ;;  %s1289_s8 = inlined_call_operand.vmem [shape: bf16[64,256], index: 8, kind: input, shape index: {}]   ;;  %s1290_s4 = inlined_call_operand.vmem [shape: f32[1,256], index: 4, kind: input, shape index: {}]   ;;  %s1291_s5 = inlined_call_operand.vmem [shape: f32[1,256], index: 5, kind: input, shape index: {}, may-alias: {3,5,9}]   ;;  %s1292_s9 = inlined_call_operand.vmem [shape: f32[1,256], index: 9, kind: input, shape index: {}, may-alias: {3,5,9}]   ;;  %s1293_s10 = inlined_call_operand.vmem [shape: f32[8,256], index: 10, kind: output, shape index: {}]  }
   0x1   :  { %v656_v0 = vld [vmem:[%s1283_s2 + $0x70] sm:$0xf]  ;;  %v839_v1 = vld [vmem:[%s1283_s2 + $0x74] sm:$0xf0]  ;;  %v838_v5 = vld [vmem:[%s1283_s2 + $0x74] sm:$0xf] }
   0x2   :  { %v720_v2 = vld [vmem:[%s1283_s2 + $0xf0] sm:$0xf]  ;;  %v657_v3 = vor.u32 %v839_v1, %v656_v0  ;;  %v855_v4 = vld [vmem:[%s1283_s2 + $0xf4] sm:$0xf0]  ;;  %v658_v6 = vld [vmem:[%s1283_s2 + $0x78] sm:$0xf0] }
   0x3   :  { %v721_v7 = vor.u32 %v855_v4, %v720_v2  ;;  %v661_v8 = vor.u32 %v838_v5, %v658_v6  ;;  %v854_v9 = vld [vmem:[%s1283_s2 + $0xf4] sm:$0xf]  ;;  %v722_v10 = vld [vmem:[%s1283_s2 + $0xf8] sm:$0xf0]  ;;  %v648_v11 = vld [vmem:[%s1283_s2 + $0x60] sm:$0xf] }
   0x4   :  { %242 = vmatpush.bf16.msra.mxu0 %v657_v3  ;;  %v725_v12 = vor.u32 %v854_v9, %v722_v10  ;;  %v837_v13 = vld [vmem:[%s1283_s2 + $0x64] sm:$0xf0]  ;;  %v712_v14 = vld [vmem:[%s1283_s2 + $0xe0] sm:$0xf]  ;;  %v836_v18 = vld [vmem:[%s1283_s2 + $0x64] sm:$0xf] }
   0x5   :  { %v853_v15 = vld [vmem:[%s1283_s2 + $0xe4] sm:$0xf0]  ;;  %255 = vmatpush.bf16.msra.mxu1 %v721_v7  ;;  %268 = vmatpush.bf16.msra.mxu2 %v661_v8  ;;  %v649_v16 = vor.u32 %v837_v13, %v648_v11  ;;  %v650_v19 = vld [vmem:[%s1283_s2 + $0x68] sm:$0xf0]  ;;  %v852_v20 = vld [vmem:[%s1283_s2 + $0xe4] sm:$0xf] }
   0x6   :  { %v713_v17 = vor.u32 %v853_v15, %v712_v14  ;;  %281 = vmatpush.bf16.msra.mxu3 %v725_v12  ;;  %v653_v21 = vor.u32 %v836_v18, %v650_v19  ;;  %v714_v22 = vld [vmem:[%s1283_s2 + $0xe8] sm:$0xf0]  ;;  %v640_v23 = vld [vmem:[%s1283_s2 + $0x50] sm:$0xf]  ;;  %v835_v24 = vld [vmem:[%s1283_s2 + $0x54] sm:$0xf0] }
   0x7   :  { %v717_v25 = vor.u32 %v852_v20, %v714_v22  ;;  %v704_v26 = vld [vmem:[%s1283_s2 + $0xd0] sm:$0xf]  ;;  %v851_v27 = vld [vmem:[%s1283_s2 + $0xd4] sm:$0xf0]  ;;  %v834_v28 = vld [vmem:[%s1283_s2 + $0x54] sm:$0xf]  ;;  %v641_v29 = vor.u32 %v835_v24, %v640_v23 }
   0x8   :  { %243 = vmatpush.bf16.msra.mxu0 %v649_v16  ;;  %v642_v30 = vld [vmem:[%s1283_s2 + $0x58] sm:$0xf0]  ;;  %v850_v31 = vld [vmem:[%s1283_s2 + $0xd4] sm:$0xf]  ;;  %v705_v33 = vor.u32 %v851_v27, %v704_v26  ;;  %v632_v35 = vld [vmem:[%s1283_s2 + $0x40] sm:$0xf] }
   0x9   :  { %v706_v32 = vld [vmem:[%s1283_s2 + $0xd8] sm:$0xf0]  ;;  %256 = vmatpush.bf16.msra.mxu1 %v713_v17  ;;  %269 = vmatpush.bf16.msra.mxu2 %v653_v21  ;;  %v645_v34 = vor.u32 %v834_v28, %v642_v30  ;;  %v833_v36 = vld [vmem:[%s1283_s2 + $0x44] sm:$0xf0]  ;;  %v696_v37 = vld [vmem:[%s1283_s2 + $0xc0] sm:$0xf] }
   0xa   :  { %282 = vmatpush.bf16.msra.mxu3 %v717_v25  ;;  %v709_v38 = vor.u32 %v850_v31, %v706_v32  ;;  %v849_v39 = vld [vmem:[%s1283_s2 + $0xc4] sm:$0xf0]  ;;  %v832_v40 = vld [vmem:[%s1283_s2 + $0x44] sm:$0xf]  ;;  %v634_v41 = vld [vmem:[%s1283_s2 + $0x48] sm:$0xf0]  ;;  %v633_v44 = vor.u32 %v833_v36, %v632_v35 }
   0xb   :  { %v848_v42 = vld [vmem:[%s1283_s2 + $0xc4] sm:$0xf]  ;;  %v698_v43 = vld [vmem:[%s1283_s2 + $0xc8] sm:$0xf0]  ;;  %v697_v45 = vor.u32 %v849_v39, %v696_v37  ;;  %v637_v46 = vor.u32 %v832_v40, %v634_v41  ;;  %v624_v47 = vld [vmem:[%s1283_s2 + $0x30] sm:$0xf] }
   0xc   :  { %244 = vmatpush.bf16.msra.mxu0 %v641_v29  ;;  %v831_v48 = vld [vmem:[%s1283_s2 + $0x34] sm:$0xf0]  ;;  %v688_v49 = vld [vmem:[%s1283_s2 + $0xb0] sm:$0xf]  ;;  %v701_v50 = vor.u32 %v848_v42, %v698_v43  ;;  %v830_v52 = vld [vmem:[%s1283_s2 + $0x34] sm:$0xf] }
   0xd   :  { %257 = vmatpush.bf16.msra.mxu1 %v705_v33  ;;  %270 = vmatpush.bf16.msra.mxu2 %v645_v34  ;;  %v847_v51 = vld [vmem:[%s1283_s2 + $0xb4] sm:$0xf0]  ;;  %v626_v53 = vld [vmem:[%s1283_s2 + $0x38] sm:$0xf0]  ;;  %v846_v54 = vld [vmem:[%s1283_s2 + $0xb4] sm:$0xf]  ;;  %v625_v56 = vor.u32 %v831_v48, %v624_v47 }
   0xe   :  { %283 = vmatpush.bf16.msra.mxu3 %v709_v38  ;;  %v690_v55 = vld [vmem:[%s1283_s2 + $0xb8] sm:$0xf0]  ;;  %v689_v57 = vor.u32 %v847_v51, %v688_v49  ;;  %v629_v58 = vor.u32 %v830_v52, %v626_v53  ;;  %v616_v59 = vld [vmem:[%s1283_s2 + $0x20] sm:$0xf]  ;;  %v829_v60 = vld [vmem:[%s1283_s2 + $0x24] sm:$0xf0] }
   0xf   :  { %v680_v61 = vld [vmem:[%s1283_s2 + $0xa0] sm:$0xf]  ;;  %v693_v62 = vor.u32 %v846_v54, %v690_v55  ;;  %v845_v63 = vld [vmem:[%s1283_s2 + $0xa4] sm:$0xf0]  ;;  %v828_v0 = vld [vmem:[%s1283_s2 + $0x24] sm:$0xf]  ;;  %v617_v4 = vor.u32 %v829_v60, %v616_v59 }
  0x10   :  { %245 = vmatpush.bf16.msra.mxu0 %v633_v44  ;;  %v618_v1 = vld [vmem:[%s1283_s2 + $0x28] sm:$0xf0]  ;;  %v844_v2 = vld [vmem:[%s1283_s2 + $0xa4] sm:$0xf]  ;;  %v681_v5 = vor.u32 %v845_v63, %v680_v61  ;;  %v608_v7 = vld [vmem:[%s1283_s2 + $0x10] sm:$0xf] }
  0x11   :  { %258 = vmatpush.bf16.msra.mxu1 %v697_v45  ;;  %271 = vmatpush.bf16.msra.mxu2 %v637_v46  ;;  %v682_v3 = vld [vmem:[%s1283_s2 + $0xa8] sm:$0xf0]  ;;  %v621_v6 = vor.u32 %v828_v0, %v618_v1  ;;  %v827_v8 = vld [vmem:[%s1283_s2 + $0x14] sm:$0xf0]  ;;  %v672_v9 = vld [vmem:[%s1283_s2 + $0x90] sm:$0xf] }
  0x12   :  { %284 = vmatpush.bf16.msra.mxu3 %v701_v50  ;;  %v685_v10 = vor.u32 %v844_v2, %v682_v3  ;;  %v843_v11 = vld [vmem:[%s1283_s2 + $0x94] sm:$0xf0]  ;;  %v826_v12 = vld [vmem:[%s1283_s2 + $0x14] sm:$0xf]  ;;  %v610_v13 = vld [vmem:[%s1283_s2 + $0x18] sm:$0xf0]  ;;  %v609_v16 = vor.u32 %v827_v8, %v608_v7 }
  0x13   :  { %v842_v14 = vld [vmem:[%s1283_s2 + $0x94] sm:$0xf]  ;;  %v674_v15 = vld [vmem:[%s1283_s2 + $0x98] sm:$0xf0]  ;;  %v673_v17 = vor.u32 %v843_v11, %v672_v9  ;;  %v613_v18 = vor.u32 %v826_v12, %v610_v13  ;;  %v600_v19 = vld [vmem:[%s1283_s2] sm:$0xf] }
  0x14   :  { %246 = vmatpush.bf16.msra.mxu0 %v625_v56  ;;  %v825_v20 = vld [vmem:[%s1283_s2 + $0x4] sm:$0xf0]  ;;  %v664_v21 = vld [vmem:[%s1283_s2 + $0x80] sm:$0xf]  ;;  %v677_v22 = vor.u32 %v842_v14, %v674_v15  ;;  %v824_v24 = vld [vmem:[%s1283_s2 + $0x4] sm:$0xf] }
  0x15   :  { %259 = vmatpush.bf16.msra.mxu1 %v689_v57  ;;  %272 = vmatpush.bf16.msra.mxu2 %v629_v58  ;;  %v841_v23 = vld [vmem:[%s1283_s2 + $0x84] sm:$0xf0]  ;;  %v602_v25 = vld [vmem:[%s1283_s2 + $0x8] sm:$0xf0]  ;;  %v840_v26 = vld [vmem:[%s1283_s2 + $0x84] sm:$0xf]  ;;  %v601_v28 = vor.u32 %v825_v20, %v600_v19 }
  0x16   :  { %285 = vmatpush.bf16.msra.mxu3 %v693_v62  ;;  %v666_v27 = vld [vmem:[%s1283_s2 + $0x88] sm:$0xf0]  ;;  %v46_v29 = vld [vmem:[%s1284_s0] sm:$0xff]  ;;  %v665_v30 = vor.u32 %v841_v23, %v664_v21  ;;  %v605_v31 = vor.u32 %v824_v24, %v602_v25  ;;  %v886_v56 = vmov 256.0   ;;  %v863_v57 = vld [vmem:[%s1287_s6 + $0x38] sm:$0xff] }
  0x17   :  { %v47_v32 = vld [vmem:[%s1284_s0 + $0x8] sm:$0xff]  ;;  %v669_v33 = vor.u32 %v840_v26, %v666_v27  ;;  %v48_v34 = vpack.c.bf16 %v46_v29, %v46_v29  ;;  %v38_v36 = vld [vmem:[%s1285_s3] sm:$0x3]  ;;  %882 = vrcp.f32 %v886_v56  ;;  %v871_v58 = vld [vmem:[%s1287_s6 + $0x78] sm:$0xff] }
  0x18   :  { %247 = vmatpush.bf16.msra.mxu0 %v617_v4  ;;  %v49_v35 = vpack.c.bf16 %v47_v32, %v47_v32  ;;  %v40_v38 = vperm.slane %v38_v36, 0  ;;  %v36_v40 = vld [vmem:[%s1286_s1] sm:$0xff]  ;;  %v41_v41 = vperm.slane %v38_v36, 1  ;;  %v37_v42 = vld [vmem:[%s1286_s1 + $0x8] sm:$0xff]  ;;  %v862_v8 = vld [vmem:[%s1287_s6 + $0x30] sm:$0xff] }
  0x19   :  { %260 = vmatpush.bf16.msra.mxu1 %v681_v5  ;;  %273 = vmatpush.bf16.msra.mxu2 %v621_v6  ;;  %v870_v9 = vld [vmem:[%s1287_s6 + $0x70] sm:$0xff]  ;;  %v869_v11 = vld [vmem:[%s1287_s6 + $0x68] sm:$0xff]  ;;  %v860_v12 = vld [vmem:[%s1287_s6 + $0x20] sm:$0xff] }
  0x1a   :  { %286 = vmatpush.bf16.msra.mxu3 %v685_v10  ;;  %v44_v43 = vadd.f32 %v40_v38, %v36_v40  ;;  %v45_v46 = vadd.f32 %v41_v41, %v37_v42  ;;  %v861_v10 = vld [vmem:[%s1287_s6 + $0x28] sm:$0xff]  ;;  %v868_v13 = vld [vmem:[%s1287_s6 + $0x60] sm:$0xff]  ;;  %v859_v14 = vld [vmem:[%s1287_s6 + $0x18] sm:$0xff] }
  0x1b   :  { %v867_v15 = vld [vmem:[%s1287_s6 + $0x58] sm:$0xff]  ;;  %v865_v19 = vld [vmem:[%s1287_s6 + $0x48] sm:$0xff]  ;;  %v856_v20 = vld [vmem:[%s1287_s6] sm:$0xff] }
  0x1c   :  { %248 = vmatpush.bf16.msra.mxu0 %v609_v16  ;;  %v858_v16 = vld [vmem:[%s1287_s6 + $0x10] sm:$0xff]  ;;  %v864_v21 = vld [vmem:[%s1287_s6 + $0x40] sm:$0xff]  ;;  %v879_v23 = vld [vmem:[%s1289_s8 + $0x34] sm:$0xf0] }
  0x1d   :  { %261 = vmatpush.bf16.msra.mxu1 %v673_v17  ;;  %274 = vmatpush.bf16.msra.mxu2 %v613_v18  ;;  %v883_v59 = vpop.eup %882  ;;  %v866_v17 = vld [vmem:[%s1287_s6 + $0x50] sm:$0xff]  ;;  %v857_v18 = vld [vmem:[%s1287_s6 + $0x8] sm:$0xff]  ;;  %v818_v27 = vld [vmem:[%s1289_s8 + $0x38] sm:$0xf0] }
  0x1e   :  { %287 = vmatpush.bf16.msra.mxu3 %v677_v22  ;;  %v300_v60 = vmul.f32 256.0, %v883_v59  ;;  %vm304_vm0 = vweird.f32 %v883_v59  ;;  %v816_v22 = vld [vmem:[%s1289_s8 + $0x30] sm:$0xf]  ;;  %v878_v24 = vld [vmem:[%s1289_s8 + $0x34] sm:$0xf] }
  0x1f   :  { %v817_v26 = vor.u32 %v879_v23, %v816_v22  ;;  %v877_v29 = vld [vmem:[%s1289_s8 + $0x24] sm:$0xf0]  ;;  %v876_v32 = vld [vmem:[%s1289_s8 + $0x24] sm:$0xf]  ;;  %v328_v42 = vld [vmem:[%s1290_s4] sm:$0x3] }
  0x20   :  { %249 = vmatpush.bf16.msra.mxu0 %v601_v28  ;;  %v301_v61 = vsub.f32 1.0, %v300_v60  ;;  %v808_v28 = vld [vmem:[%s1289_s8 + $0x20] sm:$0xf]  ;;  %v800_v60 = vld [vmem:[%s1289_s8 + $0x10] sm:$0xf] }
  0x21   :  { %262 = vmatpush.bf16.msra.mxu1 %v665_v30  ;;  %275 = vmatpush.bf16.msra.mxu2 %v605_v31  ;;  %v821_v31 = vor.u32 %v878_v24, %v818_v27 }
  0x22   :  { %288 = vmatpush.bf16.msra.mxu3 %v669_v33  ;;  %v302_v62 = vmul.f32 %v883_v59, %v301_v61  ;;  %v810_v33 = vld [vmem:[%s1289_s8 + $0x28] sm:$0xf0]  ;;  %v875_v61 = vld [vmem:[%s1289_s8 + $0x14] sm:$0xf0] }
  0x23   :  { %250 = vmatmul.bf16.vlgmr.msra.gmra.mxu0 %v48_v34  ;;  %v813_v36 = vor.u32 %v876_v32, %v810_v33 }
  0x24   :  { %263 = vmatmul.bf16.vlgmr.msra.gmra.mxu1 %v49_v35  ;;  %276 = vmatmul.bf16.vlgmr.msra.gmra.mxu2 %v48_v34  ;;  %v303_v63 = vadd.f32 %v883_v59, %v302_v62  ;;  %v809_v34 = vor.u32 %v877_v29, %v808_v28  ;;  %v874_v62 = vld [vmem:[%s1289_s8 + $0x14] sm:$0xf] }
  0x25   :  { %289 = vmatmul.bf16.vlgmr.msra.gmra.mxu3 %v49_v35  ;;  %478 = vmatpush.bf16.msrb.mxu0 %v863_v57 }
  0x26   :  { %491 = vmatpush.bf16.msrb.mxu1 %v871_v58  ;;  %v305_v0 = vsel %vm304_vm0, %v883_v59, %v303_v63  ;;  %568 = vmatpush.bf16.msrb.mxu2 %v817_v26  ;;  %v801_v63 = vor.u32 %v875_v61, %v800_v60 }
  0x27   :  { %581 = vmatpush.bf16.msrb.mxu3 %v821_v31 }
  0x29   :  { %479 = vmatpush.bf16.msrb.mxu0 %v862_v8  ;;  %v881_v8 = vld [vmem:[%s1288_s7] ss:$0 sm:$0xff] }
  0x2a   :  { %492 = vmatpush.bf16.msrb.mxu1 %v870_v9  ;;  %569 = vmatpush.bf16.msrb.mxu2 %v809_v34 }
  0x2b   :  { %582 = vmatpush.bf16.msrb.mxu3 %v813_v36 }
  0x2d   :  { %480 = vmatpush.bf16.msrb.mxu0 %v861_v10 }
  0x2e   :  { %493 = vmatpush.bf16.msrb.mxu1 %v869_v11  ;;  %570 = vmatpush.bf16.msrb.mxu2 %v801_v63 }
  0x31   :  { %481 = vmatpush.bf16.msrb.mxu0 %v860_v12 }
  0x32   :  { %494 = vmatpush.bf16.msrb.mxu1 %v868_v13 }
  0x35   :  { %482 = vmatpush.bf16.msrb.mxu0 %v859_v14 }
  0x36   :  { %495 = vmatpush.bf16.msrb.mxu1 %v867_v15 }
  0x39   :  { %483 = vmatpush.bf16.msrb.mxu0 %v858_v16 }
  0x3a   :  { %496 = vmatpush.bf16.msrb.mxu1 %v866_v17  ;;  %v514_v17 = vld [vmem:[%s1292_s9] sm:$0x3] }
  0x3d   :  { %484 = vmatpush.bf16.msrb.mxu0 %v857_v18  ;;  %v516_v18 = vperm.slane %v514_v17, 0 }
  0x3e   :  { %497 = vmatpush.bf16.msrb.mxu1 %v865_v19  ;;  %v517_v19 = vperm.slane %v514_v17, 1 }
  0x41   :  { %485 = vmatpush.bf16.msrb.mxu0 %v856_v20 }
  0x42   :  { %498 = vmatpush.bf16.msrb.mxu1 %v864_v21 }
  0xa0   :  { %v251_v37 = vpop.f32.mrf.mxu0 }
  0xa1   :  { %v264_v39 = vpop.f32.mrf.mxu1 }
  0xa2   :  { %v265_v44 = vadd.f32 %v264_v39, %v251_v37 }
  0xa4   :  { %v1149_v49 = vadd.f32 %v265_v44, %v44_v43  ;;  %v336_v44 = vld [vmem:[%s1291_s5] sm:$0x3] }
  0xa7   :  { %v277_v45 = vpop.f32.mrf.mxu2 }
  0xa8   :  { %v290_v47 = vpop.f32.mrf.mxu3  ;;  %v253_v48 = vpop.f32.mrf.mxu0 }
  0xa9   :  { %v291_v50 = vadd.f32 %v290_v47, %v277_v45  ;;  %v266_v51 = vpop.f32.mrf.mxu1  ;;  %v330_v45 = vperm.slane %v328_v42, 0 }
  0xab   :  { %v1151_v52 = vadd.f32 %v291_v50, %v45_v46  ;;  %v331_v46 = vperm.slane %v328_v42, 1  ;;  %v338_v50 = vperm.slane %v336_v44, 0 }
  0xad   :  { %v296_v53 = vadd.f32 %v1151_v52, %v1149_v49 }
  0xaf   :  { %297 = vadd.xlane.f32.xlu0 %v296_v53  ;;  %v279_v54 = vpop.f32.mrf.mxu2  ;;  %v339_v53 = vperm.slane %v336_v44, 1 }
  0xb0   :  { %v292_v55 = vpop.f32.mrf.mxu3 }
 0x122   :  { %v298_v1 = vpop.xlane.xlu0 %297 }
 0x123   :  { %v306_v2 = vmul.f32 %v305_v0, %v298_v1 }
 0x125   :  { %v1162_v3 = vsub.f32 %v1149_v49, %v306_v2  ;;  %v1165_v4 = vsub.f32 %v1151_v52, %v306_v2  ;;  %v792_v2 = vld [vmem:[%s1289_s8] sm:$0xf] }
 0x127   :  { %v309_v5 = vmul.f32 %v1162_v3, %v1162_v3  ;;  %v310_v6 = vmul.f32 %v1165_v4, %v1165_v4 }
 0x129   :  { %v311_v7 = vadd.f32 %v310_v6, %v309_v5  ;;  %v794_v6 = vld [vmem:[%s1289_s8 + $0x8] sm:$0xf0] }
 0x12b   :  { %312 = vadd.xlane.f32.xlu0 %v311_v7 }
 0x19e   :  { %v313_v25 = vpop.xlane.xlu0 %312 }
 0x19f   :  { %v314_v30 = vmul.f32 %v313_v25, %v305_v0  ;;  %v802_v0 = vld [vmem:[%s1289_s8 + $0x18] sm:$0xf0] }
 0x1a0   :  { %v805_v1 = vor.u32 %v874_v62, %v802_v0 }
 0x1a1   :  { %v315_v35 = vadd.f32 1e-05, %v314_v30 }
 0x1a2   :  { %583 = vmatpush.bf16.msrb.mxu3 %v805_v1 }
 0x1a3   :  { %884 = vrsqrt.f32 %v315_v35  ;;  %vm322_vm2 = vweird.f32 %v315_v35 }
 0x1a9   :  { %v885_v37 = vpop.eup %884 }
 0x1aa   :  { %v317_v38 = vmul.f32 %v885_v37, %v315_v35  ;;  %vm323_vm1 = vweird.f32 %v885_v37 }
 0x1ab   :  { %vm324_vm3 = vmor %vm322_vm2, %vm323_vm1 }
 0x1ac   :  { %v318_v39 = vmul.f32 %v885_v37, %v317_v38 }
 0x1ae   :  { %v319_v40 = vmul.f32 0.5, %v318_v39 }
 0x1b0   :  { %v320_v41 = vsub.f32 1.5, %v319_v40 }
 0x1b2   :  { %v321_v43 = vmul.f32 %v885_v37, %v320_v41 }
 0x1b4   :  { %v325_v47 = vsel %vm324_vm3, %v885_v37, %v321_v43 }
 0x1b5   :  { %v326_v48 = vmul.f32 %v325_v47, %v1162_v3  ;;  %v327_v51 = vmul.f32 %v325_v47, %v1165_v4  ;;  %v873_v3 = vld [vmem:[%s1289_s8 + $0x4] sm:$0xf0]  ;;  %v872_v4 = vld [vmem:[%s1289_s8 + $0x4] sm:$0xf] }
 0x1b6   :  { %v793_v5 = vor.u32 %v873_v3, %v792_v2  ;;  %v797_v7 = vor.u32 %v872_v4, %v794_v6 }
 0x1b7   :  { %v334_v54 = vmul.f32 %v330_v45, %v326_v48  ;;  %v335_v55 = vmul.f32 %v331_v46, %v327_v51 }
 0x1b8   :  { %571 = vmatpush.bf16.msrb.mxu2 %v793_v5  ;;  %584 = vmatpush.bf16.msrb.mxu3 %v797_v7 }
 0x1b9   :  { %v342_v56 = vadd.f32 %v338_v50, %v334_v54  ;;  %v343_v57 = vadd.f32 %v339_v53, %v335_v55 }
 0x1bb   :  { %v344_v58 = vpack.c.bf16 %v342_v56, %v342_v56  ;;  %v345_v59 = vpack.c.bf16 %v343_v57, %v343_v57 }
 0x1bd   :  { %486 = vmatmul.bf16.vlgmr.msrb.gmra.mxu0 %v344_v58  ;;  %499 = vmatmul.bf16.vlgmr.msrb.gmra.mxu1 %v345_v59 }
 0x23a   :  { %v487_v9 = vpop.f32.mrf.mxu0  ;;  %v500_v10 = vpop.f32.mrf.mxu1 }
 0x23b   :  { %v488_v11 = vadd.f32 %v881_v8, %v487_v9 }
 0x23d   :  { %v501_v12 = vadd.f32 %v500_v10, %v488_v11 }
 0x23f   :  { %v504_v13 = vmax.f32 %v501_v12, 0.0 }
 0x241   :  { %v505_v14 = vpack.c.bf16 %v504_v13, %v504_v13 }
 0x242   :  { %v489_v15 = vpop.f32.mrf.mxu0  ;;  %v502_v16 = vpop.f32.mrf.mxu1 }
 0x243   :  { %822 = vmatmul.msk.bf16.vlgmr.msrb.gmra.mxu2 %vm560_vm4, %v505_v14  ;;  %823 = vmatmul.msk.bf16.vlgmr.msrb.gmra.mxu3 %vm560_vm4, %v505_v14 }
 0x2c6   :  { %v573_v20 = vpop.f32.mrf.mxu2  ;;  %v586_v21 = vpop.f32.mrf.mxu3 }
 0x2c7   :  { %v574_v22 = vadd.f32 %v573_v20, %v516_v18  ;;  %v587_v23 = vadd.f32 %v586_v21, %v517_v19 }
 0x2c9   :  { %v590_v24 = vadd.f32 %v574_v22, %v1149_v49  ;;  %v591_v25 = vadd.f32 %v587_v23, %v1151_v52 }
 0x2cb   :  { %592 = vst [vmem:[%s1293_s10] sm:$0xff] %v590_v24 }
 0x2cc   :  { %593 = vst [vmem:[%s1293_s10 + $0x8] sm:$0xff] %v591_v25 }
 0x2ce   :  { %v575_v26 = vpop.f32.mrf.mxu2  ;;  %v588_v27 = vpop.f32.mrf.mxu3 }

</bundles_post_ra>
